<compile_context>
chip_gen: v6e
topology: v6e:2x2x1
jax: 0.10.0
libtpu: 0.0.40
codegen_flags: <defaults>
</compile_context>

<pallas_src>
import jax
import jax.numpy as jnp
from jax.experimental import pallas as pl
from jax.experimental.pallas import tpu as pltpu


def _round_up(x, m):
    return ((x + m - 1) // m) * m


# -----------------------------------------------------------------------------
# Parameter fusion + edge folding (hoisted out of the per-call path).
# PyTorch GRUCell semantics (gate order r, z, n):
#   r  = sigmoid(x Wir^T + bir + h Whr^T + bhr)
#   z  = sigmoid(x Wiz^T + biz + h Whz^T + bhz)
#   n  = tanh   (x Win^T + bin + r * (h Whn^T + bhn))
#   h' = (1 - z) * n + z * h
# Per-piece fused layout (one [d_k, 4H] slab per input piece + one for h):
#   cols [0:H)   -> r pre-act,  cols [H:2H) -> z pre-act,
#   cols [2H:3H) -> i_n part,   cols [3H:4H) -> h_n part.
# Edge folding: piece [d, 4H] -> [fold*d, 4*fold*H]; folded row f holds edges
# (fold*f + j), sub-edge j uses weight rows [j*d,(j+1)*d) and, within each gate
# group of fold*H columns, the column band [j*H,(j+1)*H).
# -----------------------------------------------------------------------------
def _gru_piece_weights(w_ih, w_hh, b_ih, b_hh, input_splits):
    w_ih = jnp.asarray(w_ih, jnp.float32)   # [3H, D]
    w_hh = jnp.asarray(w_hh, jnp.float32)   # [3H, H]
    b_ih = jnp.asarray(b_ih, jnp.float32)
    b_hh = jnp.asarray(b_hh, jnp.float32)
    H = w_hh.shape[1]
    D = w_ih.shape[1]
    assert sum(input_splits) == D, (input_splits, D)
    wir, wiz, win = w_ih[:H].T, w_ih[H:2 * H].T, w_ih[2 * H:].T   # [D, H]
    whr, whz, whn = w_hh[:H].T, w_hh[H:2 * H].T, w_hh[2 * H:].T   # [H, H]
    pieces = []
    off = 0
    for d in input_splits:
        zpad = jnp.zeros((d, H), jnp.float32)
        pieces.append(jnp.concatenate(
            [wir[off:off + d], wiz[off:off + d], win[off:off + d], zpad], axis=1))
        off += d
    zH = jnp.zeros((H, H), jnp.float32)
    pieces.append(jnp.concatenate([whr, whz, zH, whn], axis=1))   # hidden piece
    bias = jnp.concatenate([b_ih[:H] + b_hh[:H],
                            b_ih[H:2 * H] + b_hh[H:2 * H],
                            b_ih[2 * H:], b_hh[2 * H:]])           # [4H]
    return pieces, bias, H


def _fold_piece(wp, H, fold):
    """[d, 4H] -> [fold*d, 4*fold*H] block-structured folded weight."""
    d = wp.shape[0]
    out = jnp.zeros((fold * d, 4 * fold * H), jnp.float32)
    for j in range(fold):
        for g in range(4):
            out = out.at[j * d:(j + 1) * d,
                         g * fold * H + j * H: g * fold * H + (j + 1) * H
                         ].set(wp[:, g * H:(g + 1) * H])
    return out


def _fold_bias(b, H, fold):
    return jnp.concatenate([jnp.tile(b[g * H:(g + 1) * H], fold) for g in range(4)])


def prepare_decimator_params(raw_params, message_dimension, edge_dimension,
                             meta_data_dimension, *, fold=4,
                             param_dtype=jnp.bfloat16):
    """Fuse, split and edge-fold both GRUCells' weights ONCE (not per forward)."""
    if isinstance(message_dimension, tuple):
        vmd, fmd = message_dimension
    else:
        vmd = fmd = message_dimension
    shared_dims = tuple(int(d) for d in (edge_dimension, meta_data_dimension) if d)

    def prep(raw, msg_dim):
        splits = (int(msg_dim),) + shared_dims
        pieces, bias, H = _gru_piece_weights(*raw, input_splits=splits)
        wf = [_fold_piece(p, H, fold).astype(param_dtype) for p in pieces]
        bf = _fold_bias(bias, H, fold).reshape(1, -1).astype(jnp.float32)
        return wf, bf

    wv, bv = prep(raw_params["variable"], vmd)
    wf_, bf_ = prep(raw_params["function"], fmd)
    if vmd == fmd:   # common non-tuple message_dimension case: stack the cells
        return {"shared": True, "fold": fold,
                "w_pieces": [jnp.stack([a, b]) for a, b in zip(wv, wf_)],
                "b": jnp.stack([bv, bf_])}
    return {"shared": False, "fold": fold,
            "w_pieces": (wv, wf_), "b": (bv, bf_)}


# -----------------------------------------------------------------------------
# Pallas kernel: fused (stacked) GRUCell + decimation mask blend, edge-folded.
#   out = mask * GRU([msg, shared..., ], h) + (1 - mask) * h
# -----------------------------------------------------------------------------
def _make_gru_decimate_kernel(n_pieces, precision):
    P = n_pieces

    def kernel(*refs):
        piece_refs = refs[:P]                    # [msg, shared..., h] (folded)
        mask_ref = refs[P]                       # [TF, fold]
        w_refs = refs[P + 1:2 * P + 1]           # folded weight slabs
        b_ref = refs[2 * P + 1]                  # [1, 4*fold*H] f32
        sel_ref = refs[2 * P + 2]                # [fold, fold*H] 0/1 selection
        out_ref = refs[2 * P + 3]                # [TF, fold*H]

        # Accumulated per-piece MXU dots; bias broadcast happens exactly once.
        g = b_ref[...]
        for x_ref, w_ref in zip(piece_refs, w_refs):
            g = g + jnp.dot(x_ref[...], w_ref[...],
                            preferred_element_type=jnp.float32,
                            precision=precision)

        Hf = piece_refs[-1].shape[-1]                       # fold*H (lane-dense)
        h = piece_refs[-1][...].astype(jnp.float32)         # [TF, fold*H]

        # All gate slices are at multiples of fold*H (=128) lanes: aligned.
        rz = jax.nn.sigmoid(g[:, :2 * Hf])                  # one 2*Hf sigmoid slab
        r = rz[:, :Hf]
        z = rz[:, Hf:]
        n = jnp.tanh(g[:, 2 * Hf:3 * Hf] + r * g[:, 3 * Hf:])
        new_h = (1.0 - z) * n + z * h

        # Expand mask [TF, fold] -> [TF, fold*H] with a tiny exact 0/1 matmul.
        m = jnp.dot(mask_ref[...], sel_ref[...],
                    preferred_element_type=jnp.float32, precision=precision)
        out_ref[...] = (m * new_h + (1.0 - m) * h).astype(out_ref.dtype)

    return kernel


def gru_decimate_fused(msg, shared_feats, h, mask, w_pieces, b_fused, *,
                       fold=4, tile_e=4096, stream_dtype=jnp.bfloat16,
                       out_dtype=jnp.float32, precision=None):
    """Fused GRUCell + decimation blend over C stacked cells.

    msg:          [C, E, Dm]     per-cell message state
    shared_feats: list of [E, d] features shared by all cells
    h:            [C, E, H]      per-cell initial hidden state
    mask:         [E, 1]         decimation mask (0/1)
    w_pieces:     list (msg, shared..., hidden) of [C, fold*d, 4*fold*H]
    b_fused:      [C, 1, 4*fold*H]
    returns:      [C, E, H]      out_dtype
    """
    C, E, H = h.shape
    Dm = msg.shape[2]
    widths = [Dm] + [int(f.shape[1]) for f in shared_feats] + [H]
    P = len(widths)
    Wg = 4 * fold * H
    assert len(w_pieces) == P
    for wk, d in zip(w_pieces, widths):
        assert wk.shape == (C, fold * d, Wg), (wk.shape, d, fold, Wg)
    assert b_fused.shape == (C, 1, Wg)

    # Edge-axis granularity: `fold` edges per folded row, 16 sublanes per tile
    # (safe for bf16 packing and f32 alike).  Tiles default large (HBM-bound
    # kernel; per-grid-step overhead amortizes); clamp for small problems.
    gran = fold * 16
    tile_e = max(gran, min(_round_up(tile_e, gran), _round_up(E, gran)))
    n_tiles = pl.cdiv(E, tile_e)
    e_pad = n_tiles * tile_e
    pad = e_pad - E
    tf = tile_e // fold
    rows = e_pad // fold

    def pad_e(a, axis):
        if pad == 0:
            return a
        w = [(0, 0)] * a.ndim
        w[axis] = (0, pad)
        return jnp.pad(a, w)

    # Wrapper-side edge folding: contiguous row-major reshapes (free).
    msg_f = pad_e(msg, 1).astype(stream_dtype).reshape(C, rows, fold * Dm)
    shared_f = [pad_e(f, 0).astype(stream_dtype).reshape(rows, fold * int(f.shape[1]))
                for f in shared_feats]
    h_f = pad_e(h, 1).astype(stream_dtype).reshape(C, rows, fold * H)
    # Padded edges: mask == 0 and h == 0  =>  padded outputs are exactly 0 and
    # are sliced off below.  Invariant: never alias this output onto h unsliced.
    mask_f = pad_e(mask, 0).astype(stream_dtype).reshape(rows, fold)

    # 0/1 selection matrix: folded mask row [m_0..m_{fold-1}] -> [m_0*1_H | ...].
    sel = jnp.repeat(jnp.eye(fold, dtype=stream_dtype), H, axis=1)   # [fold, fold*H]

    def cellspec(w):
        return pl.BlockSpec((None, tf, w), lambda c, i: (c, i, 0))

    def flatspec(w):
        return pl.BlockSpec((tf, w), lambda c, i: (i, 0))

    in_specs = (
        [cellspec(fold * Dm)]                                            # msg
        + [flatspec(fold * int(f.shape[1])) for f in shared_feats]      # shared
        + [cellspec(fold * H),                                           # h
           flatspec(fold)]                                               # mask
        + [pl.BlockSpec((None, fold * d, Wg), lambda c, i: (c, 0, 0))
           for d in widths]                                              # weights
        + [pl.BlockSpec((None, 1, Wg), lambda c, i: (c, 0, 0)),          # bias
           pl.BlockSpec((fold, fold * H), lambda c, i: (0, 0))]          # sel
    )

    out = pl.pallas_call(
        _make_gru_decimate_kernel(P, precision),
        out_shape=jax.ShapeDtypeStruct((C, rows, fold * H), out_dtype),
        grid_spec=pltpu.PrefetchScalarGridSpec(
            num_scalar_prefetch=0,
            grid=(C, n_tiles),
            in_specs=in_specs,
            out_specs=pl.BlockSpec((None, tf, fold * H), lambda c, i: (c, i, 0)),
        ),
        compiler_params=pltpu.CompilerParams(
            dimension_semantics=("parallel", "parallel")),
    )(msg_f, *shared_f, h_f, mask_f, *w_pieces, b_fused, sel)

    return out.reshape(C, e_pad, H)[:, :E, :]


# -----------------------------------------------------------------------------
# NeuralDecimator.forward equivalent
# -----------------------------------------------------------------------------
def neural_decimator_forward(prepared_params, init_state, message_state,
                             edge_feature, meta_data, graph_mask_tuple,
                             batch_mask_tuple, active_mask=None, *,
                             tile_e=4096, stream_dtype=jnp.bfloat16,
                             precision=None):
    (variable_mask, variable_mask_T,
     function_mask, function_mask_T) = graph_mask_tuple
    (b_variable_mask, b_variable_mask_T,
     b_function_mask, b_function_mask_T) = batch_mask_tuple

    edge_num = init_state[0].shape[0]

    # --- decimation mask (graph glue: tiny 0/1 indicator matmuls, plain JAX) --
    if active_mask is not None:
        mask = jnp.matmul(b_variable_mask, active_mask.astype(jnp.float32))
        mask = jnp.matmul(variable_mask_T, mask)                 # [E, 1]
    else:
        mask = jnp.ones((edge_num, 1), jnp.float32)

    # --- per-edge graph meta features (variable masks for BOTH cells, exactly
    #     as in the PyTorch reference) ----------------------------------------
    graph_feat = None
    if meta_data is not None:
        graph_feat = jnp.matmul(b_variable_mask, meta_data)      # [n_vars, M]
        graph_feat = jnp.matmul(variable_mask_T, graph_feat)     # [E, M]

    variable_state, function_state = message_state
    shared_feats = [edge_feature]
    if graph_feat is not None:
        shared_feats.append(graph_feat)

    kw = dict(fold=prepared_params["fold"], tile_e=tile_e,
              stream_dtype=stream_dtype, precision=precision)

    if prepared_params["shared"]:
        msg = jnp.stack([variable_state, function_state])        # [2, E, Dm]
        h = jnp.stack([init_state[0], init_state[1]])            # [2, E, H]
        out = gru_decimate_fused(msg, shared_feats, h, mask,
                                 prepared_params["w_pieces"],
                                 prepared_params["b"], **kw)
        return out[0], out[1]

    # Tuple message dims with differing widths: one cell per call (C = 1).
    outs = []
    for c, m_state in enumerate((variable_state, function_state)):
        w_pieces_c = [w[None] for w in prepared_params["w_pieces"][c]]
        b_c = prepared_params["b"][c][None]
        o = gru_decimate_fused(m_state[None], shared_feats, init_state[c][None],
                               mask, w_pieces_c, b_c, **kw)
        outs.append(o[0])
    return outs[0], outs[1]


# -----------------------------------------------------------------------------
# Pure-JAX reference (original PyTorch GRUCell math, for correctness checking)
# -----------------------------------------------------------------------------
def _gru_ref(x, h, w_ih, w_hh, b_ih, b_hh):
    H = h.shape[1]
    gi = x @ w_ih.T + b_ih
    gh = h @ w_hh.T + b_hh
    r = jax.nn.sigmoid(gi[:, :H] + gh[:, :H])
    z = jax.nn.sigmoid(gi[:, H:2 * H] + gh[:, H:2 * H])
    n = jnp.tanh(gi[:, 2 * H:] + r * gh[:, 2 * H:])
    return (1.0 - z) * n + z * h


def _init_gru_params(key, input_dim, hidden_dim):
    k1, k2, k3, k4 = jax.random.split(key, 4)
    bound = 1.0 / jnp.sqrt(hidden_dim)
    w_ih = jax.random.uniform(k1, (3 * hidden_dim, input_dim), jnp.float32,
                              -bound, bound)
    w_hh = jax.random.uniform(k2, (3 * hidden_dim, hidden_dim), jnp.float32,
                              -bound, bound)
    b_ih = jax.random.uniform(k3, (3 * hidden_dim,), jnp.float32, -bound, bound)
    b_hh = jax.random.uniform(k4, (3 * hidden_dim,), jnp.float32, -bound, bound)
    return (w_ih, w_hh, b_ih, b_hh)


if __name__ == "__main__":
    key = jax.random.PRNGKey(0)

    # Small problem sizes (edge_num deliberately NOT a multiple of the fold*16
    # granule to exercise the cdiv + padding path).
    batch = 2
    n_vars = 6
    n_funcs = 4
    edge_num = 70
    message_dim = 8          # variable == function message dim (non-tuple case)
    meta_dim = 4
    edge_dim = 2
    hidden_dim = 32          # fold=4 -> gate slab 4*fold*H = 512 lanes, out 128
    input_dim = message_dim + edge_dim + meta_dim

    keys = jax.random.split(key, 12)

    # Raw (PyTorch-layout) parameters, fused/folded once at init time.
    raw_params = {
        "variable": _init_gru_params(keys[0], input_dim, hidden_dim),
        "function": _init_gru_params(keys[1], input_dim, hidden_dim),
    }
    prepared_bf16 = prepare_decimator_params(
        raw_params, message_dim, edge_dim, meta_dim, param_dtype=jnp.bfloat16)
    prepared_f32 = prepare_decimator_params(
        raw_params, message_dim, edge_dim, meta_dim, param_dtype=jnp.float32)

    # Graph structure: each edge connects a variable and a function; each
    # variable / function belongs to a batch element.  Indicator matrices only.
    edge_var = jax.random.randint(keys[2], (edge_num,), 0, n_vars)
    edge_fun = jax.random.randint(keys[3], (edge_num,), 0, n_funcs)
    var_batch = jax.random.randint(keys[4], (n_vars,), 0, batch)
    fun_batch = jax.random.randint(keys[5], (n_funcs,), 0, batch)

    variable_mask = (jnp.arange(n_vars)[:, None] == edge_var[None, :]
                     ).astype(jnp.float32)                      # [n_vars, E]
    function_mask = (jnp.arange(n_funcs)[:, None] == edge_fun[None, :]
                     ).astype(jnp.float32)                      # [n_funcs, E]
    b_variable_mask = (jnp.arange(batch)[None, :] == var_batch[:, None]
                       ).astype(jnp.float32)                    # [n_vars, B]
    b_function_mask = (jnp.arange(batch)[None, :] == fun_batch[:, None]
                       ).astype(jnp.float32)                    # [n_funcs, B]

    graph_mask_tuple = (variable_mask, variable_mask.T,
                        function_mask, function_mask.T)
    batch_mask_tuple = (b_variable_mask, b_variable_mask.T,
                        b_function_mask, b_function_mask.T)

    # States / features.
    init_state = (
        jax.random.normal(keys[6], (edge_num, hidden_dim), jnp.float32),
        jax.random.normal(keys[7], (edge_num, hidden_dim), jnp.float32),
    )
    message_state = (
        jax.random.normal(keys[8], (edge_num, message_dim), jnp.float32),
        jax.random.normal(keys[9], (edge_num, message_dim), jnp.float32),
    )
    edge_feature = jax.random.normal(keys[10], (edge_num, edge_dim), jnp.float32)
    meta_data = jax.random.normal(keys[11], (batch, meta_dim), jnp.float32)
    active_mask = jnp.array([[1.0], [0.0]], jnp.float32)        # [B, 1]

    # --- strict fp32 parity run (f32 streaming, highest MXU precision) -------
    v_out32, f_out32 = neural_decimator_forward(
        prepared_f32, init_state, message_state, edge_feature, meta_data,
        graph_mask_tuple, batch_mask_tuple, active_mask=active_mask,
        stream_dtype=jnp.float32, precision=jax.lax.Precision.HIGHEST)
    jax.block_until_ready((v_out32, f_out32))

    # --- default bf16-streaming run (small tile to exercise multi-tile grid) --
    v_outbf, f_outbf = neural_decimator_forward(
        prepared_bf16, init_state, message_state, edge_feature, meta_data,
        graph_mask_tuple, batch_mask_tuple, active_mask=active_mask,
        tile_e=64)
    jax.block_until_ready((v_outbf, f_outbf))

    # Reference (pure JAX, original two-matmul GRUCell math).
    mask_ref = variable_mask.T @ (b_variable_mask @ active_mask)
    gfeat_ref = variable_mask.T @ (b_variable_mask @ meta_data)
    v_in_ref = jnp.concatenate([message_state[0], edge_feature, gfeat_ref], axis=1)
    f_in_ref = jnp.concatenate([message_state[1], edge_feature, gfeat_ref], axis=1)
    v_ref = (mask_ref * _gru_ref(v_in_ref, init_state[0], *raw_params["variable"])
             + (1.0 - mask_ref) * init_state[0])
    f_ref = (mask_ref * _gru_ref(f_in_ref, init_state[1], *raw_params["function"])
             + (1.0 - mask_ref) * init_state[1])

    assert v_out32.shape == (edge_num, hidden_dim)
    assert f_out32.shape == (edge_num, hidden_dim)
    assert jnp.allclose(v_out32, v_ref, rtol=1e-5, atol=1e-5), "variable (f32) mismatch"
    assert jnp.allclose(f_out32, f_ref, rtol=1e-5, atol=1e-5), "function (f32) mismatch"
    assert jnp.allclose(v_outbf, v_ref, rtol=5e-2, atol=5e-2), "variable (bf16) mismatch"
    assert jnp.allclose(f_outbf, f_ref, rtol=5e-2, atol=5e-2), "function (bf16) mismatch"

    print("KERNEL_OK")
</pallas_src>

<mosaic_0001>
module attributes {stable_mosaic.version = 11 : i64} {
  func.func @kernel(%arg0: i32, %arg1: i32, %arg2: memref<1x32x32xf32, #tpu.memory_space<vmem>>, %arg3: memref<32x8xf32, #tpu.memory_space<vmem>>, %arg4: memref<32x16xf32, #tpu.memory_space<vmem>>, %arg5: memref<1x32x128xf32, #tpu.memory_space<vmem>>, %arg6: memref<32x4xf32, #tpu.memory_space<vmem>>, %arg7: memref<1x32x512xf32, #tpu.memory_space<vmem>>, %arg8: memref<1x8x512xf32, #tpu.memory_space<vmem>>, %arg9: memref<1x16x512xf32, #tpu.memory_space<vmem>>, %arg10: memref<1x128x512xf32, #tpu.memory_space<vmem>>, %arg11: memref<1x1x512xf32, #tpu.memory_space<vmem>>, %arg12: memref<4x128xf32, #tpu.memory_space<vmem>>, %arg13: memref<1x32x128xf32, #tpu.memory_space<vmem>>) attributes {dimension_semantics = [#tpu.dimension_semantics<parallel>, #tpu.dimension_semantics<parallel>], iteration_bounds = array<i64: 2, 1>, scalar_prefetch = 0 : i64, scratch_operands = 0 : i64, tpu.core_type = #tpu.core_type<tc>, window_params = [{transform_indices = @transform_0, window_bounds = array<i64: 1, 32, 32>}, {transform_indices = @transform_1, window_bounds = array<i64: 32, 8>}, {transform_indices = @transform_2, window_bounds = array<i64: 32, 16>}, {transform_indices = @transform_3, window_bounds = array<i64: 1, 32, 128>}, {transform_indices = @transform_4, window_bounds = array<i64: 32, 4>}, {transform_indices = @transform_5, window_bounds = array<i64: 1, 32, 512>}, {transform_indices = @transform_6, window_bounds = array<i64: 1, 8, 512>}, {transform_indices = @transform_7, window_bounds = array<i64: 1, 16, 512>}, {transform_indices = @transform_8, window_bounds = array<i64: 1, 128, 512>}, {transform_indices = @transform_9, window_bounds = array<i64: 1, 1, 512>}, {pipeline_mode = #tpu.pipeline_mode<synchronous>, transform_indices = @transform_10, window_bounds = array<i64: 4, 128>}, {transform_indices = @transform_11, window_bounds = array<i64: 1, 32, 128>}]} {
    %c0 = arith.constant 0 : index
    %c0_0 = arith.constant 0 : index
    %c0_1 = arith.constant 0 : index
    %0 = vector.load %arg11[%c0, %c0_0, %c0_1] : memref<1x1x512xf32, #tpu.memory_space<vmem>>, vector<1x1x512xf32>
    %1 = vector.shape_cast %0 : vector<1x1x512xf32> to vector<1x512xf32>
    %c0_2 = arith.constant 0 : index
    %c0_3 = arith.constant 0 : index
    %c0_4 = arith.constant 0 : index
    %2 = vector.load %arg2[%c0_2, %c0_3, %c0_4] : memref<1x32x32xf32, #tpu.memory_space<vmem>>, vector<1x32x32xf32>
    %3 = vector.shape_cast %2 : vector<1x32x32xf32> to vector<32x32xf32>
    %c0_5 = arith.constant 0 : index
    %c0_6 = arith.constant 0 : index
    %c0_7 = arith.constant 0 : index
    %4 = vector.load %arg7[%c0_5, %c0_6, %c0_7] : memref<1x32x512xf32, #tpu.memory_space<vmem>>, vector<1x32x512xf32>
    %5 = vector.shape_cast %4 : vector<1x32x512xf32> to vector<32x512xf32>
    %cst = arith.constant dense<0.000000e+00> : vector<32x512xf32>
    %6 = tpu.matmul %3, %5, %cst {dimension_numbers = #tpu.dot_dimension_numbers<[1], [0], [0], [1], [0, 0, 1, 1], [], []>, precision = #tpu.contract_precision<fp32>} : vector<32x32xf32>, vector<32x512xf32>, vector<32x512xf32> -> vector<32x512xf32>
    %7 = vector.broadcast %1 : vector<1x512xf32> to vector<32x512xf32>
    %8 = arith.addf %7, %6 : vector<32x512xf32>
    %c0_8 = arith.constant 0 : index
    %c0_9 = arith.constant 0 : index
    %9 = vector.load %arg3[%c0_8, %c0_9] : memref<32x8xf32, #tpu.memory_space<vmem>>, vector<32x8xf32>
    %c0_10 = arith.constant 0 : index
    %c0_11 = arith.constant 0 : index
    %c0_12 = arith.constant 0 : index
    %10 = vector.load %arg8[%c0_10, %c0_11, %c0_12] : memref<1x8x512xf32, #tpu.memory_space<vmem>>, vector<1x8x512xf32>
    %11 = vector.shape_cast %10 : vector<1x8x512xf32> to vector<8x512xf32>
    %cst_13 = arith.constant dense<0.000000e+00> : vector<32x512xf32>
    %12 = tpu.matmul %9, %11, %cst_13 {dimension_numbers = #tpu.dot_dimension_numbers<[1], [0], [0], [1], [0, 0, 1, 1], [], []>, precision = #tpu.contract_precision<fp32>} : vector<32x8xf32>, vector<8x512xf32>, vector<32x512xf32> -> vector<32x512xf32>
    %13 = arith.addf %8, %12 : vector<32x512xf32>
    %c0_14 = arith.constant 0 : index
    %c0_15 = arith.constant 0 : index
    %14 = vector.load %arg4[%c0_14, %c0_15] : memref<32x16xf32, #tpu.memory_space<vmem>>, vector<32x16xf32>
    %c0_16 = arith.constant 0 : index
    %c0_17 = arith.constant 0 : index
    %c0_18 = arith.constant 0 : index
    %15 = vector.load %arg9[%c0_16, %c0_17, %c0_18] : memref<1x16x512xf32, #tpu.memory_space<vmem>>, vector<1x16x512xf32>
    %16 = vector.shape_cast %15 : vector<1x16x512xf32> to vector<16x512xf32>
    %cst_19 = arith.constant dense<0.000000e+00> : vector<32x512xf32>
    %17 = tpu.matmul %14, %16, %cst_19 {dimension_numbers = #tpu.dot_dimension_numbers<[1], [0], [0], [1], [0, 0, 1, 1], [], []>, precision = #tpu.contract_precision<fp32>} : vector<32x16xf32>, vector<16x512xf32>, vector<32x512xf32> -> vector<32x512xf32>
    %18 = arith.addf %13, %17 : vector<32x512xf32>
    %c0_20 = arith.constant 0 : index
    %c0_21 = arith.constant 0 : index
    %c0_22 = arith.constant 0 : index
    %19 = vector.load %arg5[%c0_20, %c0_21, %c0_22] : memref<1x32x128xf32, #tpu.memory_space<vmem>>, vector<1x32x128xf32>
    %20 = vector.shape_cast %19 : vector<1x32x128xf32> to vector<32x128xf32>
    %c0_23 = arith.constant 0 : index
    %c0_24 = arith.constant 0 : index
    %c0_25 = arith.constant 0 : index
    %21 = vector.load %arg10[%c0_23, %c0_24, %c0_25] : memref<1x128x512xf32, #tpu.memory_space<vmem>>, vector<1x128x512xf32>
    %22 = vector.shape_cast %21 : vector<1x128x512xf32> to vector<128x512xf32>
    %cst_26 = arith.constant dense<0.000000e+00> : vector<32x512xf32>
    %23 = tpu.matmul %20, %22, %cst_26 {dimension_numbers = #tpu.dot_dimension_numbers<[1], [0], [0], [1], [0, 0, 1, 1], [], []>, precision = #tpu.contract_precision<fp32>} : vector<32x128xf32>, vector<128x512xf32>, vector<32x512xf32> -> vector<32x512xf32>
    %24 = arith.addf %18, %23 : vector<32x512xf32>
    %c0_27 = arith.constant 0 : index
    %c0_28 = arith.constant 0 : index
    %c0_29 = arith.constant 0 : index
    %25 = vector.load %arg5[%c0_27, %c0_28, %c0_29] : memref<1x32x128xf32, #tpu.memory_space<vmem>>, vector<1x32x128xf32>
    %26 = vector.shape_cast %25 : vector<1x32x128xf32> to vector<32x128xf32>
    %27 = vector.extract_strided_slice %24 {offsets = [0, 0], sizes = [32, 256], strides = [1, 1]} : vector<32x512xf32> to vector<32x256xf32>
    %28 = arith.negf %27 : vector<32x256xf32>
    %29 = math.exp %28 : vector<32x256xf32>
    %cst_30 = arith.constant 1.000000e+00 : f32
    %30 = vector.broadcast %cst_30 : f32 to vector<32x256xf32>
    %31 = arith.addf %30, %29 : vector<32x256xf32>
    %32 = arith.divf %30, %31 : vector<32x256xf32>
    %33 = vector.extract_strided_slice %32 {offsets = [0, 0], sizes = [32, 128], strides = [1, 1]} : vector<32x256xf32> to vector<32x128xf32>
    %34 = vector.extract_strided_slice %32 {offsets = [0, 128], sizes = [32, 128], strides = [1, 1]} : vector<32x256xf32> to vector<32x128xf32>
    %35 = vector.extract_strided_slice %24 {offsets = [0, 256], sizes = [32, 128], strides = [1, 1]} : vector<32x512xf32> to vector<32x128xf32>
    %36 = vector.extract_strided_slice %24 {offsets = [0, 384], sizes = [32, 128], strides = [1, 1]} : vector<32x512xf32> to vector<32x128xf32>
    %37 = arith.mulf %33, %36 : vector<32x128xf32>
    %38 = arith.addf %35, %37 : vector<32x128xf32>
    %39 = math.tanh %38 : vector<32x128xf32>
    %cst_31 = arith.constant 1.000000e+00 : f32
    %40 = vector.broadcast %cst_31 : f32 to vector<32x128xf32>
    %41 = arith.subf %40, %34 : vector<32x128xf32>
    %42 = arith.mulf %41, %39 : vector<32x128xf32>
    %43 = arith.mulf %34, %26 : vector<32x128xf32>
    %44 = arith.addf %42, %43 : vector<32x128xf32>
    %c0_32 = arith.constant 0 : index
    %c0_33 = arith.constant 0 : index
    %45 = vector.load %arg6[%c0_32, %c0_33] : memref<32x4xf32, #tpu.memory_space<vmem>>, vector<32x4xf32>
    %c0_34 = arith.constant 0 : index
    %c0_35 = arith.constant 0 : index
    %46 = vector.load %arg12[%c0_34, %c0_35] : memref<4x128xf32, #tpu.memory_space<vmem>>, vector<4x128xf32>
    %cst_36 = arith.constant dense<0.000000e+00> : vector<32x128xf32>
    %47 = tpu.matmul %45, %46, %cst_36 {dimension_numbers = #tpu.dot_dimension_numbers<[1], [0], [0], [1], [0, 0, 1, 1], [], []>, precision = #tpu.contract_precision<fp32>} : vector<32x4xf32>, vector<4x128xf32>, vector<32x128xf32> -> vector<32x128xf32>
    %48 = arith.mulf %47, %44 : vector<32x128xf32>
    %cst_37 = arith.constant 1.000000e+00 : f32
    %49 = vector.broadcast %cst_37 : f32 to vector<32x128xf32>
    %50 = arith.subf %49, %47 : vector<32x128xf32>
    %51 = arith.mulf %50, %26 : vector<32x128xf32>
    %52 = arith.addf %48, %51 : vector<32x128xf32>
    %c0_38 = arith.constant 0 : index
    %c0_39 = arith.constant 0 : index
    %c0_40 = arith.constant 0 : index
    %53 = vector.load %arg13[%c0_38, %c0_39, %c0_40] : memref<1x32x128xf32, #tpu.memory_space<vmem>>, vector<1x32x128xf32>
    %54 = vector.shape_cast %53 : vector<1x32x128xf32> to vector<32x128xf32>
    %55 = vector.shape_cast %52 : vector<32x128xf32> to vector<1x32x128xf32>
    tpu.vector_store %arg13[%c0_38, %c0_39, %c0_40], %55 {strides = array<i32>} : memref<1x32x128xf32, #tpu.memory_space<vmem>>, vector<1x32x128xf32>,
    return
  }
  func.func @transform_0(%arg0: i32, %arg1: i32) -> (i32, i32, i32) {
    %c0_i32 = arith.constant 0 : i32
    %c0_i32_0 = arith.constant 0 : i32
    return %arg0, %arg1, %c0_i32 : i32, i32, i32
  }
  func.func @transform_1(%arg0: i32, %arg1: i32) -> (i32, i32) {
    %c0_i32 = arith.constant 0 : i32
    %c0_i32_0 = arith.constant 0 : i32
    return %arg1, %c0_i32 : i32, i32
  }
  func.func @transform_2(%arg0: i32, %arg1: i32) -> (i32, i32) {
    %c0_i32 = arith.constant 0 : i32
    %c0_i32_0 = arith.constant 0 : i32
    return %arg1, %c0_i32 : i32, i32
  }
  func.func @transform_3(%arg0: i32, %arg1: i32) -> (i32, i32, i32) {
    %c0_i32 = arith.constant 0 : i32
    %c0_i32_0 = arith.constant 0 : i32
    return %arg0, %arg1, %c0_i32 : i32, i32, i32
  }
  func.func @transform_4(%arg0: i32, %arg1: i32) -> (i32, i32) {
    %c0_i32 = arith.constant 0 : i32
    %c0_i32_0 = arith.constant 0 : i32
    return %arg1, %c0_i32 : i32, i32
  }
  func.func @transform_5(%arg0: i32, %arg1: i32) -> (i32, i32, i32) {
    %c0_i32 = arith.constant 0 : i32
    %c0_i32_0 = arith.constant 0 : i32
    %c0_i32_1 = arith.constant 0 : i32
    return %arg0, %c0_i32, %c0_i32_0 : i32, i32, i32
  }
  func.func @transform_6(%arg0: i32, %arg1: i32) -> (i32, i32, i32) {
    %c0_i32 = arith.constant 0 : i32
    %c0_i32_0 = arith.constant 0 : i32
    %c0_i32_1 = arith.constant 0 : i32
    return %arg0, %c0_i32, %c0_i32_0 : i32, i32, i32
  }
  func.func @transform_7(%arg0: i32, %arg1: i32) -> (i32, i32, i32) {
    %c0_i32 = arith.constant 0 : i32
    %c0_i32_0 = arith.constant 0 : i32
    %c0_i32_1 = arith.constant 0 : i32
    return %arg0, %c0_i32, %c0_i32_0 : i32, i32, i32
  }
  func.func @transform_8(%arg0: i32, %arg1: i32) -> (i32, i32, i32) {
    %c0_i32 = arith.constant 0 : i32
    %c0_i32_0 = arith.constant 0 : i32
    %c0_i32_1 = arith.constant 0 : i32
    return %arg0, %c0_i32, %c0_i32_0 : i32, i32, i32
  }
  func.func @transform_9(%arg0: i32, %arg1: i32) -> (i32, i32, i32) {
    %c0_i32 = arith.constant 0 : i32
    %c0_i32_0 = arith.constant 0 : i32
    %c0_i32_1 = arith.constant 0 : i32
    return %arg0, %c0_i32, %c0_i32_0 : i32, i32, i32
  }
  func.func @transform_10(%arg0: i32, %arg1: i32) -> (i32, i32) {
    %c0_i32 = arith.constant 0 : i32
    %c0_i32_0 = arith.constant 0 : i32
    %c0_i32_1 = arith.constant 0 : i32
    return %c0_i32, %c0_i32_0 : i32, i32
  }
  func.func @transform_11(%arg0: i32, %arg1: i32) -> (i32, i32, i32) {
    %c0_i32 = arith.constant 0 : i32
    %c0_i32_0 = arith.constant 0 : i32
    return %arg0, %arg1, %c0_i32 : i32, i32, i32
  }
}

</mosaic_0001>

<bundles_post_ra>
// kernel: tpu_custom_call.1
= control target key start
LH: loop header
LB: loop body
LE: loop exit
PB: predicated region body
PF: predicated region fallthrough
CT: control target
= control target key end

     0   :  { %s11576_s0 = inlined_call_operand.hbm [shape: f32[2,32,32], index: 0, kind: input, shape index: {}]   ;;  %s11577_s1 = inlined_call_operand.vmem [shape: f32[32,8], index: 1, kind: input, shape index: {}]   ;;  %s11578_s2 = inlined_call_operand.vmem [shape: f32[32,16], index: 2, kind: input, shape index: {}]   ;;  %s11579_s3 = inlined_call_operand.hbm [shape: f32[2,32,128], index: 3, kind: input, shape index: {}]   ;;  %s11580_s4 = inlined_call_operand.vmem [shape: f32[32,4], index: 4, kind: input, shape index: {}]   ;;  %s11581_s5 = inlined_call_operand.hbm [shape: f32[2,32,512], index: 5, kind: input, shape index: {}]   ;;  %s11582_s6 = inlined_call_operand.hbm [shape: f32[2,8,512], index: 6, kind: input, shape index: {}]   ;;  %s11583_s7 = inlined_call_operand.vmem [shape: f32[2,16,512], index: 7, kind: input, shape index: {}]   ;;  %s11584_s8 = inlined_call_operand.hbm [shape: f32[2,128,512], index: 8, kind: input, shape index: {}]   ;;  %s11585_s9 = inlined_call_operand.vmem [shape: f32[2,1,512], index: 9, kind: input, shape index: {}]   ;;  %s11586_s10 = inlined_call_operand.vmem [shape: f32[4,128], index: 10, kind: input, shape index: {}]   ;;  %s11587_s11 = inlined_call_operand.hbm [shape: f32[2,32,128], index: 11, kind: output, shape index: {}]  }
   0x1   :  { %11794 = sst [smem:[#allocation131_spill]] %s11576_s0 }
   0x2   :  { %11795 = sst [smem:[#allocation132_spill]] %s11578_s2 }
   0x3   :  { %11796 = sst [smem:[#allocation133_spill]] %s11579_s3 }
   0x4   :  { %11797 = sst [smem:[#allocation134_spill]] %s11580_s4 }
   0x5   :  { %11798 = sst [smem:[#allocation135_spill]] %s11582_s6 }
   0x6   :  { %11799 = sst [smem:[#allocation136_spill]] %s11583_s7 }
   0x7   :  { %11800 = sst [smem:[#allocation137_spill]] %s11585_s9 }
   0x8   :  { %11801 = sst [smem:[#allocation138_spill]] %s11586_s10 }
   0x9   :  { %11802 = sst [smem:[#allocation139_spill]] %s11587_s11 }
   0xa   :  { %16 = vsyncpa [#allocation3], 0 }
   0xb   :  { %18 = vsyncpa [#allocation3 + $0x1], 0 }
   0xc   :  { %19 = vsyncpa [#allocation6], 0 }
   0xd   :  { %21 = vsyncpa [#allocation6 + $0x1], 0 }
   0xe   :  { %22 = vsyncpa [#allocation9], 0 }
   0xf   :  { %24 = vsyncpa [#allocation9 + $0x1], 0 }
  0x10   :  { %25 = vsyncpa [#allocation4], 0 }
  0x11   :  { %27 = vsyncpa [#allocation4 + $0x1], 0  ;;  %s8322_s17 = smov 0   ;;  %s8324_s18 = smov 0  }
  0x12   :  { %s8326_s19 = smov 0   ;;  %s8328_s20 = smov 0  }
  0x13   :  { %s8330_s21 = smov 0   ;;  %s8332_s22 = smov 0  }
  0x14 LB: > { %11803 = sst [smem:[#allocation16_spill]] %s8227_s17  ;;  %s8353_s23 = sadd.s32 4294967295, %s8247_s22   ;;  %s8247_s22 = sphi %s8332_s22, %s33_s22   ;;  %s8243_s21 = sphi %s8330_s21, %s12401_s21   ;;  %s8239_s20 = sphi %s8328_s20, %s12400_s20   ;;  %s8235_s19 = sphi %s8326_s19, %s12396_s19   ;;  %s8231_s18 = sphi %s8324_s18, %s12399_s18   ;;  %s8227_s17 = sphi %s8322_s17, %s12398_s17  }
  0x15   : > { %11804 = sst [smem:[#allocation17_spill]] %s8235_s19  ;;  %s7757_s24 = sadd.s32 4294967294, %s8247_s22  }
  0x16   : > { %11805 = sst [smem:[#allocation18_spill]] %s8247_s22  ;;  %s45_s25 = sadd.s32 1, %s8243_s21 }
  0x17   : > { %s54_s26 = sadd.s32 1, %s8235_s19  ;;  %p47_p0 = scmp.ge.s32.totalorder %s45_s25, 2 }
  0x18   : > { %p61_p1 = scmp.ne.s32.totalorder %s8235_s19, %s8231_s18  ;;  %p62_p2 = scmp.eq.s32.totalorder %s8247_s22, 0 }
  0x19   : > { %p67_p3 = scmp.ne.s32.totalorder %s8231_s18, %s8227_s17  ;;  %s12403_s25 = smov (%p47_p0, %s45_s25), 0 }
  0x1a   : > { %11806 = sst [smem:[#allocation19_spill]] %s12403_s25  ;;  %p8365_p4 = por %p62_p2, %p61_p1 }
  0x1b   : > { %p68_p5 = scmp.eq.s32.totalorder %s8353_s23, 0  ;;  %s49_s28 = ssub.s32 %s8243_s21, %s12403_s25 }
  0x1c   : > { %p350_p6 = scmp.eq.s32.totalorder %s8353_s23, 1  ;;  %p52_p7 = scmp.eq.s32.totalorder %s49_s28, 0 }
  0x1d   : > { %p8373_p8 = por %p68_p5, %p67_p3  ;;  %p356_p10 = scmp.eq.s32.totalorder %s7757_s24, 1 }
  0x1e   : > { %p8377_p9 = por %p350_p6, %p61_p1  ;;  %p7918_p13 = scmp.lt.s32.totalorder %s8247_s22, 2 }
  0x1f   : > { %s8382_s12 = scalar_select %p52_p7, %s8235_s19, %s54_s26  }
  0x20   : > { %s11809_s30 = scalar_select %p8377_p9, 1, 0 }
  0x21   : > { %11811 = sst [smem:[#allocation21_spill]] %s8382_s12  ;;  %p8384_p11 = por %p356_p10, %p67_p3 }
  0x22   : > { %11810 = sst [smem:[#allocation20_spill]] %s11809_s30  ;;  %s8391_s14 = sand.u32 1, %s8235_s19  }
  0x23   : > { %s11812_s13 = scalar_select %p8384_p11, 1, 0 }
  0x24   : > { %s8394_s15 = sshll.u32 %s8391_s14, 5  ;;  %s8397_s16 = sshll.u32 %s8243_s21, 9 }
  0x25   : > { %11813 = sst [smem:[#allocation22_spill]] %s11812_s13  ;;  %p8401_p0 = pnand %p7918_p13, %p8365_p4 }
  0x26   : > { %s11593_s26 = sand.u32 1, %s8247_s22   ;;  %s11815_s3 = sld [smem:[#allocation133_spill]] }
  0x27   : > { %s433_s19 = scalar_lea.vmem [#allocation5], %s8394_s15  ;;  %p7778_p1 = scmp.ge.s32.totalorder %s8247_s22, 1 }
  0x28   : > { %s442_s13 = sshll.u32 %s433_s19, 4  ;;  %p526_p2 = scmp.lt.s32.totalorder %s8247_s22, 3  ;;  %s443_s13 = int_to_ptr.vmem [resolvable:$true] %s442_s13 }
  0x29   : > { %s8415_s17 = scalar_lea.sflag [#allocation6], %s11593_s26  ;;  %p8419_p3 = pneg %p8401_p0 }
  0x2a   : > { %s8032_s11 = scalar_lea.vmem %s443_s13, 512  ;;  %s8249_s25 = smov [#allocation5]  }
  0x2b   : > { %p8033_p4 = scmp.ne.s32.totalorder %s443_s13, %s8032_s11  ;;  %s8037_s28 = sshll.u32 %s8249_s25, 4  ;;  %s8038_s28 = int_to_ptr.vmem [resolvable:$false] %s8037_s28 }
  0x2c   : > { %s441_s12 = scalar_lea.hbm %s11815_s3, %s8397_s16  ;;  %s8039_s19 = scalar_lea.vmem %s8038_s28, 1024 }
  0x2d   : > { %p8035_p5 = pnand %p8033_p4, %p8419_p3  ;;  %p8040_p7 = scmp.lt.s32.totalorder %s443_s13, %s8038_s28 }
  0x2e   : > { %p8041_p10 = scmp.lt.s32.totalorder %s8039_s19, %s8032_s11 }
  0x2f   : > { %p8036_p6 = pneg %p8035_p5 }
  0x30   : > { %p8042_p13 = por %p8041_p10, %p8040_p7 }
  0x32   : > { %p8043_p12 = pnand %p8042_p13, %p8036_p6 }
  0x34   : > { %8046 = shalt.err (!%p8043_p12)
}
  0x35   : > { %s11598_s26 = smov 128   ;;  %s11599_s3 = smov 8  }
  0x36   : > { %7904 = dma.hbm_to_vmem [thread:$0]  (!%p8401_p0), %s441_s12, 512, %s443_s13, %s8415_s17, %s11598_s26, %s11598_s26, %s11599_s3  }
  0x37   : > { %p8435_p4 = pnand %p7778_p1, %p526_p2  ;;  %s11818_s6 = sld [smem:[#allocation135_spill]] }
  0x38   : > { %s477_s30 = scalar_lea.vmem [#allocation8], %s8394_s15  ;;  %s11819_s10 = sand.u32 1, %s8247_s22  }
  0x39   : > { %s485_s4 = sshll.u32 %s477_s30, 4  ;;  %s8446_s9 = scalar_lea.sflag [#allocation9], %s11819_s10  ;;  %s486_s4 = int_to_ptr.vmem [resolvable:$true] %s485_s4 }
  0x3a   : > { %s8060_s2 = scalar_lea.vmem %s486_s4, 512  ;;  %s8252_s12 = smov [#allocation8]  }
  0x3b   : > { %p8061_p12 = scmp.ne.s32.totalorder %s486_s4, %s8060_s2  ;;  %s8065_s13 = sshll.u32 %s8252_s12, 4  ;;  %s8066_s13 = int_to_ptr.vmem [resolvable:$false] %s8065_s13 }
  0x3c   : > { %s8067_s26 = scalar_lea.vmem %s8066_s13, 1024  ;;  %p8068_p1 = scmp.lt.s32.totalorder %s486_s4, %s8066_s13 }
  0x3d   : > { %s483_s19 = scalar_lea.hbm %s11818_s6, %s8397_s16  ;;  %p8063_p5 = pnand %p8061_p12, %p8419_p3 }
  0x3e   : > { %p8069_p2 = scmp.lt.s32.totalorder %s8067_s26, %s8060_s2 }
  0x3f   : > { %p8064_p6 = pneg %p8063_p5 }
  0x40   : > { %p8070_p7 = por %p8069_p2, %p8068_p1 }
  0x42   : > { %p8071_p10 = pnand %p8070_p7, %p8064_p6 }
  0x44   : > { %8074 = shalt.err (!%p8071_p10)
}
  0x45   : > { %7910 = dma.hbm_to_vmem [thread:$0]  (!%p8401_p0), %s483_s19, 512, %s486_s4, %s8446_s9  }
  0x46   : > { %s11820_s0 = sld [smem:[#allocation131_spill]]  ;;  %s410_s28 = scalar_lea.vmem [#allocation2], %s8394_s15 }
  0x47   : > { %s419_s12 = sshll.u32 %s410_s28, 4  ;;  %s7769_s2 = sshll.u32 %s8391_s14, 7  ;;  %s420_s12 = int_to_ptr.vmem [resolvable:$true] %s419_s12 }
  0x48   : > { %s407_s26 = scalar_lea.sflag [#allocation3], %s8391_s14  ;;  %s8088_s13 = scalar_lea.vmem %s420_s12, 512 }
  0x49   : > { %p8089_p13 = scmp.ne.s32.totalorder %s420_s12, %s8088_s13  ;;  %s8253_s3 = smov [#allocation2]  }
  0x4a   : > { %s8093_s6 = sshll.u32 %s8253_s3, 4  ;;  %s8094_s6 = int_to_ptr.vmem [resolvable:$false] %s8093_s6 }
  0x4b   : > { %p8091_p12 = pnand %p8089_p13, %p8419_p3  ;;  %s8095_s22 = scalar_lea.vmem %s8094_s6, 1024 }
  0x4c   : > { %s418_s25 = scalar_lea.hbm %s11820_s0, %s8397_s16  ;;  %p8096_p6 = scmp.lt.s32.totalorder %s420_s12, %s8094_s6 }
  0x4d   : > { %p8092_p5 = pneg %p8091_p12  ;;  %p8097_p1 = scmp.lt.s32.totalorder %s8095_s22, %s8088_s13 }
  0x4f   : > { %p8098_p2 = por %p8097_p1, %p8096_p6 }
  0x51   : > { %p8099_p7 = pnand %p8098_p2, %p8092_p5 }
  0x53   : > { %8102 = shalt.err (!%p8099_p7)
}
  0x54   : > { %s11821_s4 = smov 8   ;;  %s11822_s15 = smov 128  }
  0x55   : > { %7901 = dma.hbm_to_vmem [thread:$0]  (!%p8401_p0), %s418_s25, 512, %s420_s12, %s407_s26, %s11822_s15, %s11822_s15, %s11821_s4  }
  0x56   : > { %s7803_s16 = sshll.u32 %s8243_s21, 11  ;;  %s456_s30 = scalar_lea.vmem [#allocation7], %s7769_s2 }
  0x57   : > { %s462_s3 = scalar_lea.hbm %s11581_s5, %s7803_s16  ;;  %s463_s6 = sshll.u32 %s456_s30, 4  ;;  %s464_s6 = int_to_ptr.vmem [resolvable:$true] %s463_s6 }
  0x58   : > { %s7775_s22 = sshll.u32 %s8391_s14, 9  ;;  %s8116_s28 = scalar_lea.vmem %s464_s6, 2048 }
  0x59   : > { %p8117_p10 = scmp.ne.s32.totalorder %s464_s6, %s8116_s28  ;;  %s8254_s13 = smov [#allocation7]  }
  0x5a   : > { %s8121_s0 = sshll.u32 %s8254_s13, 4  ;;  %s8122_s0 = int_to_ptr.vmem [resolvable:$false] %s8121_s0 }
  0x5b   : > { %p8119_p13 = pnand %p8117_p10, %p8419_p3  ;;  %s8123_s7 = scalar_lea.vmem %s8122_s0, 4096 }
  0x5c   : > { %p8124_p5 = scmp.lt.s32.totalorder %s464_s6, %s8122_s0  ;;  %p8125_p6 = scmp.lt.s32.totalorder %s8123_s7, %s8116_s28 }
  0x5d   : > { %p8120_p12 = pneg %p8119_p13 }
  0x5e   : > { %p8126_p1 = por %p8125_p6, %p8124_p5 }
  0x60   : > { %p8127_p2 = pnand %p8126_p1, %p8120_p12 }
  0x62   : > { %8130 = shalt.err (!%p8127_p2)
}
  0x63   : > { %s8255_s25 = smov 512   ;;  %s8256_s14 = smov 32  }
  0x64   : > { %7907 = dma.hbm_to_vmem [thread:$0]  (!%p8401_p0), %s462_s3, 2048, %s464_s6, %s8415_s17, %s8255_s25, %s8255_s25, %s8256_s14  }
  0x65   : > { %s7805_s12 = sshll.u32 %s8243_s21, 13  ;;  %s504_s15 = scalar_lea.vmem [#allocation10], %s7775_s22 }
  0x66   : > { %s510_s4 = scalar_lea.hbm %s11584_s8, %s7805_s12  ;;  %s511_s16 = sshll.u32 %s504_s15, 4  ;;  %s512_s16 = int_to_ptr.vmem [resolvable:$true] %s511_s16 }
  0x67   : > { %s8144_s0 = scalar_lea.vmem %s512_s16, 8192  ;;  %s8257_s7 = smov [#allocation10]  }
  0x68   : > { %p8145_p7 = scmp.ne.s32.totalorder %s512_s16, %s8144_s0  ;;  %s8149_s19 = sshll.u32 %s8257_s7, 4  ;;  %s8150_s19 = int_to_ptr.vmem [resolvable:$false] %s8149_s19 }
  0x69   : > { %s8151_s10 = scalar_lea.vmem %s8150_s19, 16384  ;;  %p8152_p12 = scmp.lt.s32.totalorder %s512_s16, %s8150_s19 }
  0x6a   : > { %p8147_p10 = pnand %p8145_p7, %p8419_p3  ;;  %p8153_p5 = scmp.lt.s32.totalorder %s8151_s10, %s8144_s0 }
  0x6c   : > { %p8148_p13 = pneg %p8147_p10  ;;  %p8154_p6 = por %p8153_p5, %p8152_p12 }
  0x6e   : > { %p8155_p1 = pnand %p8154_p6, %p8148_p13 }
  0x70   : > { %8158 = shalt.err (!%p8155_p1)
}
  0x71   : > { %7913 = dma.hbm_to_vmem [thread:$0]  (!%p8401_p0), %s510_s4, 8192, %s512_s16, %s8446_s9, %s8255_s25, %s8255_s25, %s8256_s14  }
  0x72   : > { %530 = sbr.rel (%p8435_p4) target bundleno = 924 (0x39c), region = 64 }
  0x77   : > { %s8489_s17 = sand.u32 1, %s8231_s18  }
  0x78   : > { %s8492_s27 = sshll.u32 %s8489_s17, 5  ;;  %s533_s3 = scalar_lea.sflag [#allocation3], %s8489_s17 }
  0x79   : > { %s8496_s30 = scalar_lea.vmem [#allocation2], %s8492_s27 }
  0x7a   : > { %8210 = dma.done.wait (%p8373_p8), %s533_s3, 512  }
  0x7b   : > { %8212 = vsyncadd (%p8373_p8), %s533_s3, 4294966784  ;;  %s541_s9 = sand.u32 1, %s8353_s23   ;;  %s8504_s11 = scalar_lea.vmem [#allocation5], %s8492_s27 }
  0x7c   : > { %s542_s24 = scalar_lea.sflag [#allocation6], %s541_s9 }
  0x7d   : > { %8214 = dma.done.wait (%p8373_p8), %s542_s24, 2560  }
  0x7e   : > { %8216 = vsyncadd (%p8373_p8), %s542_s24, 4294964736  ;;  %s7781_s6 = sshll.u32 %s8489_s17, 7  ;;  %s560_s28 = scalar_lea.sflag [#allocation9], %s541_s9 }
  0x7f   : > { %s8511_s22 = scalar_lea.vmem [#allocation7], %s7781_s6  ;;  %s8514_s13 = scalar_lea.vmem [#allocation8], %s8492_s27 }
  0x80   : > { %8218 = dma.done.wait (%p8373_p8), %s560_s28, 8704  }
  0x81   : > { %8220 = vsyncadd (%p8373_p8), %s560_s28, 4294958592  ;;  %v11606_v0 = vmov 0.0   ;;  %v703_v1 = vld [vmem:[%s8511_s22 + $0x68] sm:$0xff]  ;;  %v702_v2 = vld [vmem:[%s8511_s22 + $0x60] sm:$0xff]  ;;  %vm706_vm0 = vcmask 261120   ;;  %vm2144_vm1 = vcmask 64512  }
  0x82   : > { %791 = vmatprep.mubr.f32.mxu0 %v11606_v0  ;;  %940 = vmatprep.mubr.f32.mxu1 %v11606_v0  ;;  %v699_v3 = vld [vmem:[%s8511_s22 + $0x48] sm:$0xff]  ;;  %v8525_v4 = vand.u32 4294901760, %v703_v1  ;;  %v8527_v5 = vand.u32 4294901760, %v702_v2  ;;  %v698_v7 = vld [vmem:[%s8511_s22 + $0x40] sm:$0xff]  ;;  %v688_v45 = vld [vmem:[%s8496_s30 + $0x10] sm:$0xff]  ;;  %p675_p8 = scmp.lt.s32.totalorder %s8239_s20, 1 }
  0x83   : > { %v8529_v6 = vand.u32 4294901760, %v699_v3  ;;  %v695_v8 = vld [vmem:[%s8511_s22 + $0x28] sm:$0xff]  ;;  %v694_v9 = vld [vmem:[%s8511_s22 + $0x20] sm:$0xff]  ;;  %v8534_v10 = vand.u32 4294901760, %v698_v7  ;;  %v689_v46 = vld [vmem:[%s8496_s30 + $0x18] sm:$0xff]  ;;  %v714_v57 = vsel %vm706_vm0, %v688_v45, 0 }
  0x84   : > { %v8536_v11 = vand.u32 4294901760, %v695_v8  ;;  %v8538_v12 = vand.u32 4294901760, %v694_v9  ;;  %v691_v13 = vld [vmem:[%s8511_s22 + $0x8] sm:$0xff]  ;;  %v690_v14 = vld [vmem:[%s8511_s22] sm:$0xff]  ;;  %744 = vmatprep.subr.mxu0 %v8525_v4  ;;  %v8549_v18 = vsub.f32 %v703_v1, %v8525_v4  ;;  %v8557_v22 = vsub.f32 %v702_v2, %v8527_v5  ;;  %s9085_s15 = scalar_select %p675_p8, %s8239_s20, 1 }
  0x85   : > { %v686_v15 = vld [vmem:[%s8496_s30] sm:$0xff]  ;;  %v8544_v16 = vand.u32 4294901760, %v691_v13  ;;  %v8546_v17 = vand.u32 4294901760, %v690_v14  ;;  %v687_v20 = vld [vmem:[%s8496_s30 + $0x8] sm:$0xff]  ;;  %746 = vmatpush1.msra.mxu0 %v8527_v5  ;;  %v8560_v23 = vsub.f32 %v699_v3, %v8529_v6  ;;  %v8563_v24 = vsub.f32 %v698_v7, %v8534_v10  ;;  %s11823_s19 = sld [smem:[#allocation136_spill]]  ;;  %s7783_s26 = sshll.u32 %s8489_s17, 9 }
  0x86   : > { %v708_v19 = vsel %vm706_vm0, %v686_v15, 0  ;;  %748 = vmatprep.subr.mxu0 %v8529_v6  ;;  %v862_v25 = vand.u32 4294901760, %v8549_v18  ;;  %v8568_v26 = vsub.f32 %v695_v8, %v8536_v11  ;;  %v711_v27 = vsel %vm706_vm0, %v687_v20, 0  ;;  %s7806_s16 = sshll.u32 %s9085_s15, 6  ;;  %s11824_s9 = sld [smem:[#allocation132_spill]] }
  0x87   : > { %v8554_v21 = vand.u32 4294901760, %v708_v19  ;;  %v8572_v28 = vsub.f32 %v694_v9, %v8538_v12  ;;  %750 = vmatpush1.msra.mxu0 %v8534_v10  ;;  %v868_v30 = vand.u32 4294901760, %v8557_v22  ;;  %v874_v31 = vand.u32 4294901760, %v8560_v23  ;;  %s7787_s29 = sshll.u32 %s9085_s15, 2  ;;  %s11825_s12 = sld [smem:[#allocation137_spill]] }
  0x88   : > { %v880_v32 = vand.u32 4294901760, %v8563_v24  ;;  %752 = vmatprep.subr.mxu0 %v8536_v11  ;;  %v863_v33 = vsub.f32 %v8549_v18, %v862_v25  ;;  %v886_v34 = vand.u32 4294901760, %v8568_v26  ;;  %v8586_v35 = vand.u32 4294901760, %v711_v27  ;;  %s9405_s4 = scalar_lea.vmem [#allocation10], %s7783_s26  ;;  %s12334_s0 = sld [smem:[#allocation138_spill]] }
  0x89   : > { %v8576_v29 = vsub.f32 %v708_v19, %v8554_v21  ;;  %v892_v36 = vand.u32 4294901760, %v8572_v28  ;;  %754 = vmatpush1.msra.mxu0 %v8538_v12  ;;  %v869_v38 = vsub.f32 %v8557_v22, %v868_v30  ;;  %v875_v39 = vsub.f32 %v8560_v23, %v874_v31  ;;  %s12390_s14 = sld [smem:[#allocation139_spill]]  ;;  %s8259_s26 = smov [#allocation11]  }
  0x8a   : > { %v881_v40 = vsub.f32 %v8563_v24, %v880_v32  ;;  %756 = vmatprep.subr.mxu0 %v8544_v16  ;;  %v864_v41 = vand.u32 4294901760, %v863_v33  ;;  %v887_v42 = vsub.f32 %v8568_v26, %v886_v34  ;;  %v8607_v43 = vsub.f32 %v711_v27, %v8586_v35 }
  0x8b   : > { %v8591_v37 = vand.u32 4294901760, %v8576_v29  ;;  %v893_v44 = vsub.f32 %v8572_v28, %v892_v36  ;;  %758 = vmatpush1.msra.mxu0 %v8546_v17  ;;  %v870_v48 = vand.u32 4294901760, %v869_v38  ;;  %v876_v49 = vand.u32 4294901760, %v875_v39  ;;  %v705_v38 = vld [vmem:[%s8511_s22 + $0x78] sm:$0xff]  ;;  %s9099_s10 = scalar_lea.vmem %s11823_s19, %s7806_s16 }
  0x8c   : > { %v882_v50 = vand.u32 4294901760, %v881_v40  ;;  %865 = vmatprep.subr.mxu1 %v864_v41  ;;  %v888_v51 = vand.u32 4294901760, %v887_v42  ;;  %v8618_v52 = vand.u32 4294901760, %v8607_v43  ;;  %v8621_v54 = vsub.f32 %v691_v13, %v8544_v16  ;;  %995 = vmatprep.subr.mxu0 %v8549_v18  ;;  %v704_v40 = vld [vmem:[%s8511_s22 + $0x70] sm:$0xff]  ;;  %v701_v41 = vld [vmem:[%s8511_s22 + $0x58] sm:$0xff] }
  0x8d   : > { %v795_v47 = vsub.f32 %v8576_v29, %v8591_v37  ;;  %v894_v53 = vand.u32 4294901760, %v893_v44  ;;  %871 = vmatpush1.msra.mxu1 %v870_v48  ;;  %v8627_v56 = vsub.f32 %v690_v14, %v8546_v17  ;;  %v717_v58 = vsel %vm706_vm0, %v689_v46, 0  ;;  %v700_v18 = vld [vmem:[%s8511_s22 + $0x50] sm:$0xff]  ;;  %s683_s2 = scalar_lea.vmem %s11825_s12, %s7787_s29  ;;  %s7807_s29 = sshll.u32 %s8239_s20, 9 }
  0x8e   : > { %877 = vmatprep.subr.mxu1 %v876_v49  ;;  %v806_v59 = vsub.f32 %v8607_v43, %v8618_v52  ;;  %v898_v60 = vand.u32 4294901760, %v8621_v54  ;;  %v8634_v61 = vand.u32 4294901760, %v714_v57  ;;  %v8636_v62 = vand.u32 4294901760, %v717_v58 }
  0x8f   : > { %v8624_v55 = vand.u32 4294901760, %v795_v47  ;;  %883 = vmatpush1.msra.mxu1 %v882_v50  ;;  %v904_v63 = vand.u32 4294901760, %v8627_v56  ;;  %v8697_v39 = vand.u32 4294901760, %v705_v38  ;;  %v8709_v42 = vand.u32 4294901760, %v704_v40  ;;  %s11528_s12 = scalar_lea.hbm %s12390_s14, %s7807_s29 }
  0x90   : > { %889 = vmatprep.subr.mxu1 %v888_v51  ;;  %v8641_v1 = vand.u32 4294901760, %v806_v59  ;;  %v899_v2 = vsub.f32 %v8621_v54, %v898_v60  ;;  %v8647_v3 = vsub.f32 %v714_v57, %v8634_v61  ;;  %v8650_v7 = vsub.f32 %v717_v58, %v8636_v62 }
  0x91   : > { %797 = vmatmul.mubr.f32.vlgmr.msra.gmra.mxu0 %v8624_v55  ;;  %895 = vmatpush1.msra.mxu1 %v894_v53  ;;  %v905_v8 = vsub.f32 %v8627_v56, %v904_v63  ;;  %v8714_v44 = vsub.f32 %v705_v38, %v8697_v39  ;;  %v8716_v45 = vand.u32 4294901760, %v701_v41  ;;  %vm3409_vm2 = vcmask 130048  }
  0x92   : > { %802 = vmatprep.mubr.f32.mxu0 %v11606_v0  ;;  %998 = vmatpush1.msra.mxu0 %v8557_v22  ;;  %v900_v9 = vand.u32 4294901760, %v899_v2  ;;  %v8657_v13 = vand.u32 4294901760, %v8647_v3  ;;  %v8661_v14 = vand.u32 4294901760, %v8650_v7  ;;  %v8730_v22 = vand.u32 4294901760, %v700_v18 }
  0x93   : > { %1001 = vmatprep.subr.mxu0 %v8560_v23  ;;  %v906_v15 = vand.u32 4294901760, %v905_v8  ;;  %v1552_v23 = vand.u32 4294901760, %v8714_v44  ;;  %vm6896_vm3 = vcmask 1043456   ;;  %vm6883_vm4 = vcmask 31744  }
  0x94   : > { %901 = vmatprep.subr.mxu1 %v900_v9  ;;  %v817_v19 = vsub.f32 %v8647_v3, %v8657_v13  ;;  %v828_v20 = vsub.f32 %v8650_v7, %v8661_v14  ;;  %1004 = vmatpush1.msra.mxu0 %v8563_v24  ;;  %v8737_v24 = vsub.f32 %v701_v41, %v8716_v45 }
  0x95   : > { %808 = vmatmul.mubr.f32.gmra.mxu0 %v8641_v1  ;;  %907 = vmatpush1.msra.mxu1 %v906_v15  ;;  %v8754_v46 = vsub.f32 %v700_v18, %v8730_v22 }
  0x96   : > { %813 = vmatprep.mubr.f32.mxu0 %v11606_v0  ;;  %942 = vmatmul.mubr.f32.vlgmr.msra.gmra.mxu1 %v8554_v21  ;;  %v8672_v27 = vand.u32 4294901760, %v817_v19  ;;  %v8678_v33 = vand.u32 4294901760, %v828_v20 }
  0x97   : > { %1107 = vmatprep.subr.mxu1 %v8525_v4  ;;  %947 = vmatprep.mubr.f32.mxu1 %v11606_v0  ;;  %v1570_v49 = vand.u32 4294901760, %v8754_v46 }
  0x98   : > { %1109 = vmatpush1.msra.mxu1 %v8527_v5  ;;  %1007 = vmatprep.subr.mxu0 %v8568_v26 }
  0x99   : > { %819 = vmatmul.mubr.f32.gmra.mxu0 %v8672_v27  ;;  %1111 = vmatprep.subr.mxu1 %v8529_v6 }
  0x9a   : > { %824 = vmatprep.mubr.f32.mxu0 %v11606_v0  ;;  %949 = vmatmul.mubr.f32.gmra.mxu1 %v8586_v35 }
  0x9b   : > { %1010 = vmatpush1.msra.mxu0 %v8572_v28  ;;  %1113 = vmatpush1.msra.mxu1 %v8534_v10  ;;  %v1553_v28 = vsub.f32 %v8714_v44, %v1552_v23 }
  0x9c   : > { %954 = vmatprep.mubr.f32.mxu1 %v11606_v0  ;;  %1013 = vmatprep.subr.mxu0 %v8621_v54 }
  0x9d   : > { %830 = vmatmul.mubr.f32.gmra.mxu0 %v8678_v33  ;;  %1115 = vmatprep.subr.mxu1 %v8536_v11 }
  0x9e   : > { %1016 = vmatpush1.msra.mxu0 %v8627_v56  ;;  %1049 = vmatprep.mubr.f32.mxu0 %v11606_v0  ;;  %v1571_v56 = vsub.f32 %v8754_v46, %v1570_v49 }
  0x9f   : > { %956 = vmatmul.mubr.f32.gmra.mxu1 %v8634_v61  ;;  %1218 = vmatprep.subr.mxu0 %v862_v25  ;;  %v697_v25 = vld [vmem:[%s8511_s22 + $0x38] sm:$0xff] }
  0xa0   : > { %1117 = vmatpush1.msra.mxu1 %v8538_v12  ;;  %961 = vmatprep.mubr.f32.mxu1 %v11606_v0 }
  0xa1   : > { %1052 = vmatmul.mubr.f32.vlgmr.msra.gmra.mxu0 %v8576_v29  ;;  %1119 = vmatprep.subr.mxu1 %v8544_v16 }
  0xa2   : > { %1057 = vmatprep.mubr.f32.mxu0 %v11606_v0  ;;  %1121 = vmatpush1.msra.mxu1 %v8546_v17 }
  0xa3   : > { %963 = vmatmul.mubr.f32.gmra.mxu1 %v8636_v62  ;;  %1222 = vmatpush1.msra.mxu0 %v868_v30  ;;  %v696_v30 = vld [vmem:[%s8511_s22 + $0x30] sm:$0xff] }
  0xa4   : > { %1154 = vmatprep.mubr.f32.mxu1 %v11606_v0  ;;  %1333 = vmatprep.subr.mxu1 %v8525_v4  ;;  %v8728_v4 = vsub.f32 %v704_v40, %v8709_v42  ;;  %v8756_v26 = vand.u32 4294901760, %v696_v30  ;;  %v2136_v40 = vld [vmem:[%s11577_s1] sm:$0xff] }
  0xa5   : > { %1060 = vmatmul.mubr.f32.gmra.mxu0 %v8607_v43  ;;  %1226 = vmatprep.subr.mxu0 %v874_v31  ;;  %v8747_v31 = vand.u32 4294901760, %v697_v25 }
  0xa6   : > { %1065 = vmatprep.mubr.f32.mxu0 %v11606_v0  ;;  %1230 = vmatpush1.msra.mxu0 %v880_v32  ;;  %v1558_v32 = vand.u32 4294901760, %v8728_v4  ;;  %v8784_v50 = vsub.f32 %v696_v30, %v8756_v26 }
  0xa7   : > { %1158 = vmatmul.mubr.f32.vlgmr.msra.gmra.mxu1 %v8591_v37  ;;  %1234 = vmatprep.subr.mxu0 %v886_v34  ;;  %v8775_v47 = vsub.f32 %v697_v25, %v8747_v31  ;;  %v2139_v25 = vld [vmem:[%s11577_s1 + $0x18] sm:$0xff] }
  0xa8   : > { %1335 = vmatpush1.msra.mxu1 %v8527_v5  ;;  %1163 = vmatprep.mubr.f32.mxu1 %v11606_v0  ;;  %v693_v5 = vld [vmem:[%s8511_s22 + $0x18] sm:$0xff]  ;;  %v1559_v48 = vsub.f32 %v8728_v4, %v1558_v32 }
  0xa9   : > { %1068 = vmatmul.mubr.f32.gmra.mxu0 %v8647_v3  ;;  %1337 = vmatprep.subr.mxu1 %v8529_v6  ;;  %v692_v6 = vld [vmem:[%s8511_s22 + $0x10] sm:$0xff]  ;;  %v8765_v34 = vand.u32 4294901760, %v693_v5 }
  0xaa   : > { %1073 = vmatprep.mubr.f32.mxu0 %v11606_v0  ;;  %1238 = vmatpush1.msra.mxu0 %v892_v36  ;;  %v8770_v36 = vand.u32 4294901760, %v692_v6  ;;  %v1560_v54 = vand.u32 4294901760, %v1559_v48 }
  0xab   : > { %1167 = vmatmul.mubr.f32.gmra.mxu1 %v8618_v52  ;;  %1242 = vmatprep.subr.mxu0 %v898_v60  ;;  %v8792_v51 = vsub.f32 %v693_v5, %v8765_v34  ;;  %v2155_v5 = vsel %vm2144_vm1, %v2139_v25, 0 }
  0xac   : > { %1339 = vmatpush1.msra.mxu1 %v8534_v10  ;;  %1172 = vmatprep.mubr.f32.mxu1 %v11606_v0  ;;  %v1564_v10 = vand.u32 4294901760, %v8737_v24  ;;  %v8797_v53 = vsub.f32 %v692_v6, %v8770_v36 }
  0xad   : > { %1076 = vmatmul.mubr.f32.gmra.mxu0 %v8650_v7  ;;  %1341 = vmatprep.subr.mxu1 %v8536_v11  ;;  %v1554_v11 = vand.u32 4294901760, %v1553_v28  ;;  %v1588_v58 = vand.u32 4294901760, %v8792_v51 }
  0xae   : > { %1246 = vmatpush1.msra.mxu0 %v904_v63  ;;  %1279 = vmatprep.mubr.f32.mxu0 %v11606_v0  ;;  %v1594_v59 = vand.u32 4294901760, %v8797_v53  ;;  %v1572_v63 = vand.u32 4294901760, %v1571_v56 }
  0xaf   : > { %1176 = vmatmul.mubr.f32.gmra.mxu1 %v8657_v13  ;;  %1434 = vmatprep.subr.mxu0 %v8697_v39  ;;  %v1589_v8 = vsub.f32 %v8792_v51, %v1588_v58 }
  0xb0   : > { %1343 = vmatpush1.msra.mxu1 %v8538_v12  ;;  %1181 = vmatprep.mubr.f32.mxu1 %v11606_v0  ;;  %v1565_v12 = vsub.f32 %v8737_v24, %v1564_v10  ;;  %v1595_v9 = vsub.f32 %v8797_v53, %v1594_v59 }
  0xb1   : > { %1281 = vmatmul.mubr.f32.vlgmr.msra.gmra.mxu0 %v8554_v21  ;;  %1345 = vmatprep.subr.mxu1 %v8544_v16  ;;  %v1576_v16 = vand.u32 4294901760, %v8775_v47  ;;  %v1590_v20 = vand.u32 4294901760, %v1589_v8 }
  0xb2   : > { %1286 = vmatprep.mubr.f32.mxu0 %v11606_v0  ;;  %1347 = vmatpush1.msra.mxu1 %v8546_v17  ;;  %v1582_v17 = vand.u32 4294901760, %v8784_v50  ;;  %v1566_v57 = vand.u32 4294901760, %v1565_v12  ;;  %v1596_v38 = vand.u32 4294901760, %v1595_v9  ;;  %v2142_v12 = vld [vmem:[%s8514_s13 + $0x10] sm:$0xff]  ;;  %v3402_v9 = vld [vmem:[%s9099_s10 + $0x8] sm:$0xff] }
  0xb3   : > { %1185 = vmatmul.mubr.f32.gmra.mxu1 %v8661_v14  ;;  %1436 = vmatpush1.msra.mxu0 %v8709_v42  ;;  %v1577_v60 = vsub.f32 %v8775_v47, %v1576_v16 }
  0xb4   : > { %1380 = vmatprep.mubr.f32.mxu1 %v11606_v0  ;;  %1555 = vmatprep.subr.mxu1 %v1554_v11  ;;  %v1583_v2 = vsub.f32 %v8784_v50, %v1582_v17 }
  0xb5   : > { %1288 = vmatmul.mubr.f32.gmra.mxu0 %v8586_v35  ;;  %1438 = vmatprep.subr.mxu0 %v8716_v45  ;;  %v1578_v15 = vand.u32 4294901760, %v1577_v60 }
  0xb6   : > { %1293 = vmatprep.mubr.f32.mxu0 %v11606_v0  ;;  %1440 = vmatpush1.msra.mxu0 %v8730_v22  ;;  %v1584_v19 = vand.u32 4294901760, %v1583_v2  ;;  %v3405_v2 = vld [vmem:[%s9099_s10 + $0x20] sm:$0xff] }
  0xb7   : > { %1382 = vmatmul.mubr.f32.vlgmr.msra.gmra.mxu1 %v8554_v21  ;;  %1442 = vmatprep.subr.mxu0 %v8747_v31 }
  0xb8   : > { %1561 = vmatpush1.msra.mxu1 %v1560_v54  ;;  %1387 = vmatprep.mubr.f32.mxu1 %v11606_v0 }
  0xb9   : > { %1295 = vmatmul.mubr.f32.gmra.mxu0 %v8634_v61  ;;  %1567 = vmatprep.subr.mxu1 %v1566_v57 }
  0xba   : > { %1300 = vmatprep.mubr.f32.mxu0 %v11606_v0  ;;  %1444 = vmatpush1.msra.mxu0 %v8756_v26 }
  0xbb   : > { %1389 = vmatmul.mubr.f32.gmra.mxu1 %v8586_v35  ;;  %1446 = vmatprep.subr.mxu0 %v8765_v34 }
  0xbc   : > { %1573 = vmatpush1.msra.mxu1 %v1572_v63  ;;  %1394 = vmatprep.mubr.f32.mxu1 %v11606_v0 }
  0xbd   : > { %1302 = vmatmul.mubr.f32.gmra.mxu0 %v8636_v62  ;;  %1579 = vmatprep.subr.mxu1 %v1578_v15  ;;  %v3401_v15 = vld [vmem:[%s9099_s10] sm:$0xff] }
  0xbe   : > { %1448 = vmatpush1.msra.mxu0 %v8770_v36  ;;  %1481 = vmatprep.mubr.f32.mxu0 %v11606_v0 }
  0xbf   : > { %1396 = vmatmul.mubr.f32.gmra.mxu1 %v8634_v61  ;;  %1685 = vmatprep.subr.mxu0 %v8714_v44 }
  0xc0   : > { %1585 = vmatpush1.msra.mxu1 %v1584_v19  ;;  %1401 = vmatprep.mubr.f32.mxu1 %v11606_v0  ;;  %v9139_v19 = vand.u32 4294901760, %v3405_v2 }
  0xc1   : > { %1487 = vmatmul.mubr.f32.vlgmr.msra.gmra.mxu0 %v8624_v55  ;;  %1591 = vmatprep.subr.mxu1 %v1590_v20  ;;  %v2141_v55 = vld [vmem:[%s8514_s13 + $0x8] sm:$0xff] }
  0xc2   : > { %1492 = vmatprep.mubr.f32.mxu0 %v11606_v0  ;;  %1597 = vmatpush1.msra.mxu1 %v1596_v38  ;;  %v9142_v38 = vand.u32 4294901760, %v3402_v9 }
  0xc3   : > { %1403 = vmatmul.mubr.f32.gmra.mxu1 %v8636_v62  ;;  %1688 = vmatpush1.msra.mxu0 %v8728_v4 }
  0xc4   : > { %1630 = vmatprep.mubr.f32.mxu1 %v11606_v0  ;;  %1797 = vmatprep.subr.mxu1 %v8697_v39 }
  0xc5   : > { %1498 = vmatmul.mubr.f32.gmra.mxu0 %v8641_v1  ;;  %1691 = vmatprep.subr.mxu0 %v8737_v24  ;;  %v8873_v1 = vand.u32 4294901760, %v2141_v55 }
  0xc6   : > { %1503 = vmatprep.mubr.f32.mxu0 %v11606_v0  ;;  %1694 = vmatpush1.msra.mxu0 %v8754_v46  ;;  %v8984_v46 = vand.u32 4294901760, %v2155_v5 }
  0xc7   : > { %1632 = vmatmul.mubr.f32.vlgmr.msra.gmra.mxu1 %v8554_v21  ;;  %1697 = vmatprep.subr.mxu0 %v8775_v47  ;;  %v2143_v47 = vld [vmem:[%s8514_s13 + $0x18] sm:$0xff] }
  0xc8   : > { %1799 = vmatpush1.msra.mxu1 %v8709_v42  ;;  %1637 = vmatprep.mubr.f32.mxu1 %v11606_v0 }
  0xc9   : > { %1509 = vmatmul.mubr.f32.gmra.mxu0 %v8672_v27  ;;  %1801 = vmatprep.subr.mxu1 %v8716_v45  ;;  %v2140_v27 = vld [vmem:[%s8514_s13] sm:$0xff]  ;;  %s654_s13 = scalar_lea.vmem [#allocation11], %s8492_s27 }
  0xca   : > { %1514 = vmatprep.mubr.f32.mxu0 %v11606_v0  ;;  %1700 = vmatpush1.msra.mxu0 %v8784_v50  ;;  %s7511_s23 = sshll.u32 %s654_s13, 4  ;;  %s11523_s23 = int_to_ptr.vmem [resolvable:$true] %s7511_s23 }
  0xcb   : > { %1639 = vmatmul.mubr.f32.gmra.mxu1 %v8586_v35  ;;  %1703 = vmatprep.subr.mxu0 %v8792_v51  ;;  %s8159_s20 = scalar_lea.vmem %s11523_s23, 512 }
  0xcc   : > { %1803 = vmatpush1.msra.mxu1 %v8730_v22  ;;  %1644 = vmatprep.mubr.f32.mxu1 %v11606_v0  ;;  %p8160_p0 = scmp.ne.s32.totalorder %s11523_s23, %s8159_s20 }
  0xcd   : > { %1520 = vmatmul.mubr.f32.gmra.mxu0 %v8678_v33  ;;  %1805 = vmatprep.subr.mxu1 %v8747_v31  ;;  %v8889_v33 = vsub.f32 %v2141_v55, %v8873_v1  ;;  %v9145_v55 = vand.u32 4294901760, %v3401_v15 }
  0xce   : > { %1706 = vmatpush1.msra.mxu0 %v8797_v53  ;;  %1739 = vmatprep.mubr.f32.mxu0 %v11606_v0  ;;  %v9053_v53 = vand.u32 4294901760, %v2142_v12  ;;  %p8161_p3 = pnand %p8160_p0, %p8377_p9 }
  0xcf   : > { %1646 = vmatmul.mubr.f32.gmra.mxu1 %v8634_v61  ;;  %1908 = vmatprep.subr.mxu0 %v1552_v23 }
  0xd0   : > { %1807 = vmatpush1.msra.mxu1 %v8756_v26  ;;  %1651 = vmatprep.mubr.f32.mxu1 %v11606_v0  ;;  %v9061_v54 = vsub.f32 %v2142_v12, %v9053_v53  ;;  %p8162_p4 = pneg %p8161_p3 }
  0xd1   : > { %1742 = vmatmul.mubr.f32.vlgmr.msra.gmra.mxu0 %v8576_v29  ;;  %1809 = vmatprep.subr.mxu1 %v8765_v34  ;;  %v8884_v29 = vand.u32 4294901760, %v2140_v27 }
  0xd2   : > { %1747 = vmatprep.mubr.f32.mxu0 %v11606_v0  ;;  %1811 = vmatpush1.msra.mxu1 %v8770_v36  ;;  %v2918_v56 = vand.u32 4294901760, %v9061_v54 }
  0xd3   : > { %1653 = vmatmul.mubr.f32.gmra.mxu1 %v8636_v62  ;;  %1912 = vmatpush1.msra.mxu0 %v1558_v32 }
  0xd4   : > { %1844 = vmatprep.mubr.f32.mxu1 %v11606_v0  ;;  %2023 = vmatprep.subr.mxu1 %v8697_v39  ;;  %v2146_v39 = vsel %vm2144_vm1, %v2136_v40, 0 }
  0xd5   : > { %1750 = vmatmul.mubr.f32.gmra.mxu0 %v8607_v43  ;;  %1916 = vmatprep.subr.mxu0 %v1564_v10  ;;  %v8903_v43 = vsub.f32 %v2140_v27, %v8884_v29  ;;  %v8998_v10 = vsub.f32 %v2155_v5, %v8984_v46  ;;  %v9154_v27 = vsub.f32 %v3405_v2, %v9139_v19 }
  0xd6   : > { %1755 = vmatprep.mubr.f32.mxu0 %v11606_v0  ;;  %1920 = vmatpush1.msra.mxu0 %v1570_v49  ;;  %v9023_v49 = vand.u32 4294901760, %v2143_v47 }
  0xd7   : > { %1848 = vmatmul.mubr.f32.vlgmr.msra.gmra.mxu1 %v8591_v37  ;;  %v2300_v37 = vand.u32 4294901760, %v8889_v33  ;;  %1924 = vmatprep.subr.mxu0 %v1576_v16  ;;  %v2306_v41 = vand.u32 4294901760, %v8903_v43 }
  0xd8   : > { %2025 = vmatpush1.msra.mxu1 %v8709_v42  ;;  %1853 = vmatprep.mubr.f32.mxu1 %v11606_v0  ;;  %v8927_v42 = vand.u32 4294901760, %v2146_v39  ;;  %v9034_v50 = vsub.f32 %v2143_v47, %v9023_v49 }
  0xd9   : > { %1758 = vmatmul.mubr.f32.gmra.mxu0 %v8647_v3  ;;  %2027 = vmatprep.subr.mxu1 %v8716_v45  ;;  %v2137_v3 = vld [vmem:[%s11577_s1 + $0x8] sm:$0xff]  ;;  %v2307_v45 = vsub.f32 %v8903_v43, %v2306_v41 }
  0xda   : > { %1763 = vmatprep.mubr.f32.mxu0 %v11606_v0  ;;  %1928 = vmatpush1.msra.mxu0 %v1582_v17  ;;  %v2149_v44 = vsel %vm2144_vm1, %v2137_v3, 0  ;;  %v2912_v11 = vand.u32 4294901760, %v9034_v50  ;;  %v2919_v17 = vsub.f32 %v9061_v54, %v2918_v56 }
  0xdb   : > { %1857 = vmatmul.mubr.f32.gmra.mxu1 %v8618_v52  ;;  %1932 = vmatprep.subr.mxu0 %v1588_v58  ;;  %v2301_v52 = vsub.f32 %v8889_v33, %v2300_v37  ;;  %v8948_v4 = vand.u32 4294901760, %v2149_v44  ;;  %v2308_v23 = vand.u32 4294901760, %v2307_v45  ;;  %v3406_v58 = vld [vmem:[%s9099_s10 + $0x28] sm:$0xff] }
  0xdc   : > { %2029 = vmatpush1.msra.mxu1 %v8730_v22  ;;  %1862 = vmatprep.mubr.f32.mxu1 %v11606_v0  ;;  %v2913_v51 = vsub.f32 %v9034_v50, %v2912_v11  ;;  %v2920_v57 = vand.u32 4294901760, %v2919_v17 }
  0xdd   : > { %1766 = vmatmul.mubr.f32.gmra.mxu0 %v8650_v7  ;;  %2031 = vmatprep.subr.mxu1 %v8747_v31  ;;  %v2138_v7 = vld [vmem:[%s11577_s1 + $0x10] sm:$0xff]  ;;  %v2302_v18 = vand.u32 4294901760, %v2301_v52  ;;  %v8965_v30 = vsub.f32 %v2149_v44, %v8948_v4 }
  0xde   : > { %1936 = vmatpush1.msra.mxu0 %v1594_v59  ;;  %1969 = vmatprep.mubr.f32.mxu0 %v11606_v0  ;;  %v2152_v22 = vsel %vm2144_vm1, %v2138_v7, 0  ;;  %v2914_v16 = vand.u32 4294901760, %v2913_v51  ;;  %v9109_v59 = vand.u32 4294901760, %v3406_v58  ;;  %v3399_v44 = vld [vmem:[%s11824_s9 + $0x10] sm:$0xff] }
  0xdf   : > { %1866 = vmatmul.mubr.f32.gmra.mxu1 %v8657_v13  ;;  %v8946_v13 = vsub.f32 %v2146_v39, %v8927_v42  ;;  %2188 = vmatprep.subr.mxu0 %v8873_v1  ;;  %v8978_v6 = vand.u32 4294901760, %v8965_v30  ;;  %v3417_v25 = vsel %vm3409_vm2, %v3399_v44, 0  ;;  %v3407_v44 = vld [vmem:[%s9099_s10 + $0x30] sm:$0xff] }
  0xe0   : > { %2033 = vmatpush1.msra.mxu1 %v8756_v26  ;;  %1871 = vmatprep.mubr.f32.mxu1 %v11606_v0  ;;  %v9118_v60 = vsub.f32 %v3406_v58, %v9109_v59 }
  0xe1   : > { %1971 = vmatmul.mubr.f32.vlgmr.msra.gmra.mxu0 %v8554_v21  ;;  %2035 = vmatprep.subr.mxu1 %v8765_v34  ;;  %v8962_v24 = vand.u32 4294901760, %v8946_v13  ;;  %v2238_v26 = vsub.f32 %v8965_v30, %v8978_v6 }
  0xe2   : > { %1976 = vmatprep.mubr.f32.mxu0 %v11606_v0  ;;  %2037 = vmatpush1.msra.mxu1 %v8770_v36  ;;  %v9009_v36 = vand.u32 4294901760, %v8998_v10  ;;  %v3565_v63 = vand.u32 4294901760, %v9118_v60 }
  0xe3   : > { %1875 = vmatmul.mubr.f32.gmra.mxu1 %v8661_v14  ;;  %2190 = vmatpush1.msra.mxu0 %v8884_v29  ;;  %v8967_v14 = vand.u32 4294901760, %v2152_v22  ;;  %v2227_v31 = vsub.f32 %v8946_v13, %v8962_v24 }
  0xe4   : > { %2070 = vmatprep.mubr.f32.mxu1 %v11606_v0  ;;  %2303 = vmatprep.subr.mxu1 %v2302_v18  ;;  %v2260_v48 = vsub.f32 %v8998_v10, %v9009_v36  ;;  %v3566_v8 = vsub.f32 %v9118_v60, %v3565_v63 }
  0xe5   : > { %1978 = vmatmul.mubr.f32.gmra.mxu0 %v8586_v35  ;;  %2403 = vmatprep.subr.mxu0 %v8889_v33  ;;  %v8982_v32 = vsub.f32 %v2152_v22, %v8967_v14  ;;  %v9162_v33 = vsub.f32 %v3401_v15, %v9145_v55 }
  0xe6   : > { %1983 = vmatprep.mubr.f32.mxu0 %v11606_v0  ;;  %v3567_v20 = vand.u32 4294901760, %v3566_v8 }
  0xe7   : > { %2072 = vmatmul.mubr.f32.vlgmr.msra.gmra.mxu1 %v8554_v21  ;;  %v8990_v21 = vand.u32 4294901760, %v2227_v31  ;;  %v8995_v28 = vand.u32 4294901760, %v8982_v32 }
  0xe8   : > { %2309 = vmatpush1.msra.mxu1 %v2308_v23  ;;  %2077 = vmatprep.mubr.f32.mxu1 %v11606_v0  ;;  %v3400_v23 = vld [vmem:[%s11824_s9 + $0x18] sm:$0xff] }
  0xe9   : > { %1985 = vmatmul.mubr.f32.gmra.mxu0 %v8634_v61  ;;  %2503 = vmatprep.subr.mxu1 %v8873_v1  ;;  %v2249_v34 = vsub.f32 %v8982_v32, %v8995_v28 }
  0xea   : > { %1990 = vmatprep.mubr.f32.mxu0 %v11606_v0 }
  0xeb   : > { %2079 = vmatmul.mubr.f32.gmra.mxu1 %v8586_v35  ;;  %v9004_v35 = vand.u32 4294901760, %v2238_v26 }
  0xec   : > { %2084 = vmatprep.mubr.f32.mxu1 %v11606_v0 }
  0xed   : > { %1992 = vmatmul.mubr.f32.gmra.mxu0 %v8636_v62 }
  0xee   : > { %2223 = vmatprep.mubr.f32.mxu0 %v11606_v0 }
  0xef   : > { %2086 = vmatmul.mubr.f32.gmra.mxu1 %v8634_v61  ;;  %v9019_v61 = vand.u32 4294901760, %v2249_v34 }
  0xf0   : > { %2091 = vmatprep.mubr.f32.mxu1 %v11606_v0 }
  0xf1   : > { %2229 = vmatmul.mubr.f32.vlgmr.msra.gmra.mxu0 %v8990_v21 }
  0xf2   : > { %2234 = vmatprep.mubr.f32.mxu0 %v11606_v0  ;;  %2406 = vmatpush1.msra.mxu0 %v8903_v43  ;;  %v3398_v43 = vld [vmem:[%s11824_s9 + $0x8] sm:$0xff] }
  0xf3   : > { %2093 = vmatmul.mubr.f32.gmra.mxu1 %v8636_v62  ;;  %2608 = vmatprep.subr.mxu0 %v2300_v37  ;;  %v9030_v62 = vand.u32 4294901760, %v2260_v48  ;;  %v3571_v37 = vand.u32 4294901760, %v9154_v27  ;;  %v3414_v52 = vsel %vm3409_vm2, %v3398_v43, 0 }
  0xf4   : > { %2342 = vmatprep.mubr.f32.mxu1 %v11606_v0 }
  0xf5   : > { %2240 = vmatmul.mubr.f32.gmra.mxu0 %v9004_v35  ;;  %v3572_v7 = vsub.f32 %v9154_v27, %v3571_v37 }
  0xf6   : > { %2245 = vmatprep.mubr.f32.mxu0 %v11606_v0 }
  0xf7   : > { %2344 = vmatmul.mubr.f32.vlgmr.msra.gmra.mxu1 %v8927_v42 }
  0xf8   : > { %2505 = vmatpush1.msra.mxu1 %v8884_v29  ;;  %2349 = vmatprep.mubr.f32.mxu1 %v11606_v0 }
  0xf9   : > { %2251 = vmatmul.mubr.f32.gmra.mxu0 %v9019_v61  ;;  %2705 = vmatprep.subr.mxu1 %v8873_v1  ;;  %v3397_v1 = vld [vmem:[%s11824_s9] sm:$0xff] }
  0xfa   : > { %2256 = vmatprep.mubr.f32.mxu0 %v11606_v0  ;;  %v3411_v40 = vsel %vm3409_vm2, %v3397_v1, 0 }
  0xfb   : > { %2351 = vmatmul.mubr.f32.gmra.mxu1 %v8948_v4  ;;  %v9173_v3 = vand.u32 4294901760, %v3411_v40 }
  0xfc   : > { %2356 = vmatprep.mubr.f32.mxu1 %v11606_v0 }
  0xfd   : > { %2262 = vmatmul.mubr.f32.gmra.mxu0 %v9030_v62  ;;  %v9191_v18 = vsub.f32 %v3411_v40, %v9173_v3 }
  0xfe   : > { %2439 = vmatprep.mubr.f32.mxu0 %v11606_v0 }
  0xff   : > { %2358 = vmatmul.mubr.f32.gmra.mxu1 %v8967_v14  ;;  %v9210_v5 = vand.u32 4294901760, %v9191_v18 }
 0x100   : > { %2363 = vmatprep.mubr.f32.mxu1 %v11606_v0 }
 0x101   : > { %2442 = vmatmul.mubr.f32.vlgmr.msra.gmra.mxu0 %v8946_v13  ;;  %v3494_v26 = vsub.f32 %v9191_v18, %v9210_v5 }
 0x102   : > { %2447 = vmatprep.mubr.f32.mxu0 %v11606_v0  ;;  %2612 = vmatpush1.msra.mxu0 %v2306_v41  ;;  %v3583_v41 = vand.u32 4294901760, %v9162_v33 }
 0x103   : > { %2365 = vmatmul.mubr.f32.gmra.mxu1 %v8984_v46  ;;  %2800 = vmatprep.subr.mxu0 %v9023_v49 }
 0x104   : > { %2538 = vmatprep.mubr.f32.mxu1 %v11606_v0  ;;  %v3584_v22 = vsub.f32 %v9162_v33, %v3583_v41 }
 0x105   : > { %2450 = vmatmul.mubr.f32.gmra.mxu0 %v8965_v30 }
 0x106   : > { %2455 = vmatprep.mubr.f32.mxu0 %v11606_v0 }
 0x107   : > { %2542 = vmatmul.mubr.f32.vlgmr.msra.gmra.mxu1 %v8962_v24 }
 0x108   : > { %2707 = vmatpush1.msra.mxu1 %v8884_v29  ;;  %2547 = vmatprep.mubr.f32.mxu1 %v11606_v0  ;;  %v9158_v29 = vsub.f32 %v3402_v9, %v9142_v38 }
 0x109   : > { %2458 = vmatmul.mubr.f32.gmra.mxu0 %v8982_v32  ;;  %2915 = vmatprep.subr.mxu1 %v2914_v16 }
 0x10a   : > { %2463 = vmatprep.mubr.f32.mxu0 %v11606_v0  ;;  %v3577_v39 = vand.u32 4294901760, %v9158_v29 }
 0x10b   : > { %2551 = vmatmul.mubr.f32.gmra.mxu1 %v8978_v6 }
 0x10c   : > { %2556 = vmatprep.mubr.f32.mxu1 %v11606_v0  ;;  %v3578_v45 = vsub.f32 %v9158_v29, %v3577_v39 }
 0x10d   : > { %2466 = vmatmul.mubr.f32.gmra.mxu0 %v8998_v10 }
 0x10e   : > { %2645 = vmatprep.mubr.f32.mxu0 %v11606_v0 }
 0x10f   : > { %2560 = vmatmul.mubr.f32.gmra.mxu1 %v8995_v28 }
 0x110   : > { %2565 = vmatprep.mubr.f32.mxu1 %v11606_v0 }
 0x111   : > { %2647 = vmatmul.mubr.f32.vlgmr.msra.gmra.mxu0 %v8927_v42 }
 0x112   : > { %2652 = vmatprep.mubr.f32.mxu0 %v11606_v0  ;;  %2802 = vmatpush1.msra.mxu0 %v9053_v53 }
 0x113   : > { %2569 = vmatmul.mubr.f32.gmra.mxu1 %v9009_v36  ;;  %3015 = vmatprep.subr.mxu0 %v9034_v50  ;;  %v3408_v50 = vld [vmem:[%s9099_s10 + $0x38] sm:$0xff] }
 0x114   : > { %2740 = vmatprep.mubr.f32.mxu1 %v11606_v0 }
 0x115   : > { %2654 = vmatmul.mubr.f32.gmra.mxu0 %v8948_v4 }
 0x116   : > { %2659 = vmatprep.mubr.f32.mxu0 %v11606_v0 }
 0x117   : > { %2742 = vmatmul.mubr.f32.vlgmr.msra.gmra.mxu1 %v8927_v42 }
 0x118   : > { %2921 = vmatpush1.msra.mxu1 %v2920_v57  ;;  %2747 = vmatprep.mubr.f32.mxu1 %v11606_v0 }
 0x119   : > { %2661 = vmatmul.mubr.f32.gmra.mxu0 %v8967_v14  ;;  %3115 = vmatprep.subr.mxu1 %v9023_v49 }
 0x11a   : > { %2666 = vmatprep.mubr.f32.mxu0 %v11606_v0 }
 0x11b   : > { %2749 = vmatmul.mubr.f32.gmra.mxu1 %v8948_v4 }
 0x11c   : > { %2754 = vmatprep.mubr.f32.mxu1 %v11606_v0 }
 0x11d   : > { %2668 = vmatmul.mubr.f32.gmra.mxu0 %v8984_v46 }
 0x11e   : > { %2835 = vmatprep.mubr.f32.mxu0 %v11606_v0 }
 0x11f   : > { %2756 = vmatmul.mubr.f32.gmra.mxu1 %v8967_v14 }
 0x120   : > { %2761 = vmatprep.mubr.f32.mxu1 %v11606_v0 }
 0x121   : > { %2841 = vmatmul.mubr.f32.vlgmr.msra.gmra.mxu0 %v8990_v21  ;;  %v3420_v21 = vsel %vm3409_vm2, %v3400_v23, 0 }
 0x122   : > { %2846 = vmatprep.mubr.f32.mxu0 %v11606_v0  ;;  %3018 = vmatpush1.msra.mxu0 %v9061_v54 }
 0x123   : > { %2763 = vmatmul.mubr.f32.gmra.mxu1 %v8984_v46  ;;  %3220 = vmatprep.subr.mxu0 %v2912_v11 }
 0x124   : > { %2954 = vmatprep.mubr.f32.mxu1 %v11606_v0 }
 0x125   : > { %2852 = vmatmul.mubr.f32.gmra.mxu0 %v9004_v35  ;;  %v9231_v35 = vand.u32 4294901760, %v3420_v21 }
 0x126   : > { %2857 = vmatprep.mubr.f32.mxu0 %v11606_v0 }
 0x127   : > { %2956 = vmatmul.mubr.f32.vlgmr.msra.gmra.mxu1 %v8927_v42  ;;  %v9246_v47 = vsub.f32 %v3420_v21, %v9231_v35 }
 0x128   : > { %3117 = vmatpush1.msra.mxu1 %v9053_v53  ;;  %2961 = vmatprep.mubr.f32.mxu1 %v11606_v0 }
 0x129   : > { %2863 = vmatmul.mubr.f32.gmra.mxu0 %v9019_v61  ;;  %3317 = vmatprep.subr.mxu1 %v9023_v49  ;;  %v9257_v49 = vand.u32 4294901760, %v9246_v47 }
 0x12a   : > { %2868 = vmatprep.mubr.f32.mxu0 %v11606_v0 }
 0x12b   : > { %2963 = vmatmul.mubr.f32.gmra.mxu1 %v8948_v4  ;;  %v3527_v12 = vsub.f32 %v9246_v47, %v9257_v49 }
 0x12c   : > { %2968 = vmatprep.mubr.f32.mxu1 %v11606_v0 }
 0x12d   : > { %2874 = vmatmul.mubr.f32.gmra.mxu0 %v9030_v62  ;;  %v9280_v17 = vand.u32 4294901760, %v3527_v12 }
 0x12e   : > { %3051 = vmatprep.mubr.f32.mxu0 %v11606_v0 }
 0x12f   : > { %2970 = vmatmul.mubr.f32.gmra.mxu1 %v8967_v14 }
 0x130   : > { %2975 = vmatprep.mubr.f32.mxu1 %v11606_v0 }
 0x131   : > { %3054 = vmatmul.mubr.f32.vlgmr.msra.gmra.mxu0 %v8946_v13  ;;  %v9193_v13 = vand.u32 4294901760, %v3414_v52 }
 0x132   : > { %3059 = vmatprep.mubr.f32.mxu0 %v11606_v0  ;;  %3224 = vmatpush1.msra.mxu0 %v2918_v56 }
 0x133   : > { %2977 = vmatmul.mubr.f32.gmra.mxu1 %v8984_v46  ;;  %3451 = vmatprep.subr.mxu0 %v9109_v59  ;;  %v9213_v31 = vsub.f32 %v3414_v52, %v9193_v13 }
 0x134   : > { %3150 = vmatprep.mubr.f32.mxu1 %v11606_v0 }
 0x135   : > { %3062 = vmatmul.mubr.f32.gmra.mxu0 %v8965_v30  ;;  %v3579_v30 = vand.u32 4294901760, %v3578_v45 }
 0x136   : > { %3067 = vmatprep.mubr.f32.mxu0 %v11606_v0 }
 0x137   : > { %3154 = vmatmul.mubr.f32.vlgmr.msra.gmra.mxu1 %v8962_v24  ;;  %v3573_v24 = vand.u32 4294901760, %v3572_v7 }
 0x138   : > { %3319 = vmatpush1.msra.mxu1 %v9053_v53  ;;  %3159 = vmatprep.mubr.f32.mxu1 %v11606_v0  ;;  %v9275_v53 = vand.u32 4294901760, %v3408_v50 }
 0x139   : > { %3070 = vmatmul.mubr.f32.gmra.mxu0 %v8982_v32  ;;  %3568 = vmatprep.subr.mxu1 %v3567_v20  ;;  %v3585_v32 = vand.u32 4294901760, %v3584_v22  ;;  %v3404_v22 = vld [vmem:[%s9099_s10 + $0x18] sm:$0xff] }
 0x13a   : > { %3075 = vmatprep.mubr.f32.mxu0 %v11606_v0 }
 0x13b   : > { %3163 = vmatmul.mubr.f32.gmra.mxu1 %v8978_v6  ;;  %v9216_v6 = vand.u32 4294901760, %v3417_v25 }
 0x13c   : > { %3168 = vmatprep.mubr.f32.mxu1 %v11606_v0 }
 0x13d   : > { %3078 = vmatmul.mubr.f32.gmra.mxu0 %v8998_v10  ;;  %v9229_v10 = vsub.f32 %v3417_v25, %v9216_v6 }
 0x13e   : > { %3257 = vmatprep.mubr.f32.mxu0 %v11606_v0 }
 0x13f   : > { %3172 = vmatmul.mubr.f32.gmra.mxu1 %v8995_v28  ;;  %v9226_v28 = vand.u32 4294901760, %v9213_v31 }
 0x140   : > { %3177 = vmatprep.mubr.f32.mxu1 %v11606_v0 }
 0x141   : > { %3259 = vmatmul.mubr.f32.vlgmr.msra.gmra.mxu0 %v8927_v42  ;;  %v3505_v34 = vsub.f32 %v9213_v31, %v9226_v28 }
 0x142   : > { %3264 = vmatprep.mubr.f32.mxu0 %v11606_v0  ;;  %3453 = vmatpush1.msra.mxu0 %v9139_v19 }
 0x143   : > { %3181 = vmatmul.mubr.f32.gmra.mxu1 %v9009_v36  ;;  %3455 = vmatprep.subr.mxu0 %v9142_v38  ;;  %v9243_v36 = vand.u32 4294901760, %v9229_v10  ;;  %v9252_v61 = vand.u32 4294901760, %v3505_v34 }
 0x144   : > { %3352 = vmatprep.mubr.f32.mxu1 %v11606_v0  ;;  %3457 = vmatpush1.msra.mxu0 %v9145_v55 }
 0x145   : > { %3266 = vmatmul.mubr.f32.gmra.mxu0 %v8948_v4  ;;  %3678 = vmatprep.subr.mxu0 %v9118_v60  ;;  %v3516_v48 = vsub.f32 %v9229_v10, %v9243_v36 }
 0x146   : > { %3271 = vmatprep.mubr.f32.mxu0 %v11606_v0 }
 0x147   : > { %3354 = vmatmul.mubr.f32.vlgmr.msra.gmra.mxu1 %v8927_v42  ;;  %v9238_v42 = vand.u32 4294901760, %v3494_v26  ;;  %v9267_v11 = vand.u32 4294901760, %v3516_v48 }
 0x148   : > { %3574 = vmatpush1.msra.mxu1 %v3573_v24  ;;  %3359 = vmatprep.mubr.f32.mxu1 %v11606_v0 }
 0x149   : > { %3273 = vmatmul.mubr.f32.gmra.mxu0 %v8967_v14  ;;  %3580 = vmatprep.subr.mxu1 %v3579_v30  ;;  %v3403_v30 = vld [vmem:[%s9099_s10 + $0x10] sm:$0xff]  ;;  %s12351_s10 = sld [smem:[#allocation134_spill]] }
 0x14a   : > { %3278 = vmatprep.mubr.f32.mxu0 %v11606_v0  ;;  %3586 = vmatpush1.msra.mxu1 %v3585_v32 }
 0x14b   : > { %3361 = vmatmul.mubr.f32.gmra.mxu1 %v8948_v4  ;;  %3782 = vmatprep.subr.mxu1 %v9109_v59 }
 0x14c   : > { %3366 = vmatprep.mubr.f32.mxu1 %v11606_v0 }
 0x14d   : > { %3280 = vmatmul.mubr.f32.gmra.mxu0 %v8984_v46 }
 0x14e   : > { %3490 = vmatprep.mubr.f32.mxu0 %v11606_v0 }
 0x14f   : > { %3368 = vmatmul.mubr.f32.gmra.mxu1 %v8967_v14 }
 0x150   : > { %3373 = vmatprep.mubr.f32.mxu1 %v11606_v0 }
 0x151   : > { %v798_v4 = vpop.f32.mrf.mxu0  ;;  %3496 = vmatmul.mubr.f32.vlgmr.msra.gmra.mxu0 %v9238_v42 }
 0x152   : > { %3501 = vmatprep.mubr.f32.mxu0 %v11606_v0  ;;  %3681 = vmatpush1.msra.mxu0 %v9154_v27  ;;  %v9312_v27 = vand.u32 4294901760, %v3407_v44 }
 0x153   : > { %v800_v62 = vpop.f32.mrf.mxu0  ;;  %3375 = vmatmul.mubr.f32.gmra.mxu1 %v8984_v46  ;;  %3684 = vmatprep.subr.mxu0 %v9158_v29  ;;  %v9316_v29 = vand.u32 4294901760, %v3404_v22 }
 0x154   : > { %3619 = vmatprep.mubr.f32.mxu1 %v11606_v0  ;;  %3687 = vmatpush1.msra.mxu0 %v9162_v33 }
 0x155   : > { %v809_v14 = vpop.f32.mrf.mxu0  ;;  %3507 = vmatmul.mubr.f32.gmra.mxu0 %v9252_v61  ;;  %3889 = vmatprep.subr.mxu0 %v3565_v63  ;;  %v9288_v63 = vsub.f32 %v3408_v50, %v9275_v53  ;;  %v9325_v50 = vsub.f32 %v3407_v44, %v9312_v27 }
 0x156   : > { %3512 = vmatprep.mubr.f32.mxu0 %v11606_v0  ;;  %v943_v46 = vpop.f32.mrf.mxu1 }
 0x157   : > { %v811_v51 = vpop.f32.mrf.mxu0  ;;  %3621 = vmatmul.mubr.f32.vlgmr.msra.gmra.mxu1 %v9173_v3  ;;  %v944_v16 = vadd.f32 %v943_v46, %v798_v4  ;;  %v9319_v4 = vand.u32 4294901760, %v3403_v30  ;;  %v9330_v46 = vsub.f32 %v3404_v22, %v9316_v29 }
 0x158   : > { %3784 = vmatpush1.msra.mxu1 %v9139_v19  ;;  %3626 = vmatprep.mubr.f32.mxu1 %v11606_v0  ;;  %v945_v56 = vpop.f32.mrf.mxu1 }
 0x159   : > { %v820_v54 = vpop.f32.mrf.mxu0  ;;  %3518 = vmatmul.mubr.f32.gmra.mxu0 %v9267_v11  ;;  %3786 = vmatprep.subr.mxu1 %v9142_v38  ;;  %v946_v57 = vadd.f32 %v945_v56, %v800_v62  ;;  %v9335_v56 = vsub.f32 %v3403_v30, %v9319_v4 }
 0x15a   : > { %3523 = vmatprep.mubr.f32.mxu0 %v11606_v0  ;;  %3788 = vmatpush1.msra.mxu1 %v9145_v55  ;;  %v950_v60 = vpop.f32.mrf.mxu1 }
 0x15b   : > { %v822_v58 = vpop.f32.mrf.mxu0  ;;  %3628 = vmatmul.mubr.f32.gmra.mxu1 %v9193_v13  ;;  %3992 = vmatprep.subr.mxu1 %v9109_v59  ;;  %v951_v2 = vadd.f32 %v950_v60, %v809_v14  ;;  %v4203_v59 = vand.u32 4294901760, %v9288_v63 }
 0x15c   : > { %3633 = vmatprep.mubr.f32.mxu1 %v11606_v0  ;;  %v952_v9 = vpop.f32.mrf.mxu1 }
 0x15d   : > { %v831_v8 = vpop.f32.mrf.mxu0  ;;  %3529 = vmatmul.mubr.f32.gmra.mxu0 %v9280_v17  ;;  %v953_v15 = vadd.f32 %v952_v9, %v811_v51  ;;  %v4204_v24 = vsub.f32 %v9288_v63, %v4203_v59 }
 0x15e   : > { %3720 = vmatprep.mubr.f32.mxu0 %v11606_v0 }
 0x15f   : > { %v833_v20 = vpop.f32.mrf.mxu0  ;;  %v957_v1 = vpop.f32.mrf.mxu1  ;;  %3635 = vmatmul.mubr.f32.gmra.mxu1 %v9216_v6  ;;  %v4205_v33 = vand.u32 4294901760, %v4204_v24 }
 0x160   : > { %v958_v40 = vadd.f32 %v957_v1, %v820_v54  ;;  %3640 = vmatprep.mubr.f32.mxu1 %v11606_v0 }
 0x161   : > { %v1053_v43 = vpop.f32.mrf.mxu0  ;;  %3723 = vmatmul.mubr.f32.vlgmr.msra.gmra.mxu0 %v9191_v18  ;;  %v959_v52 = vpop.f32.mrf.mxu1 }
 0x162   : > { %v1054_v7 = vadd.f32 %v1053_v43, %v944_v16  ;;  %v960_v45 = vadd.f32 %v959_v52, %v822_v58  ;;  %3728 = vmatprep.mubr.f32.mxu0 %v11606_v0  ;;  %3893 = vmatpush1.msra.mxu0 %v3571_v37 }
 0x163   : > { %v1055_v25 = vpop.f32.mrf.mxu0  ;;  %v964_v23 = vpop.f32.mrf.mxu1  ;;  %3642 = vmatmul.mubr.f32.gmra.mxu1 %v9231_v35  ;;  %3897 = vmatprep.subr.mxu0 %v3577_v39 }
 0x164   : > { %v1056_v32 = vadd.f32 %v1055_v25, %v946_v57  ;;  %v965_v21 = vadd.f32 %v964_v23, %v831_v8  ;;  %3821 = vmatprep.mubr.f32.mxu1 %v11606_v0  ;;  %3901 = vmatpush1.msra.mxu0 %v3583_v41 }
 0x165   : > { %v1061_v37 = vpop.f32.mrf.mxu0  ;;  %3731 = vmatmul.mubr.f32.gmra.mxu0 %v9213_v31  ;;  %v966_v26 = vpop.f32.mrf.mxu1  ;;  %4089 = vmatprep.subr.mxu0 %v9275_v53 }
 0x166   : > { %v1062_v39 = vadd.f32 %v1061_v37, %v951_v2  ;;  %v967_v34 = vadd.f32 %v966_v26, %v833_v20  ;;  %3736 = vmatprep.mubr.f32.mxu0 %v11606_v0  ;;  %v4209_v2 = vand.u32 4294901760, %v9325_v50 }
 0x167   : > { %v1063_v48 = vpop.f32.mrf.mxu0  ;;  %v1159_v62 = vpop.f32.mrf.mxu1  ;;  %3825 = vmatmul.mubr.f32.vlgmr.msra.gmra.mxu1 %v9210_v5 }
 0x168   : > { %v1064_v41 = vadd.f32 %v1063_v48, %v953_v15  ;;  %v1160_v14 = vadd.f32 %v1159_v62, %v1054_v7  ;;  %3994 = vmatpush1.msra.mxu1 %v9139_v19  ;;  %3830 = vmatprep.mubr.f32.mxu1 %v11606_v0  ;;  %v2100_v19 = vlaneseq }
 0x169   : > { %v1069_v12 = vpop.f32.mrf.mxu0  ;;  %3739 = vmatmul.mubr.f32.gmra.mxu0 %v9229_v10  ;;  %v1161_v51 = vpop.f32.mrf.mxu1  ;;  %3996 = vmatprep.subr.mxu1 %v9142_v38 }
 0x16a   : > { %v1070_v16 = vadd.f32 %v1069_v12, %v958_v40  ;;  %v1162_v54 = vadd.f32 %v1161_v51, %v1056_v32  ;;  %3744 = vmatprep.mubr.f32.mxu0 %v11606_v0  ;;  %3998 = vmatpush1.msra.mxu1 %v9145_v55  ;;  %v11604_v55 = vand.u32 4294901760, %v9330_v46  ;;  %v9344_v1 = vshrl.u32 %v2100_v19, 7 }
 0x16b   : > { %v1071_v57 = vpop.f32.mrf.mxu0  ;;  %v1168_v58 = vpop.f32.mrf.mxu1  ;;  %3834 = vmatmul.mubr.f32.gmra.mxu1 %v9226_v28  ;;  %4206 = vmatprep.subr.mxu1 %v4205_v33  ;;  %v11602_v40 = vand.u32 4294901760, %v9335_v56 }
 0x16c   : > { %v1072_v38 = vadd.f32 %v1071_v57, %v960_v45  ;;  %v1169_v60 = vadd.f32 %v1168_v58, %v1062_v39  ;;  %3839 = vmatprep.mubr.f32.mxu1 %v11606_v0  ;;  %v4210_v45 = vsub.f32 %v9325_v50, %v4209_v2  ;;  %v4216_v23 = vsub.f32 %v9330_v46, %v11604_v55  ;;  %v9366_v39 = vld [vmem:[%s683_s2] sm:$0xf]  ;;  %s7496_s2 = scalar_lea.sflag [#allocation4], %s8489_s17 }
 0x16d   : > { %v1077_v8 = vpop.f32.mrf.mxu0  ;;  %3747 = vmatmul.mubr.f32.gmra.mxu0 %v9246_v47  ;;  %v1170_v9 = vpop.f32.mrf.mxu1  ;;  %v2102_v32 = vsub.s32 0, %v9344_v1  ;;  %v2106_v33 = vsub.s32 1, %v9344_v1 }
 0x16e   : > { %v1078_v15 = vadd.f32 %v1077_v8, %v965_v21  ;;  %v1171_v20 = vadd.f32 %v1170_v9, %v1064_v41  ;;  %3934 = vmatprep.mubr.f32.mxu0 %v11606_v0  ;;  %v4222_v21 = vsub.f32 %v9335_v56, %v11602_v40  ;;  %v4211_v62 = vand.u32 4294901760, %v4210_v45 }
 0x16f   : > { %v1079_v43 = vpop.f32.mrf.mxu0  ;;  %v1177_v52 = vpop.f32.mrf.mxu1  ;;  %3843 = vmatmul.mubr.f32.gmra.mxu1 %v9243_v36  ;;  %v4217_v12 = vand.u32 4294901760, %v4216_v23  ;;  %v9375_v19 = vrot.slane %v9366_v39, %v2102_v32  ;;  %v9380_v9 = vrot.slane %v9366_v39, %v2106_v33 }
 0x170   : > { %v1080_v44 = vadd.f32 %v1079_v43, %v967_v34  ;;  %v1178_v7 = vadd.f32 %v1177_v52, %v1070_v16  ;;  %3848 = vmatprep.mubr.f32.mxu1 %v11606_v0 }
 0x171   : > { %v1282_v22 = vpop.f32.mrf.mxu0  ;;  %3936 = vmatmul.mubr.f32.vlgmr.msra.gmra.mxu0 %v9173_v3  ;;  %v1179_v25 = vpop.f32.mrf.mxu1 }
 0x172   : > { %v1283_v24 = vadd.f32 %v1282_v22, %v1160_v14  ;;  %v1180_v30 = vadd.f32 %v1179_v25, %v1072_v38  ;;  %3941 = vmatprep.mubr.f32.mxu0 %v11606_v0  ;;  %4091 = vmatpush1.msra.mxu0 %v9312_v27 }
 0x173   : > { %v1284_v37 = vpop.f32.mrf.mxu0  ;;  %v1186_v26 = vpop.f32.mrf.mxu1  ;;  %3852 = vmatmul.mubr.f32.gmra.mxu1 %v9257_v49  ;;  %4093 = vmatprep.subr.mxu0 %v9316_v29 }
 0x174   : > { %v1285_v34 = vadd.f32 %v1284_v37, %v1162_v54  ;;  %v1187_v48 = vadd.f32 %v1186_v26, %v1078_v15  ;;  %4031 = vmatprep.mubr.f32.mxu1 %v11606_v0  ;;  %4095 = vmatpush1.msra.mxu0 %v9319_v4  ;;  %v4223_v54 = vand.u32 4294901760, %v4222_v21 }
 0x175   : > { %v1289_v41 = vpop.f32.mrf.mxu0  ;;  %3943 = vmatmul.mubr.f32.gmra.mxu0 %v9193_v13  ;;  %v1188_v14 = vpop.f32.mrf.mxu1  ;;  %4316 = vmatprep.subr.mxu0 %v9288_v63 }
 0x176   : > { %v1290_v51 = vadd.f32 %v1289_v41, %v1169_v60  ;;  %v1189_v16 = vadd.f32 %v1188_v14, %v1080_v44  ;;  %3948 = vmatprep.mubr.f32.mxu0 %v11606_v0  ;;  %v4779_v41 = vld [vmem:[%s9405_s4 + $0x1e8] sm:$0xff] }
 0x177   : > { %v1291_v57 = vpop.f32.mrf.mxu0  ;;  %v1383_v58 = vpop.f32.mrf.mxu1  ;;  %4033 = vmatmul.mubr.f32.vlgmr.msra.gmra.mxu1 %v9173_v3 }
 0x178   : > { %v1292_v38 = vadd.f32 %v1291_v57, %v1171_v20  ;;  %v1384_v8 = vadd.f32 %v1383_v58, %v1283_v24  ;;  %4212 = vmatpush1.msra.mxu1 %v4211_v62  ;;  %4038 = vmatprep.mubr.f32.mxu1 %v11606_v0  ;;  %v9417_v58 = vand.u32 4294901760, %v4779_v41 }
 0x179   : > { %v1296_v60 = vpop.f32.mrf.mxu0  ;;  %3950 = vmatmul.mubr.f32.gmra.mxu0 %v9216_v6  ;;  %v1385_v15 = vpop.f32.mrf.mxu1  ;;  %4218 = vmatprep.subr.mxu1 %v4217_v12 }
 0x17a   : > { %v9385_v43 = vadd.f32 %v9375_v19, %v1384_v8  ;;  %v1297_v52 = vadd.f32 %v1296_v60, %v1178_v7  ;;  %v1386_v44 = vadd.f32 %v1385_v15, %v1285_v34  ;;  %3955 = vmatprep.mubr.f32.mxu0 %v11606_v0  ;;  %4224 = vmatpush1.msra.mxu1 %v4223_v54  ;;  %v4775_v8 = vld [vmem:[%s9405_s4 + $0x1c8] sm:$0xff] }
 0x17b   : > { %v1298_v20 = vpop.f32.mrf.mxu0  ;;  %v1390_v45 = vpop.f32.mrf.mxu1  ;;  %4040 = vmatmul.mubr.f32.gmra.mxu1 %v9193_v13  ;;  %4420 = vmatprep.subr.mxu1 %v9275_v53  ;;  %11831 = vst [vmem:[#allocation28_spill] sm:$0xff] %v9417_v58 }
 0x17c   : > { %11826 = vst [vmem:[#allocation23_spill] sm:$0xff] %v9385_v43  ;;  %v9392_v22 = vadd.f32 %v9380_v9, %v1386_v44  ;;  %v1299_v25 = vadd.f32 %v1298_v20, %v1180_v30  ;;  %v1391_v23 = vadd.f32 %v1390_v45, %v1290_v51  ;;  %4045 = vmatprep.mubr.f32.mxu1 %v11606_v0  ;;  %v4774_v45 = vld [vmem:[%s9405_s4 + $0x1c0] sm:$0xff] }
 0x17d   : > { %v1303_v24 = vpop.f32.mrf.mxu0  ;;  %3957 = vmatmul.mubr.f32.gmra.mxu0 %v9231_v35  ;;  %v1392_v7 = vpop.f32.mrf.mxu1 }
 0x17e   : > { %11827 = vst [vmem:[#allocation24_spill] sm:$0xff] %v9392_v22  ;;  %v9397_v32 = vadd.f32 %v9375_v19, %v1391_v23  ;;  %v1304_v21 = vadd.f32 %v1303_v24, %v1187_v48  ;;  %v1393_v37 = vadd.f32 %v1392_v7, %v1292_v38  ;;  %4128 = vmatprep.mubr.f32.mxu0 %v11606_v0  ;;  %v9436_v24 = vand.u32 4294901760, %v4775_v8  ;;  %v4755_v22 = vld [vmem:[%s9405_s4 + $0x128] sm:$0xff] }
 0x17f   : > { %v1305_v26 = vpop.f32.mrf.mxu0  ;;  %v1397_v34 = vpop.f32.mrf.mxu1  ;;  %4047 = vmatmul.mubr.f32.gmra.mxu1 %v9216_v6  ;;  %v9559_v43 = vand.u32 4294901760, %v4755_v22 }
 0x180   : > { %11828 = vst [vmem:[#allocation25_spill] sm:$0xff] %v9397_v32  ;;  %v9402_v30 = vadd.f32 %v9380_v9, %v1393_v37  ;;  %v1306_v62 = vadd.f32 %v1305_v26, %v1189_v16  ;;  %v1398_v33 = vadd.f32 %v1397_v34, %v1297_v52  ;;  %4052 = vmatprep.mubr.f32.mxu1 %v11606_v0  ;;  %v4778_v16 = vld [vmem:[%s9405_s4 + $0x1e0] sm:$0xff]  ;;  %11835 = vst [vmem:[#allocation32_spill] sm:$0xff] %v9436_v24 }
 0x181   : > { %v1488_v48 = vpop.f32.mrf.mxu0  ;;  %4134 = vmatmul.mubr.f32.vlgmr.msra.gmra.mxu0 %v9238_v42  ;;  %v1399_v14 = vpop.f32.mrf.mxu1  ;;  %v9428_v52 = vand.u32 4294901760, %v4778_v16  ;;  %v9452_v26 = vand.u32 4294901760, %v4774_v45 }
 0x182   : > { %11829 = vst [vmem:[#allocation26_spill] sm:$0xff] %v9402_v30  ;;  %v9410_v12 = vadd.f32 %v9375_v19, %v1398_v33  ;;  %v1400_v51 = vadd.f32 %v1399_v14, %v1299_v25  ;;  %4139 = vmatprep.mubr.f32.mxu0 %v11606_v0  ;;  %4319 = vmatpush1.msra.mxu0 %v9325_v50  ;;  %v4770_v33 = vld [vmem:[%s9405_s4 + $0x1a0] sm:$0xff] }
 0x183   : > { %v1490_v54 = vpop.f32.mrf.mxu0  ;;  %v1404_v57 = vpop.f32.mrf.mxu1  ;;  %4054 = vmatmul.mubr.f32.gmra.mxu1 %v9231_v35  ;;  %4322 = vmatprep.subr.mxu0 %v9330_v46  ;;  %11833 = vst [vmem:[#allocation30_spill] sm:$0xff] %v9428_v52  ;;  %v9450_v37 = vsub.f32 %v4778_v16, %v9428_v52  ;;  %11839 = vst [vmem:[#allocation36_spill] sm:$0xff] %v9452_v26 }
 0x184   : > { %11830 = vst [vmem:[#allocation27_spill] sm:$0xff] %v9410_v12  ;;  %v9420_v42 = vadd.f32 %v9380_v9, %v1400_v51  ;;  %v1405_v38 = vadd.f32 %v1404_v57, %v1304_v21  ;;  %4257 = vmatprep.mubr.f32.mxu1 %v11606_v0  ;;  %4325 = vmatpush1.msra.mxu0 %v9335_v56 }
 0x185   : > { %v1499_v60 = vpop.f32.mrf.mxu0  ;;  %4145 = vmatmul.mubr.f32.gmra.mxu0 %v9252_v61  ;;  %v1406_v15 = vpop.f32.mrf.mxu1  ;;  %4527 = vmatprep.subr.mxu0 %v4203_v59  ;;  %v9439_v61 = vsub.f32 %v4779_v41, %v9417_v58  ;;  %11838 = vst [vmem:[#allocation35_spill] sm:$0xff] %v9450_v37  ;;  %v11605_v57 = vand.u32 4294901760, %v9450_v37 }
 0x186   : > { %11832 = vst [vmem:[#allocation29_spill] sm:$0xff] %v9420_v42  ;;  %v9431_v44 = vadd.f32 %v9375_v19, %v1405_v38  ;;  %v1407_v20 = vadd.f32 %v1406_v15, %v1306_v62  ;;  %4150 = vmatprep.mubr.f32.mxu0 %v11606_v0  ;;  %v4771_v19 = vld [vmem:[%s9405_s4 + $0x1a8] sm:$0xff] }
 0x187   : > { %v1501_v25 = vpop.f32.mrf.mxu0  ;;  %v1633_v23 = vpop.f32.mrf.mxu1  ;;  %4259 = vmatmul.mubr.f32.vlgmr.msra.gmra.mxu1 %v9173_v3  ;;  %11836 = vst [vmem:[#allocation33_spill] sm:$0xff] %v9439_v61  ;;  %v11603_v41 = vand.u32 4294901760, %v9439_v61 }
 0x188   : > { %11834 = vst [vmem:[#allocation31_spill] sm:$0xff] %v9431_v44  ;;  %v9442_v63 = vadd.f32 %v9380_v9, %v1407_v20  ;;  %v1634_v59 = vadd.f32 %v1633_v23, %v1488_v48  ;;  %4422 = vmatpush1.msra.mxu1 %v9312_v27  ;;  %4264 = vmatprep.mubr.f32.mxu1 %v11606_v0 }
 0x189   : > { %v1510_v7 = vpop.f32.mrf.mxu0  ;;  %4156 = vmatmul.mubr.f32.gmra.mxu0 %v9267_v11  ;;  %v1635_v21 = vpop.f32.mrf.mxu1  ;;  %4424 = vmatprep.subr.mxu1 %v9316_v29  ;;  %v9458_v11 = vand.u32 4294901760, %v4771_v19  ;;  %v9463_v48 = vsub.f32 %v4775_v8, %v9436_v24  ;;  %v9475_v8 = vand.u32 4294901760, %v4770_v33  ;;  %v9482_v20 = vsub.f32 %v9439_v61, %v11603_v41 }
 0x18a   : > { %11837 = vst [vmem:[#allocation34_spill] sm:$0xff] %v9442_v63  ;;  %v1636_v9 = vadd.f32 %v1635_v21, %v1490_v54  ;;  %4161 = vmatprep.mubr.f32.mxu0 %v11606_v0  ;;  %4426 = vmatpush1.msra.mxu1 %v9319_v4  ;;  %v9468_v54 = vsub.f32 %v4774_v45, %v9452_v26  ;;  %v4759_v63 = vld [vmem:[%s9405_s4 + $0x148] sm:$0xff] }
 0x18b   : > { %v1512_v34 = vpop.f32.mrf.mxu0  ;;  %v1640_v62 = vpop.f32.mrf.mxu1  ;;  %4266 = vmatmul.mubr.f32.gmra.mxu1 %v9193_v13  ;;  %4630 = vmatprep.subr.mxu1 %v9275_v53  ;;  %11840 = vst [vmem:[#allocation37_spill] sm:$0xff] %v9458_v11  ;;  %11841 = vst [vmem:[#allocation38_spill] sm:$0xff] %v9463_v48  ;;  %v4766_v53 = vld [vmem:[%s9405_s4 + $0x180] sm:$0xff]  ;;  %v9498_v41 = vsub.f32 %v9450_v37, %v11605_v57  ;;  %v9508_v55 = vsub.f32 %v4770_v33, %v9475_v8  ;;  %v11850_v50 = vand.u32 4294901760, %v9463_v48 }
 0x18c   : > { %v1641_v14 = vadd.f32 %v1640_v62, %v1499_v60  ;;  %4271 = vmatprep.mubr.f32.mxu1 %v11606_v0  ;;  %11842 = vst [vmem:[#allocation39_spill] sm:$0xff] %v9468_v54  ;;  %11843 = vst [vmem:[#allocation40_spill] sm:$0xff] %v9475_v8  ;;  %v9491_v21 = vand.u32 4294901760, %v4766_v53  ;;  %v4763_v62 = vld [vmem:[%s9405_s4 + $0x168] sm:$0xff]  ;;  %v4758_v57 = vld [vmem:[%s9405_s4 + $0x140] sm:$0xff] }
 0x18d   : > { %v1521_v51 = vpop.f32.mrf.mxu0  ;;  %4167 = vmatmul.mubr.f32.gmra.mxu0 %v9280_v17  ;;  %v1642_v16 = vpop.f32.mrf.mxu1  ;;  %v4767_v17 = vld [vmem:[%s9405_s4 + $0x188] sm:$0xff]  ;;  %11846 = vst [vmem:[#allocation43_spill] sm:$0xff] %v9508_v55 }
 0x18e   : > { %v9472_v38 = vadd.f32 %v1642_v16, %v1501_v25  ;;  %4358 = vmatprep.mubr.f32.mxu0 %v11606_v0  ;;  %v9486_v25 = vsub.f32 %v4771_v19, %v9458_v11  ;;  %11845 = vst [vmem:[#allocation42_spill] sm:$0xff] %v9491_v21  ;;  %v4762_v19 = vld [vmem:[%s9405_s4 + $0x160] sm:$0xff] }
 0x18f   : > { %v1523_v60 = vpop.f32.mrf.mxu0  ;;  %v1647_v15 = vpop.f32.mrf.mxu1  ;;  %4273 = vmatmul.mubr.f32.gmra.mxu1 %v9216_v6 }
 0x190   : > { %11844 = vst [vmem:[#allocation41_spill] sm:$0xff] %v9486_v25  ;;  %v9488_v23 = vadd.f32 %v1647_v15, %v1510_v7  ;;  %4278 = vmatprep.mubr.f32.mxu1 %v11606_v0 }
 0x191   : > { %v1743_v16 = vpop.f32.mrf.mxu0  ;;  %4361 = vmatmul.mubr.f32.vlgmr.msra.gmra.mxu0 %v9191_v18  ;;  %v1649_v40 = vpop.f32.mrf.mxu1  ;;  %v9510_v18 = vand.u32 4294901760, %v4767_v17 }
 0x192   : > { %v1744_v15 = vadd.f32 %v1743_v16, %v1634_v59  ;;  %v9502_v45 = vadd.f32 %v1649_v40, %v1512_v34  ;;  %4366 = vmatprep.mubr.f32.mxu0 %v11606_v0  ;;  %4531 = vmatpush1.msra.mxu0 %v4209_v2  ;;  %v11848_v40 = vand.u32 4294901760, %v9330_v46  ;;  %v4927_v59 = vand.u32 4294901760, %v9482_v20 }
 0x193   : > { %11847 = vst [vmem:[#allocation44_spill] sm:$0xff] %v9510_v18  ;;  %v1745_v42 = vpop.f32.mrf.mxu0  ;;  %v1654_v30 = vpop.f32.mrf.mxu1  ;;  %4280 = vmatmul.mubr.f32.gmra.mxu1 %v9231_v35  ;;  %v9518_v34 = vand.u32 4294901760, %v4763_v62  ;;  %v9523_v2 = vsub.f32 %v9463_v48, %v11850_v50  ;;  %v11851_v46 = vand.u32 4294901760, %v9335_v56  ;;  %v9532_v20 = vsub.f32 %v4766_v53, %v9491_v21  ;;  %v4754_v53 = vld [vmem:[%s9405_s4 + $0x120] sm:$0xff] }
 0x194   : > { %4535 = vmatprep.subr.mxu0 %v11848_v40  ;;  %v1746_v16 = vadd.f32 %v1745_v42, %v1636_v9  ;;  %v9526_v7 = vadd.f32 %v1654_v30, %v1521_v51  ;;  %4459 = vmatprep.mubr.f32.mxu1 %v11606_v0  ;;  %v9534_v40 = vand.u32 4294901760, %v4762_v19  ;;  %v9540_v42 = vand.u32 4294901760, %v4759_v63 }
 0x195   : > { %11849 = vst [vmem:[#allocation45_spill] sm:$0xff] %v9518_v34  ;;  %4539 = vmatpush1.msra.mxu0 %v11851_v46  ;;  %11852 = vst [vmem:[#allocation46_spill] sm:$0xff] %v9532_v20  ;;  %v1751_v44 = vpop.f32.mrf.mxu0  ;;  %v1656_v50 = vpop.f32.mrf.mxu1  ;;  %v11853_v9 = vand.u32 4294901760, %v9468_v54  ;;  %v9547_v51 = vand.u32 4294901760, %v4758_v57 }
 0x196   : > { %4369 = vmatmul.mubr.f32.gmra.mxu0 %v9213_v31  ;;  %4783 = vmatprep.subr.mxu0 %v9417_v58  ;;  %v1752_v46 = vadd.f32 %v1751_v44, %v1641_v14  ;;  %v9550_v33 = vadd.f32 %v1656_v50, %v1523_v60  ;;  %v2110_v31 = vsub.s32 2, %v9344_v1  ;;  %v9562_v44 = vsub.f32 %v4767_v17, %v9510_v18 }
 0x197   : > { %v9545_v56 = vsub.f32 %v9468_v54, %v11853_v9  ;;  %11854 = vst [vmem:[#allocation47_spill] sm:$0xff] %v9547_v51  ;;  %4374 = vmatprep.mubr.f32.mxu0 %v11606_v0  ;;  %v9555_v30 = vpop.f32.mrf.mxu0  ;;  %v1849_v32 = vpop.f32.mrf.mxu1  ;;  %4463 = vmatmul.mubr.f32.vlgmr.msra.gmra.mxu1 %v9210_v5  ;;  %v9565_v14 = vsub.f32 %v4763_v62, %v9518_v34  ;;  %v11858_v5 = vand.u32 4294901760, %v9486_v25  ;;  %v9579_v17 = vand.u32 4294901760, %v4754_v53  ;;  %v4746_v54 = vld [vmem:[%s9405_s4 + $0xe0] sm:$0xff] }
 0x198   : > { %11855 = vst [vmem:[#allocation48_spill] sm:$0xff] %v9562_v44  ;;  %v9567_v60 = vadd.f32 %v1849_v32, %v1744_v15  ;;  %4632 = vmatpush1.msra.mxu1 %v9312_v27  ;;  %4468 = vmatprep.mubr.f32.mxu1 %v11606_v0  ;;  %v9572_v50 = vsub.f32 %v4762_v19, %v9534_v40  ;;  %v2114_v27 = vsub.s32 3, %v9344_v1  ;;  %v4750_v15 = vld [vmem:[%s9405_s4 + $0x100] sm:$0xff]  ;;  %v4751_v1 = vld [vmem:[%s9405_s4 + $0x108] sm:$0xff] }
 0x199   : > { %11856 = vst [vmem:[#allocation49_spill] sm:$0xff] %v9565_v14  ;;  %v9577_v9 = vsub.f32 %v9486_v25, %v11858_v5  ;;  %11859 = vst [vmem:[#allocation51_spill] sm:$0xff] %v9579_v17  ;;  %v1759_v12 = vpop.f32.mrf.mxu0  ;;  %v1851_v32 = vpop.f32.mrf.mxu1  ;;  %4634 = vmatprep.subr.mxu1 %v9316_v29  ;;  %v9586_v19 = vsub.f32 %v4758_v57, %v9547_v51  ;;  %v9590_v5 = vsub.f32 %v4759_v63, %v9540_v42  ;;  %v11862_v25 = vmov 0.0  }
 0x19a   : > { %11857 = vst [vmem:[#allocation50_spill] sm:$0xff] %v9572_v50  ;;  %4377 = vmatmul.mubr.f32.gmra.mxu0 %v9229_v10  ;;  %v1760_v0 = vadd.f32 %v1759_v12, %v9488_v23  ;;  %v9593_v58 = vadd.f32 %v1851_v32, %v1746_v16  ;;  %4636 = vmatpush1.msra.mxu1 %v9319_v4  ;;  %v11863_v10 = vand.u32 4294901760, %v9508_v55 }
 0x19b   : > { %11860 = vst [vmem:[#allocation52_spill] sm:$0xff] %v9586_v19  ;;  %11861 = vst [vmem:[#allocation53_spill] sm:$0xff] %v9590_v5  ;;  %4382 = vmatprep.mubr.f32.mxu0 %v11862_v25  ;;  %v9604_v62 = vpop.f32.mrf.mxu0  ;;  %v1858_v63 = vpop.f32.mrf.mxu1  ;;  %4472 = vmatmul.mubr.f32.gmra.mxu1 %v9226_v28  ;;  %v9608_v12 = vrot.slane %v9366_v39, %v2110_v31  ;;  %v9613_v16 = vsub.f32 %v4755_v22, %v9559_v43  ;;  %v9621_v28 = vand.u32 4294901760, %v4750_v15 }
 0x19c   : > { %v9600_v29 = vsub.f32 %v9508_v55, %v11863_v10  ;;  %4928 = vmatprep.subr.mxu1 %v4927_v59  ;;  %v9615_v32 = vadd.f32 %v1858_v63, %v1752_v46  ;;  %4477 = vmatprep.mubr.f32.mxu1 %v11862_v25  ;;  %v9619_v10 = vsub.f32 %v4754_v53, %v9579_v17  ;;  %v4747_v59 = vld [vmem:[%s9405_s4 + $0xe8] sm:$0xff]  ;;  %v9629_v46 = vand.u32 4294901760, %v4751_v1  ;;  %v4742_v63 = vld [vmem:[%s9405_s4 + $0xc0] sm:$0xff] }
 0x19d   : > { %11864 = vst [vmem:[#allocation54_spill] sm:$0xff] %v9613_v16  ;;  %11866 = vst [vmem:[#allocation56_spill] sm:$0xff] %v9621_v28  ;;  %v1767_v57 = vpop.f32.mrf.mxu0  ;;  %v9626_v23 = vpop.f32.mrf.mxu1  ;;  %v9636_v31 = vrot.slane %v9366_v39, %v2114_v27  ;;  %v11868_v55 = vand.u32 4294901760, %v9532_v20  ;;  %v11870_v39 = vand.u32 4294901760, %v9565_v14 }
 0x19e   : > { %11865 = vst [vmem:[#allocation55_spill] sm:$0xff] %v9619_v10  ;;  %4385 = vmatmul.mubr.f32.gmra.mxu0 %v9246_v47  ;;  %11867 = vst [vmem:[#allocation57_spill] sm:$0xff] %v9629_v46  ;;  %v1768_v4 = vadd.f32 %v1767_v57, %v9526_v7  ;;  %v11869_v7 = vand.u32 4294901760, %v9562_v44  ;;  %v9658_v47 = vand.u32 4294901760, %v4747_v59 }
 0x19f   : > { %4572 = vmatprep.mubr.f32.mxu0 %v11862_v25  ;;  %v9642_v22 = vsub.f32 %v9532_v20, %v11868_v55  ;;  %v9645_v48 = vpop.f32.mrf.mxu0  ;;  %v1867_v53 = vpop.f32.mrf.mxu1  ;;  %4481 = vmatmul.mubr.f32.gmra.mxu1 %v9243_v36  ;;  %v9656_v27 = vsub.f32 %v9565_v14, %v11870_v39  ;;  %v4743_v55 = vld [vmem:[%s9405_s4 + $0xc8] sm:$0xff]  ;;  %v9667_v36 = vsub.f32 %v4750_v15, %v9621_v28  ;;  %v9678_v20 = vand.u32 4294901760, %v4746_v54 }
 0x1a0   : > { %v9651_v57 = vsub.f32 %v9562_v44, %v11869_v7  ;;  %11871 = vst [vmem:[#allocation58_spill] sm:$0xff] %v9658_v47  ;;  %v9663_v37 = vadd.f32 %v1867_v53, %v1760_v0  ;;  %4486 = vmatprep.mubr.f32.mxu1 %v11862_v25  ;;  %v11872_v7 = vand.u32 4294901760, %v9572_v50  ;;  %v11874_v0 = vand.u32 4294901760, %v9590_v5  ;;  %v9711_v28 = vld [vmem:[%s9405_s4 + $0xa8] sm:$0xff] }
 0x1a1   : > { %v1972_v14 = vpop.f32.mrf.mxu0  ;;  %v9676_v61 = vpop.f32.mrf.mxu1  ;;  %11873 = vst [vmem:[#allocation59_spill] sm:$0xff] %v9678_v20  ;;  %v11875_v15 = vand.u32 4294901760, %v9586_v19  ;;  %v9691_v39 = vsub.f32 %v4751_v1, %v9629_v46  ;;  %v9697_v17 = vand.u32 4294901760, %v4743_v55 }
 0x1a2   : > { %v9672_v44 = vsub.f32 %v9572_v50, %v11872_v7  ;;  %4574 = vmatmul.mubr.f32.vlgmr.msra.gmra.mxu0 %v9173_v3  ;;  %v9683_v53 = vsub.f32 %v9590_v5, %v11874_v0  ;;  %v1973_v50 = vadd.f32 %v1972_v14, %v9567_v60  ;;  %v9699_v0 = vand.u32 4294901760, %v4742_v63 }
 0x1a3   : > { %v9688_v7 = vsub.f32 %v9586_v19, %v11875_v15  ;;  %11877 = vst [vmem:[#allocation61_spill] sm:$0xff] %v9691_v39  ;;  %4785 = vmatpush1.msra.mxu0 %v9428_v52  ;;  %4579 = vmatprep.mubr.f32.mxu0 %v11862_v25  ;;  %11878 = vst [vmem:[#allocation62_spill] sm:$0xff] %v9697_v17  ;;  %v1974_v15 = vpop.f32.mrf.mxu0  ;;  %v1876_v19 = vpop.f32.mrf.mxu1  ;;  %v11880_v60 = vand.u32 4294901760, %v9613_v16  ;;  %v9714_v52 = vsub.f32 %v4747_v59, %v9658_v47 }
 0x1a4   : > { %11879 = vst [vmem:[#allocation63_spill] sm:$0xff] %v9699_v0  ;;  %4787 = vmatprep.subr.mxu0 %v9436_v24  ;;  %4490 = vmatmul.mubr.f32.gmra.mxu1 %v9257_v49  ;;  %v9717_v24 = vadd.f32 %v1876_v19, %v1768_v4  ;;  %v11881_v14 = vand.u32 4294901760, %v9619_v10  ;;  %v9733_v4 = vsub.f32 %v4746_v54, %v9678_v20  ;;  %v4734_v54 = vld [vmem:[%s9405_s4 + $0x80] sm:$0xff] }
 0x1a5   : > { %11876 = vst [vmem:[#allocation60_spill] sm:$0xff] %v9688_v7  ;;  %v9708_v5 = vsub.f32 %v9613_v16, %v11880_v60  ;;  %4789 = vmatpush1.msra.mxu0 %v9452_v26  ;;  %4669 = vmatprep.mubr.f32.mxu1 %v11862_v25  ;;  %v4738_v60 = vld [vmem:[%s9405_s4 + $0xa0] sm:$0xff]  ;;  %v1979_v59 = vpop.f32.mrf.mxu0  ;;  %v9730_v19 = vpop.f32.mrf.mxu1  ;;  %v9742_v16 = vsub.f32 %v4742_v63, %v9699_v0 }
 0x1a6   : > { %v9724_v1 = vsub.f32 %v9619_v10, %v11881_v14  ;;  %4791 = vmatprep.subr.mxu0 %v9458_v11  ;;  %4581 = vmatmul.mubr.f32.gmra.mxu0 %v9193_v13  ;;  %11882 = vst [vmem:[#allocation64_spill] sm:$0xff] %v9733_v4  ;;  %v1980_v10 = vadd.f32 %v1979_v59, %v9615_v32  ;;  %v9745_v11 = vand.u32 4294901760, %v9711_v28  ;;  %v9756_v63 = vand.u32 4294901760, %v4738_v60 }
 0x1a7   : > { %4793 = vmatpush1.msra.mxu0 %v9475_v8  ;;  %4586 = vmatprep.mubr.f32.mxu0 %v11862_v25  ;;  %v9749_v49 = vsub.f32 %v4743_v55, %v9697_v17  ;;  %v1754_v26 = vadd.f32 %v9555_v30, %v9472_v38  ;;  %v1981_v32 = vpop.f32.mrf.mxu0  ;;  %v2073_v59 = vpop.f32.mrf.mxu1  ;;  %v9759_v8 = vld [vmem:[%s9405_s4 + $0x88] sm:$0xff]  ;;  %v1975_v55 = vadd.f32 %v1974_v15, %v9593_v58  ;;  %v11883_v38 = vand.u32 4294901760, %v9498_v41 }
 0x1a8   : > { %4795 = vmatprep.subr.mxu0 %v9510_v18  ;;  %4671 = vmatmul.mubr.f32.vlgmr.msra.gmra.mxu1 %v9173_v3  ;;  %v2074_v7 = vadd.f32 %v2073_v59, %v1973_v50  ;;  %v11884_v3 = vand.u32 4294901760, %v9667_v36  ;;  %v11885_v50 = vand.u32 4294901760, %v9691_v39  ;;  %v9780_v15 = vand.u32 4294901760, %v4734_v54 }
 0x1a9   : > { %4797 = vmatpush1.msra.mxu0 %v9491_v21  ;;  %4934 = vmatpush1.msra.mxu1 %v11883_v38  ;;  %v1861_v18 = vadd.f32 %v9626_v23, %v1754_v26  ;;  %v1986_v0 = vpop.f32.mrf.mxu0  ;;  %v2075_v58 = vpop.f32.mrf.mxu1  ;;  %v11887_v23 = vand.u32 4294901760, %v9523_v2  ;;  %v9791_v30 = vand.u32 4294901760, %v9759_v8  ;;  %v9802_v59 = vsub.f32 %v4738_v60, %v9756_v63 }
 0x1aa   : > { %v9770_v14 = vsub.f32 %v9667_v36, %v11884_v3  ;;  %4799 = vmatprep.subr.mxu0 %v9518_v34  ;;  %4588 = vmatmul.mubr.f32.gmra.mxu0 %v9216_v6  ;;  %v9778_v41 = vsub.f32 %v9691_v39, %v11885_v50  ;;  %v9784_v38 = vadd.f32 %v9608_v12, %v2074_v7  ;;  %v9794_v50 = vld [vmem:[%s9405_s4 + $0x68] sm:$0xff]  ;;  %v11888_v7 = vand.u32 4294901760, %v9545_v56 }
 0x1ab   : > { %v1987_v26 = vadd.f32 %v1986_v0, %v9663_v37  ;;  %4801 = vmatpush1.msra.mxu0 %v9534_v40  ;;  %4940 = vmatprep.subr.mxu1 %v11887_v23  ;;  %v2076_v3 = vadd.f32 %v2075_v58, %v1975_v55  ;;  %v1762_v34 = vadd.f32 %v9604_v62, %v9502_v45  ;;  %v1988_v37 = vpop.f32.mrf.mxu0  ;;  %v2080_v0 = vpop.f32.mrf.mxu1  ;;  %v11889_v2 = vand.u32 4294901760, %v9714_v52  ;;  %v4730_v58 = vld [vmem:[%s9405_s4 + $0x60] sm:$0xff] }
 0x1ac   : > { %11886 = vst [vmem:[#allocation65_spill] sm:$0xff] %v9784_v38  ;;  %4803 = vmatprep.subr.mxu0 %v9540_v42  ;;  %4946 = vmatpush1.msra.mxu1 %v11888_v7  ;;  %v1982_v38 = vadd.f32 %v1981_v32, %v1861_v18  ;;  %v2081_v56 = vadd.f32 %v2080_v0, %v1980_v10  ;;  %v11891_v7 = vand.u32 4294901760, %v9577_v9  ;;  %v11892_v10 = vand.u32 4294901760, %v9733_v4  ;;  %v4726_v62 = vld [vmem:[%s9405_s4 + $0x40] sm:$0xff] }
 0x1ad   : > { %v9807_v55 = vsub.f32 %v9714_v52, %v11889_v2  ;;  %v9812_v45 = vadd.f32 %v9636_v31, %v2076_v3  ;;  %4676 = vmatprep.mubr.f32.mxu1 %v11862_v25  ;;  %4805 = vmatpush1.msra.mxu0 %v9547_v51  ;;  %v1870_v60 = vadd.f32 %v9676_v61, %v1762_v34  ;;  %v1993_v18 = vpop.f32.mrf.mxu0  ;;  %v2082_v32 = vpop.f32.mrf.mxu1  ;;  %v9825_v2 = vand.u32 4294901760, %v9794_v50 }
 0x1ae   : > { %4952 = vmatprep.subr.mxu1 %v11891_v7  ;;  %4593 = vmatprep.mubr.f32.mxu0 %v11862_v25  ;;  %v9822_v3 = vsub.f32 %v4734_v54, %v9780_v15  ;;  %v9830_v0 = vsub.f32 %v9733_v4, %v11892_v10  ;;  %v9833_v61 = vadd.f32 %v9608_v12, %v2081_v56  ;;  %v9838_v54 = vand.u32 4294901760, %v4730_v58  ;;  %v9841_v7 = vld [vmem:[%s9405_s4 + $0x48] sm:$0xff] }
 0x1af   : > { %11890 = vst [vmem:[#allocation66_spill] sm:$0xff] %v9812_v45  ;;  %4678 = vmatmul.mubr.f32.gmra.mxu1 %v9193_v13  ;;  %4807 = vmatprep.subr.mxu0 %v9559_v43  ;;  %v1994_v34 = vadd.f32 %v1993_v18, %v9717_v24  ;;  %v2083_v9 = vadd.f32 %v2082_v32, %v1982_v38  ;;  %v11895_v23 = vand.u32 4294901760, %v9600_v29  ;;  %v1995_v56 = vpop.f32.mrf.mxu0  ;;  %v2087_v13 = vpop.f32.mrf.mxu1  ;;  %v11896_v45 = vand.u32 4294901760, %v9749_v49  ;;  %v4714_v32 = vld [vmem:[%s8504_s11] sm:$0xff] }
 0x1b0   : > { %11893 = vst [vmem:[#allocation67_spill] sm:$0xff] %v9833_v61  ;;  %11894 = vst [vmem:[#allocation68_spill] sm:$0xff] %v9838_v54  ;;  %v1770_v10 = vadd.f32 %v9645_v48, %v9550_v33  ;;  %4595 = vmatmul.mubr.f32.gmra.mxu0 %v9231_v35  ;;  %v9857_v18 = vsub.f32 %v9711_v28, %v9745_v11  ;;  %v1989_v48 = vadd.f32 %v1988_v37, %v1870_v60  ;;  %v11898_v33 = vld [vmem:[#allocation51_spill] sm:$0xff]  ;;  %v4723_v60 = vld [vmem:[%s9405_s4 + $0x28] sm:$0xff] }
 0x1b1   : > { %4958 = vmatpush1.msra.mxu1 %v11895_v23  ;;  %v9852_v24 = vsub.f32 %v9749_v49, %v11896_v45  ;;  %4809 = vmatpush1.msra.mxu0 %v11898_v33  ;;  %v11899_v29 = vand.u32 4294901760, %v9651_v57  ;;  %v9864_v23 = vadd.f32 %v9636_v31, %v2083_v9  ;;  %v2088_v61 = vadd.f32 %v2087_v13, %v1987_v26  ;;  %v2230_v38 = vpop.f32.mrf.mxu0  ;;  %v2089_v37 = vpop.f32.mrf.mxu1  ;;  %v11904_v13 = vld [vmem:[#allocation56_spill] sm:$0xff]  ;;  %v4722_v45 = vld [vmem:[%s9405_s4 + $0x20] sm:$0xff] }
 0x1b2   : > { %11897 = vst [vmem:[#allocation69_spill] sm:$0xff] %v9857_v18  ;;  %4811 = vmatprep.subr.mxu0 %v9629_v46  ;;  %v11901_v28 = vand.u32 4294901760, %v9642_v22  ;;  %v9872_v57 = vand.u32 4294901760, %v9841_v7  ;;  %v9878_v26 = vsub.f32 %v9759_v8, %v9791_v30  ;;  %v1879_v9 = vadd.f32 %v9730_v19, %v1770_v10  ;;  %4683 = vmatprep.mubr.f32.mxu1 %v11862_v25 }
 0x1b3   : > { %4964 = vmatprep.subr.mxu1 %v11899_v29  ;;  %11900 = vst [vmem:[#allocation51_spill] sm:$0xff] %v9864_v23  ;;  %v9874_v29 = vand.u32 4294901760, %v4726_v62  ;;  %4813 = vmatpush1.msra.mxu0 %v11904_v13  ;;  %v9884_v22 = vadd.f32 %v9608_v12, %v2088_v61  ;;  %v9888_v23 = vand.u32 4294901760, %v4714_v32  ;;  %v11907_v46 = vand.u32 4294901760, %v9656_v27  ;;  %v9893_v8 = vpop.f32.mrf.mxu0  ;;  %v2094_v19 = vpop.f32.mrf.mxu1 }
 0x1b4   : > { %4970 = vmatpush1.msra.mxu1 %v11901_v28  ;;  %11902 = vst [vmem:[#allocation70_spill] sm:$0xff] %v9872_v57  ;;  %v2090_v28 = vadd.f32 %v2089_v37, %v1989_v48  ;;  %11908 = vst [vmem:[#allocation74_spill] sm:$0xff] %v9893_v8  ;;  %v9896_v10 = vsub.f32 %v4730_v58, %v9838_v54  ;;  %v11909_v61 = vand.u32 4294901760, %v9742_v16  ;;  %4815 = vmatprep.subr.mxu0 %v9658_v47  ;;  %v4719_v8 = vld [vmem:[%s9405_s4 + $0x8] sm:$0xff] }
 0x1b5   : > { %11903 = vst [vmem:[#allocation71_spill] sm:$0xff] %v9874_v29  ;;  %11905 = vst [vmem:[#allocation72_spill] sm:$0xff] %v9884_v22  ;;  %4976 = vmatprep.subr.mxu1 %v11907_v46  ;;  %4685 = vmatmul.mubr.f32.gmra.mxu1 %v9216_v6  ;;  %v9906_v22 = vsub.f32 %v9794_v50, %v9825_v2  ;;  %v1996_v46 = vadd.f32 %v1995_v56, %v1879_v9  ;;  %v11910_v6 = vand.u32 4294901760, %v9672_v44  ;;  %v2241_v50 = vpop.f32.mrf.mxu0  ;;  %v2096_v13 = vpop.f32.mrf.mxu1  ;;  %v11919_v44 = vld [vmem:[#allocation63_spill] sm:$0xff] }
 0x1b6   : > { %11906 = vst [vmem:[#allocation73_spill] sm:$0xff] %v9888_v23  ;;  %v9901_v48 = vsub.f32 %v9742_v16, %v11909_v61  ;;  %v9912_v27 = vadd.f32 %v9636_v31, %v2090_v28  ;;  %v2095_v58 = vadd.f32 %v2094_v19, %v1994_v34  ;;  %v5029_v61 = vand.u32 4294901760, %v9830_v0  ;;  %4817 = vmatpush1.msra.mxu0 %v9678_v20  ;;  %v4718_v34 = vld [vmem:[%s9405_s4] sm:$0xff]  ;;  %v11915_v0 = vld [vmem:[#allocation60_spill] sm:$0xff] }
 0x1b7   : > { %4982 = vmatpush1.msra.mxu1 %v11910_v6  ;;  %v11912_v37 = vand.u32 4294901760, %v9683_v53  ;;  %v9920_v56 = vsub.f32 %v4726_v62, %v9874_v29  ;;  %v9922_v9 = vand.u32 4294901760, %v4723_v60  ;;  %v9925_v28 = vand.u32 4294901760, %v4722_v45  ;;  %4819 = vmatprep.subr.mxu0 %v9697_v17  ;;  %v2345_v20 = vpop.f32.mrf.mxu1 }
 0x1b8   : > { %11911 = vst [vmem:[#allocation75_spill] sm:$0xff] %v9912_v27  ;;  %v11916_v19 = vand.u32 4294901760, %v11915_v0  ;;  %v9932_v53 = vadd.f32 %v9608_v12, %v2095_v58  ;;  %v9936_v62 = vsub.f32 %v4714_v32, %v9888_v23  ;;  %4690 = vmatprep.mubr.f32.mxu1 %v11862_v25  ;;  %4821 = vmatpush1.msra.mxu0 %v11919_v44  ;;  %v9940_v27 = vpop.f32.mrf.mxu0  ;;  %v11921_v17 = vand.u32 4294901760, %v9857_v18 }
 0x1b9   : > { %4988 = vmatprep.subr.mxu1 %v11912_v37  ;;  %11913 = vst [vmem:[#allocation76_spill] sm:$0xff] %v9922_v9  ;;  %11914 = vst [vmem:[#allocation77_spill] sm:$0xff] %v9925_v28  ;;  %v2097_v37 = vadd.f32 %v2096_v13, %v1996_v46  ;;  %v9950_v13 = vsub.f32 %v9841_v7, %v9872_v57  ;;  %v11923_v32 = vand.u32 4294901760, %v9708_v5  ;;  %4692 = vmatmul.mubr.f32.gmra.mxu1 %v9231_v35 }
 0x1ba   : > { %4994 = vmatpush1.msra.mxu1 %v11916_v19  ;;  %11917 = vst [vmem:[#allocation60_spill] sm:$0xff] %v9932_v53  ;;  %11918 = vst [vmem:[#allocation78_spill] sm:$0xff] %v9936_v62  ;;  %v5046_v0 = vsub.f32 %v9857_v18, %v11921_v17  ;;  %v9945_v19 = vand.u32 4294901760, %v4719_v8  ;;  %v9958_v58 = vadd.f32 %v2345_v20, %v2230_v38  ;;  %v9960_v6 = vand.u32 4294901760, %v4718_v34  ;;  %v2252_v7 = vpop.f32.mrf.mxu0 }
 0x1bb   : > { %11920 = vst [vmem:[#allocation63_spill] sm:$0xff] %v9940_v27  ;;  %5000 = vmatprep.subr.mxu1 %v11923_v32  ;;  %v9956_v46 = vadd.f32 %v9636_v31, %v2097_v37  ;;  %4823 = vmatprep.subr.mxu0 %v9745_v11  ;;  %v11926_v12 = vand.u32 4294901760, %v9724_v1  ;;  %v5035_v5 = vand.u32 4294901760, %v9852_v24  ;;  %v9967_v32 = vpop.f32.mrf.mxu1  ;;  %v11928_v35 = vand.u32 4294901760, %v9802_v59 }
 0x1bc   : > { %11922 = vst [vmem:[#allocation79_spill] sm:$0xff] %v9945_v19  ;;  %11925 = vst [vmem:[#allocation81_spill] sm:$0xff] %v9960_v6  ;;  %v9974_v38 = vsub.f32 %v4723_v60, %v9922_v9  ;;  %4825 = vmatpush1.msra.mxu0 %v9756_v63  ;;  %v11929_v37 = vand.u32 4294901760, %v9778_v41  ;;  %v5041_v1 = vand.u32 4294901760, %v9901_v48  ;;  %v9981_v24 = vsub.f32 %v4722_v45, %v9925_v28  ;;  %v9992_v20 = vpop.f32.mrf.mxu0 }
 0x1bd   : > { %11924 = vst [vmem:[#allocation80_spill] sm:$0xff] %v9956_v46  ;;  %5006 = vmatpush1.msra.mxu1 %v11926_v12  ;;  %11927 = vst [vmem:[#allocation82_spill] sm:$0xff] %v9967_v32  ;;  %v5052_v31 = vsub.f32 %v9802_v59, %v11928_v35  ;;  %v11930_v12 = vand.u32 4294901760, %v9878_v26  ;;  %v9987_v35 = vand.u32 4294901760, %v9936_v62  ;;  %4827 = vmatprep.subr.mxu0 %v9791_v30  ;;  %v11932_v60 = vand.u32 4294901760, %v9770_v14 }
 0x1be   : > { %5012 = vmatprep.subr.mxu1 %v11929_v37  ;;  %11933 = vst [vmem:[#allocation84_spill] sm:$0xff] %v9992_v20  ;;  %v5047_v41 = vand.u32 4294901760, %v5046_v0  ;;  %v2352_v37 = vpop.f32.mrf.mxu1  ;;  %v11934_v48 = vand.u32 4294901760, %v9822_v3  ;;  %4829 = vmatpush1.msra.mxu0 %v9780_v15  ;;  %v11935_v32 = vand.u32 4294901760, %v9807_v55  ;;  %v11936_v0 = vand.u32 4294901760, %v9906_v22  ;;  %v2263_v27 = vpop.f32.mrf.mxu0 }
 0x1bf   : > { %v5058_v17 = vsub.f32 %v9878_v26, %v11930_v12  ;;  %11931 = vst [vmem:[#allocation83_spill] sm:$0xff] %v9987_v35  ;;  %5018 = vmatpush1.msra.mxu1 %v11932_v60  ;;  %v9999_v12 = vsub.f32 %v4719_v8, %v9945_v19  ;;  %v2353_v14 = vadd.f32 %v2352_v37, %v2241_v50  ;;  %v5053_v8 = vand.u32 4294901760, %v5052_v31 }
 0x1c0   : > { %v5064_v45 = vsub.f32 %v9822_v3, %v11934_v48  ;;  %5024 = vmatprep.subr.mxu1 %v11935_v32  ;;  %v10005_v60 = vsub.f32 %v4718_v34, %v9960_v6  ;;  %v5070_v20 = vsub.f32 %v9906_v22, %v11936_v0  ;;  %4831 = vmatprep.subr.mxu0 %v9825_v2  ;;  %v10012_v46 = vpop.f32.mrf.mxu1  ;;  %v11938_v55 = vand.u32 4294901760, %v9896_v10  ;;  %v10023_v31 = vpop.f32.mrf.mxu0 }
 0x1c1   : > { %5030 = vmatpush1.msra.mxu1 %v5029_v61  ;;  %11937 = vst [vmem:[#allocation85_spill] sm:$0xff] %v10012_v46  ;;  %4833 = vmatpush1.msra.mxu0 %v9838_v54  ;;  %v5059_v32 = vand.u32 4294901760, %v5058_v17  ;;  %v4882_v37 = vsub.f32 %v9936_v62, %v9987_v35  ;;  %11939 = vst [vmem:[#allocation86_spill] sm:$0xff] %v10023_v31  ;;  %v11941_v0 = vand.u32 4294901760, %v9920_v56 }
 0x1c2   : > { %v5076_v50 = vsub.f32 %v9896_v10, %v11938_v55  ;;  %5036 = vmatprep.subr.mxu1 %v5035_v5  ;;  %4835 = vmatprep.subr.mxu0 %v9872_v57  ;;  %v5065_v61 = vand.u32 4294901760, %v5064_v45  ;;  %v2359_v48 = vpop.f32.mrf.mxu1  ;;  %v11940_v55 = vand.u32 4294901760, %v9950_v13  ;;  %v5071_v17 = vand.u32 4294901760, %v5070_v20  ;;  %v2443_v31 = vpop.f32.mrf.mxu0 }
 0x1c3   : > { %5042 = vmatpush1.msra.mxu1 %v5041_v1  ;;  %4837 = vmatpush1.msra.mxu0 %v9874_v29  ;;  %v2360_v5 = vadd.f32 %v2359_v48, %v2252_v7  ;;  %v5088_v53 = vsub.f32 %v9920_v56, %v11941_v0  ;;  %v2444_v7 = vadd.f32 %v2443_v31, %v9958_v58  ;;  %v10042_v20 = vand.u32 4294901760, %v4882_v37 }
 0x1c4   : > { %v5082_v34 = vsub.f32 %v9950_v13, %v11940_v55  ;;  %5048 = vmatprep.subr.mxu1 %v5047_v41  ;;  %4839 = vmatprep.subr.mxu0 %v9922_v9  ;;  %v5077_v45 = vand.u32 4294901760, %v5076_v50  ;;  %v10035_v35 = vpop.f32.mrf.mxu1  ;;  %v11943_v55 = vand.u32 4294901760, %v9974_v38  ;;  %v11945_v41 = vand.u32 4294901760, %v9981_v24  ;;  %v10048_v50 = vpop.f32.mrf.mxu0 }
 0x1c5   : > { %5054 = vmatpush1.msra.mxu1 %v5053_v8  ;;  %11942 = vst [vmem:[#allocation87_spill] sm:$0xff] %v10035_v35  ;;  %4841 = vmatpush1.msra.mxu0 %v9925_v28  ;;  %11944 = vst [vmem:[#allocation88_spill] sm:$0xff] %v10042_v20  ;;  %v5089_v58 = vand.u32 4294901760, %v5088_v53  ;;  %v11948_v37 = vand.u32 4294901760, %v10005_v60  ;;  %v11950_v35 = vld [vmem:[#allocation33_spill] sm:$0xff] }
 0x1c6   : > { %v5094_v46 = vsub.f32 %v9974_v38, %v11943_v55  ;;  %5060 = vmatprep.subr.mxu1 %v5059_v32  ;;  %v5100_v48 = vsub.f32 %v9981_v24, %v11945_v41  ;;  %4843 = vmatprep.subr.mxu0 %v9945_v19  ;;  %v5083_v8 = vand.u32 4294901760, %v5082_v34  ;;  %11946 = vst [vmem:[#allocation89_spill] sm:$0xff] %v10048_v50  ;;  %v2366_v0 = vpop.f32.mrf.mxu1  ;;  %v11947_v55 = vand.u32 4294901760, %v9999_v12  ;;  %v4715_v41 = vld [vmem:[%s8504_s11 + $0x8] sm:$0xff]  ;;  %v11955_v19 = vld [vmem:[#allocation39_spill] sm:$0xff] }
 0x1c7   : > { %5066 = vmatpush1.msra.mxu1 %v5065_v61  ;;  %4845 = vmatpush1.msra.mxu0 %v9960_v6  ;;  %v2367_v32 = vadd.f32 %v2366_v0, %v2263_v27  ;;  %v5112_v31 = vsub.f32 %v10005_v60, %v11948_v37  ;;  %v2451_v61 = vpop.f32.mrf.mxu0  ;;  %v11951_v27 = vld [vmem:[#allocation35_spill] sm:$0xff]  ;;  %v10066_v6 = vand.u32 4294901760, %v4715_v41 }
 0x1c8   : > { %v5106_v1 = vsub.f32 %v9999_v12, %v11947_v55  ;;  %5072 = vmatprep.subr.mxu1 %v5071_v17  ;;  %4878 = vmatprep.mubr.f32.mxu0 %v11862_v25  ;;  %v5095_v34 = vand.u32 4294901760, %v5094_v46  ;;  %v10059_v50 = vpop.f32.mrf.mxu1  ;;  %v5101_v55 = vand.u32 4294901760, %v5100_v48  ;;  %v2452_v17 = vadd.f32 %v2451_v61, %v2353_v14  ;;  %v11954_v46 = vld [vmem:[#allocation38_spill] sm:$0xff]  ;;  %v4716_v61 = vld [vmem:[%s8504_s11 + $0x10] sm:$0xff] }
 0x1c9   : > { %5078 = vmatpush1.msra.mxu1 %v5077_v45  ;;  %11949 = vst [vmem:[#allocation90_spill] sm:$0xff] %v10059_v50  ;;  %5178 = vmatprep.subr.mxu0 %v11950_v35  ;;  %v10064_v0 = vpop.f32.mrf.mxu0  ;;  %11953 = vst [vmem:[#allocation35_spill] sm:$0xff] %v10066_v6  ;;  %v5113_v45 = vand.u32 4294901760, %v5112_v31  ;;  %v10078_v31 = vsub.f32 %v4715_v41, %v10066_v6 }
 0x1ca   : > { %4884 = vmatmul.mubr.f32.vlgmr.msra.gmra.mxu0 %v10042_v20  ;;  %5084 = vmatprep.subr.mxu1 %v5083_v8  ;;  %v5107_v53 = vand.u32 4294901760, %v5106_v1  ;;  %11952 = vst [vmem:[#allocation33_spill] sm:$0xff] %v10064_v0  ;;  %v2543_v37 = vpop.f32.mrf.mxu1  ;;  %v11957_v8 = vld [vmem:[#allocation41_spill] sm:$0xff]  ;;  %v11958_v20 = vld [vmem:[#allocation43_spill] sm:$0xff] }
 0x1cb   : > { %5181 = vmatpush1.msra.mxu0 %v11951_v27  ;;  %5090 = vmatpush1.msra.mxu1 %v5089_v58  ;;  %v2544_v50 = vadd.f32 %v2543_v37, %v2444_v7  ;;  %v2459_v48 = vpop.f32.mrf.mxu0  ;;  %11960 = vst [vmem:[#allocation91_spill] sm:$0xff] %v10078_v31  ;;  %v11964_v37 = vld [vmem:[#allocation46_spill] sm:$0xff] }
 0x1cc   : > { %5184 = vmatprep.subr.mxu0 %v11954_v46  ;;  %5096 = vmatprep.subr.mxu1 %v5095_v34  ;;  %v10070_v14 = vpop.f32.mrf.mxu1  ;;  %v2460_v1 = vadd.f32 %v2459_v48, %v2360_v5  ;;  %v11961_v34 = vld [vmem:[#allocation48_spill] sm:$0xff] }
 0x1cd   : > { %5187 = vmatpush1.msra.mxu0 %v11955_v19  ;;  %11956 = vst [vmem:[#allocation38_spill] sm:$0xff] %v10070_v14  ;;  %5102 = vmatpush1.msra.mxu1 %v5101_v55  ;;  %v10075_v0 = vpop.f32.mrf.mxu0  ;;  %v11965_v48 = vld [vmem:[#allocation28_spill] sm:$0xff]  ;;  %v10094_v14 = vand.u32 4294901760, %v10078_v31 }
 0x1ce   : > { %5190 = vmatprep.subr.mxu0 %v11957_v8  ;;  %5108 = vmatprep.subr.mxu1 %v5107_v53  ;;  %11959 = vst [vmem:[#allocation39_spill] sm:$0xff] %v10075_v0  ;;  %v2552_v58 = vpop.f32.mrf.mxu1  ;;  %v10085_v53 = vand.u32 4294901760, %v4716_v61  ;;  %v11966_v0 = vld [vmem:[#allocation49_spill] sm:$0xff] }
 0x1cf   : > { %5193 = vmatpush1.msra.mxu0 %v11958_v20  ;;  %5114 = vmatpush1.msra.mxu1 %v5113_v45  ;;  %v2553_v7 = vadd.f32 %v2552_v58, %v2452_v17  ;;  %v2467_v5 = vpop.f32.mrf.mxu0  ;;  %v11967_v45 = vld [vmem:[#allocation30_spill] sm:$0xff]  ;;  %11969 = vst [vmem:[#allocation95_spill] sm:$0xff] %v10094_v14 }
 0x1d0   : > { %5147 = vmatprep.mubr.f32.mxu1 %v11862_v25  ;;  %5196 = vmatprep.subr.mxu0 %v11961_v34  ;;  %v10083_v55 = vpop.f32.mrf.mxu1  ;;  %11963 = vst [vmem:[#allocation93_spill] sm:$0xff] %v10085_v53  ;;  %v2468_v41 = vadd.f32 %v2467_v5, %v2367_v32  ;;  %v4717_v20 = vld [vmem:[%s8504_s11 + $0x18] sm:$0xff] }
 0x1d1   : > { %5149 = vmatmul.mubr.f32.vlgmr.msra.gmra.mxu1 %v9888_v23  ;;  %11962 = vst [vmem:[#allocation92_spill] sm:$0xff] %v10083_v55  ;;  %5199 = vmatpush1.msra.mxu0 %v11964_v37  ;;  %v10091_v17 = vpop.f32.mrf.mxu0  ;;  %v11970_v23 = vld [vmem:[#allocation50_spill] sm:$0xff]  ;;  %v11971_v55 = vld [vmem:[#allocation32_spill] sm:$0xff]  ;;  %v11972_v37 = vld [vmem:[#allocation53_spill] sm:$0xff] }
 0x1d2   : > { %5338 = vmatprep.subr.mxu1 %v11965_v48  ;;  %5202 = vmatprep.subr.mxu0 %v11966_v0  ;;  %11968 = vst [vmem:[#allocation94_spill] sm:$0xff] %v10091_v17  ;;  %v2561_v58 = vpop.f32.mrf.mxu1  ;;  %v11973_v48 = vld [vmem:[#allocation36_spill] sm:$0xff]  ;;  %v11977_v0 = vld [vmem:[#allocation37_spill] sm:$0xff] }
 0x1d3   : > { %5340 = vmatpush1.msra.mxu1 %v11967_v45  ;;  %5205 = vmatpush1.msra.mxu0 %v11970_v23  ;;  %v2562_v34 = vadd.f32 %v2561_v58, %v2460_v1  ;;  %v2648_v32 = vpop.f32.mrf.mxu0  ;;  %v10104_v45 = vsub.f32 %v4716_v61, %v10085_v53  ;;  %v11976_v17 = vld [vmem:[#allocation52_spill] sm:$0xff]  ;;  %v11978_v23 = vld [vmem:[#allocation54_spill] sm:$0xff] }
 0x1d4   : > { %5342 = vmatprep.subr.mxu1 %v11971_v55  ;;  %5208 = vmatprep.subr.mxu0 %v11972_v37  ;;  %v10101_v5 = vpop.f32.mrf.mxu1  ;;  %v2649_v8 = vadd.f32 %v2648_v32, %v2544_v50  ;;  %v11979_v55 = vld [vmem:[#allocation40_spill] sm:$0xff]  ;;  %v10114_v37 = vand.u32 4294901760, %v4717_v20 }
 0x1d5   : > { %5344 = vmatpush1.msra.mxu1 %v11973_v48  ;;  %11974 = vst [vmem:[#allocation96_spill] sm:$0xff] %v10101_v5  ;;  %11975 = vst [vmem:[#allocation97_spill] sm:$0xff] %v10104_v45  ;;  %5211 = vmatpush1.msra.mxu0 %v11976_v17  ;;  %v10110_v1 = vpop.f32.mrf.mxu0  ;;  %v4893_v48 = vsub.f32 %v10078_v31, %v10094_v14  ;;  %v11982_v5 = vld [vmem:[#allocation55_spill] sm:$0xff]  ;;  %v11983_v61 = vld [vmem:[#allocation44_spill] sm:$0xff] }
 0x1d6   : > { %5346 = vmatprep.subr.mxu1 %v11977_v0  ;;  %5214 = vmatprep.subr.mxu0 %v11978_v23  ;;  %11980 = vst [vmem:[#allocation37_spill] sm:$0xff] %v10110_v1  ;;  %v2570_v58 = vpop.f32.mrf.mxu1  ;;  %11981 = vst [vmem:[#allocation98_spill] sm:$0xff] %v10114_v37  ;;  %v10123_v1 = vand.u32 4294901760, %v10104_v45 }
 0x1d7   : > { %5348 = vmatpush1.msra.mxu1 %v11979_v55  ;;  %5217 = vmatpush1.msra.mxu0 %v11982_v5  ;;  %v2571_v17 = vadd.f32 %v2570_v58, %v2468_v41  ;;  %v2655_v50 = vpop.f32.mrf.mxu0  ;;  %v11986_v55 = vld [vmem:[#allocation45_spill] sm:$0xff]  ;;  %v10129_v41 = vand.u32 4294901760, %v4893_v48 }
 0x1d8   : > { %5350 = vmatprep.subr.mxu1 %v11983_v61  ;;  %5220 = vmatprep.subr.mxu0 %v9691_v39  ;;  %v10120_v32 = vpop.f32.mrf.mxu1  ;;  %11985 = vst [vmem:[#allocation44_spill] sm:$0xff] %v10123_v1  ;;  %v2656_v23 = vadd.f32 %v2655_v50, %v2553_v7  ;;  %v10134_v39 = vsub.f32 %v4717_v20, %v10114_v37  ;;  %v11991_v20 = vld [vmem:[#allocation23_spill] sm:$0xff] }
 0x1d9   : > { %5352 = vmatpush1.msra.mxu1 %v9491_v21  ;;  %11984 = vst [vmem:[#allocation55_spill] sm:$0xff] %v10120_v32  ;;  %5223 = vmatpush1.msra.mxu0 %v9667_v36  ;;  %11987 = vst [vmem:[#allocation45_spill] sm:$0xff] %v10129_v41  ;;  %v10131_v58 = vpop.f32.mrf.mxu0  ;;  %v4904_v7 = vsub.f32 %v10104_v45, %v10123_v1 }
 0x1da   : > { %5354 = vmatprep.subr.mxu1 %v11986_v55  ;;  %5226 = vmatprep.subr.mxu0 %v9714_v52  ;;  %11988 = vst [vmem:[#allocation99_spill] sm:$0xff] %v10131_v58  ;;  %v2743_v21 = vpop.f32.mrf.mxu1  ;;  %11989 = vst [vmem:[#allocation100_spill] sm:$0xff] %v10134_v39 }
 0x1db   : > { %5356 = vmatpush1.msra.mxu1 %v9534_v40  ;;  %5229 = vmatpush1.msra.mxu0 %v9733_v4  ;;  %v2744_v32 = vadd.f32 %v2743_v21, %v2649_v8  ;;  %v2662_v48 = vpop.f32.mrf.mxu0 }
 0x1dc   : > { %5358 = vmatprep.subr.mxu1 %v9540_v42  ;;  %5232 = vmatprep.subr.mxu0 %v9749_v49  ;;  %v10142_v50 = vpop.f32.mrf.mxu1  ;;  %v2663_v4 = vadd.f32 %v2662_v48, %v2562_v34  ;;  %v10160_v34 = vand.u32 4294901760, %v4904_v7 }
 0x1dd   : > { %5360 = vmatpush1.msra.mxu1 %v9547_v51  ;;  %11990 = vst [vmem:[#allocation101_spill] sm:$0xff] %v10142_v50  ;;  %4889 = vmatprep.mubr.f32.mxu0 %v11862_v25  ;;  %v10147_v58 = vadd.f32 %v2744_v32, %v11991_v20  ;;  %v10151_v21 = vpop.f32.mrf.mxu0  ;;  %v10154_v51 = vand.u32 4294901760, %v10134_v39  ;;  %v11995_v32 = vld [vmem:[#allocation57_spill] sm:$0xff] }
 0x1de   : > { %5235 = vmatpush1.msra.mxu0 %v9742_v16  ;;  %5362 = vmatprep.subr.mxu1 %v9559_v43  ;;  %11993 = vst [vmem:[#allocation102_spill] sm:$0xff] %v10151_v21  ;;  %v2750_v8 = vpop.f32.mrf.mxu1  ;;  %11996 = vst [vmem:[#allocation57_spill] sm:$0xff] %v10160_v34  ;;  %v11999_v21 = vld [vmem:[#allocation25_spill] sm:$0xff] }
 0x1df   : > { %11992 = vst [vmem:[#allocation23_spill] sm:$0xff] %v10147_v58  ;;  %4895 = vmatmul.mubr.f32.gmra.mxu0 %v10129_v41  ;;  %11994 = vst [vmem:[#allocation103_spill] sm:$0xff] %v10154_v51  ;;  %5238 = vmatprep.subr.mxu0 %v9857_v18  ;;  %v2751_v50 = vadd.f32 %v2750_v8, %v2656_v23  ;;  %v2669_v48 = vpop.f32.mrf.mxu0  ;;  %v11998_v41 = vld [vmem:[#allocation56_spill] sm:$0xff]  ;;  %v4915_v23 = vsub.f32 %v10134_v39, %v10154_v51 }
 0x1e0   : > { %5364 = vmatpush1.msra.mxu1 %v11898_v33  ;;  %5241 = vmatpush1.msra.mxu0 %v9802_v59  ;;  %v10162_v20 = vpop.f32.mrf.mxu1  ;;  %v2670_v18 = vadd.f32 %v2669_v48, %v2571_v17  ;;  %v12004_v48 = vld [vmem:[#allocation27_spill] sm:$0xff] }
 0x1e1   : > { %5366 = vmatprep.subr.mxu1 %v11995_v32  ;;  %11997 = vst [vmem:[#allocation104_spill] sm:$0xff] %v10162_v20  ;;  %5244 = vmatprep.subr.mxu0 %v9878_v26  ;;  %v10167_v58 = vadd.f32 %v2751_v50, %v11999_v21  ;;  %v10173_v7 = vpop.f32.mrf.mxu0  ;;  %v12003_v21 = vld [vmem:[#allocation59_spill] sm:$0xff] }
 0x1e2   : > { %5368 = vmatpush1.msra.mxu1 %v11998_v41  ;;  %4900 = vmatprep.mubr.f32.mxu0 %v11862_v25  ;;  %12001 = vst [vmem:[#allocation25_spill] sm:$0xff] %v10173_v7  ;;  %v2757_v8 = vpop.f32.mrf.mxu1  ;;  %v12006_v7 = vld [vmem:[#allocation62_spill] sm:$0xff] }
 0x1e3   : > { %12000 = vst [vmem:[#allocation56_spill] sm:$0xff] %v10167_v58  ;;  %5154 = vmatprep.mubr.f32.mxu1 %v11862_v25  ;;  %5247 = vmatpush1.msra.mxu0 %v9822_v3  ;;  %v2758_v20 = vadd.f32 %v2757_v8, %v2663_v4  ;;  %v2842_v17 = vpop.f32.mrf.mxu0 }
 0x1e4   : > { %5370 = vmatprep.subr.mxu1 %v9658_v47  ;;  %4906 = vmatmul.mubr.f32.gmra.mxu0 %v10160_v34  ;;  %v10179_v50 = vpop.f32.mrf.mxu1  ;;  %v10188_v47 = vand.u32 4294901760, %v4915_v23  ;;  %v12010_v23 = vld [vmem:[#allocation31_spill] sm:$0xff] }
 0x1e5   : > { %5156 = vmatmul.mubr.f32.gmra.mxu1 %v10066_v6  ;;  %12002 = vst [vmem:[#allocation105_spill] sm:$0xff] %v10179_v50  ;;  %5250 = vmatprep.subr.mxu0 %v9906_v22  ;;  %v10184_v58 = vadd.f32 %v2758_v20, %v12004_v48  ;;  %v10190_v4 = vpop.f32.mrf.mxu0 }
 0x1e6   : > { %5372 = vmatpush1.msra.mxu1 %v12003_v21  ;;  %5253 = vmatpush1.msra.mxu0 %v9896_v10  ;;  %12007 = vst [vmem:[#allocation27_spill] sm:$0xff] %v10188_v47  ;;  %12008 = vst [vmem:[#allocation62_spill] sm:$0xff] %v10190_v4  ;;  %v2764_v8 = vpop.f32.mrf.mxu1 }
 0x1e7   : > { %12005 = vst [vmem:[#allocation59_spill] sm:$0xff] %v10184_v58  ;;  %5374 = vmatprep.subr.mxu1 %v12006_v7  ;;  %5256 = vmatprep.subr.mxu0 %v9950_v13  ;;  %v2765_v34 = vadd.f32 %v2764_v8, %v2670_v18  ;;  %v2853_v20 = vpop.f32.mrf.mxu0 }
 0x1e8   : > { %5376 = vmatpush1.msra.mxu1 %v11919_v44  ;;  %4911 = vmatprep.mubr.f32.mxu0 %v11862_v25  ;;  %v10196_v48 = vpop.f32.mrf.mxu1 }
 0x1e9   : > { %5161 = vmatprep.mubr.f32.mxu1 %v11862_v25  ;;  %12009 = vst [vmem:[#allocation106_spill] sm:$0xff] %v10196_v48  ;;  %5259 = vmatpush1.msra.mxu0 %v9920_v56  ;;  %v10201_v58 = vadd.f32 %v2765_v34, %v12010_v23  ;;  %v10205_v4 = vpop.f32.mrf.mxu0 }
 0x1ea   : > { %5378 = vmatprep.subr.mxu1 %v9745_v11  ;;  %4917 = vmatmul.mubr.f32.gmra.mxu0 %v10188_v47  ;;  %12012 = vst [vmem:[#allocation107_spill] sm:$0xff] %v10205_v4  ;;  %v2957_v18 = vpop.f32.mrf.mxu1  ;;  %v12015_v47 = vand.u32 4294901760, %v11950_v35 }
 0x1eb   : > { %12011 = vst [vmem:[#allocation31_spill] sm:$0xff] %v10201_v58  ;;  %5163 = vmatmul.mubr.f32.gmra.mxu1 %v10085_v53  ;;  %5262 = vmatprep.subr.mxu0 %v9974_v38  ;;  %v2958_v8 = vadd.f32 %v2957_v18, %v2842_v17  ;;  %v2864_v48 = vpop.f32.mrf.mxu0 }
 0x1ec   : > { %5380 = vmatpush1.msra.mxu1 %v9756_v63  ;;  %5265 = vmatpush1.msra.mxu0 %v9981_v24  ;;  %v10211_v50 = vpop.f32.mrf.mxu1 }
 0x1ed   : > { %5382 = vmatprep.subr.mxu1 %v9791_v30  ;;  %12013 = vst [vmem:[#allocation108_spill] sm:$0xff] %v10211_v50  ;;  %5268 = vmatprep.subr.mxu0 %v9999_v12  ;;  %v10217_v34 = vpop.f32.mrf.mxu0  ;;  %v12016_v50 = vand.u32 4294901760, %v11951_v27 }
 0x1ee   : > { %5384 = vmatpush1.msra.mxu1 %v9780_v15  ;;  %5168 = vmatprep.mubr.f32.mxu1 %v11862_v25  ;;  %v2964_v23 = vpop.f32.mrf.mxu1 }
 0x1ef   : > { %5271 = vmatpush1.msra.mxu0 %v10005_v60  ;;  %5304 = vmatprep.mubr.f32.mxu0 %v11862_v25  ;;  %v2965_v17 = vadd.f32 %v2964_v23, %v2853_v20  ;;  %v2875_v18 = vpop.f32.mrf.mxu0  ;;  %v12017_v23 = vand.u32 4294901760, %v11954_v46 }
 0x1f0   : > { %5386 = vmatprep.subr.mxu1 %v9825_v2  ;;  %5170 = vmatmul.mubr.f32.gmra.mxu1 %v10114_v37  ;;  %v10223_v4 = vpop.f32.mrf.mxu1 }
 0x1f1   : > { %5307 = vmatmul.mubr.f32.vlgmr.msra.gmra.mxu0 %v9936_v62  ;;  %12014 = vst [vmem:[#allocation109_spill] sm:$0xff] %v10223_v4  ;;  %5388 = vmatpush1.msra.mxu1 %v9838_v54  ;;  %v10231_v58 = vpop.f32.mrf.mxu0  ;;  %v12018_v4 = vand.u32 4294901760, %v11955_v19  ;;  %v12025_v19 = vld [vmem:[#allocation81_spill] sm:$0xff] }
 0x1f2   : > { %5473 = vmatprep.subr.mxu0 %v12015_v47  ;;  %5390 = vmatprep.subr.mxu1 %v9872_v57  ;;  %v2971_v20 = vpop.f32.mrf.mxu1  ;;  %v4773_v57 = vld [vmem:[%s9405_s4 + $0x1b8] sm:$0xff] }
 0x1f3   : > { %5477 = vmatpush1.msra.mxu0 %v12016_v50  ;;  %5392 = vmatpush1.msra.mxu1 %v9874_v29  ;;  %v2972_v62 = vadd.f32 %v2971_v20, %v2864_v48  ;;  %v3055_v35 = vpop.f32.mrf.mxu0  ;;  %v12019_v50 = vld [vmem:[#allocation41_spill] sm:$0xff]  ;;  %v12022_v20 = vld [vmem:[#allocation79_spill] sm:$0xff] }
 0x1f4   : > { %5481 = vmatprep.subr.mxu0 %v12017_v23  ;;  %5312 = vmatprep.mubr.f32.mxu0 %v11862_v25  ;;  %v10238_v47 = vpop.f32.mrf.mxu1  ;;  %v3056_v27 = vadd.f32 %v3055_v35, %v2958_v8  ;;  %v12020_v37 = vand.u32 4294901760, %v12019_v50  ;;  %v12023_v23 = vld [vmem:[#allocation43_spill] sm:$0xff]  ;;  %v12026_v35 = vld [vmem:[#allocation48_spill] sm:$0xff] }
 0x1f5   : > { %5394 = vmatprep.subr.mxu1 %v9922_v9  ;;  %5485 = vmatpush1.msra.mxu0 %v12018_v4  ;;  %v10246_v46 = vpop.f32.mrf.mxu0  ;;  %v12024_v53 = vand.u32 4294901760, %v12023_v23 }
 0x1f6   : > { %5396 = vmatpush1.msra.mxu1 %v9925_v28  ;;  %5315 = vmatmul.mubr.f32.gmra.mxu0 %v10078_v31  ;;  %12021 = vst [vmem:[#allocation41_spill] sm:$0xff] %v10246_v46  ;;  %v2978_v48 = vpop.f32.mrf.mxu1  ;;  %v12028_v31 = vld [vmem:[#allocation83_spill] sm:$0xff]  ;;  %v12029_v46 = vld [vmem:[#allocation46_spill] sm:$0xff] }
 0x1f7   : > { %5489 = vmatprep.subr.mxu0 %v12020_v37  ;;  %5398 = vmatprep.subr.mxu1 %v12022_v20  ;;  %v2979_v6 = vadd.f32 %v2978_v48, %v2875_v18  ;;  %v3063_v4 = vpop.f32.mrf.mxu0  ;;  %v12027_v37 = vand.u32 4294901760, %v12026_v35  ;;  %v12030_v23 = vand.u32 4294901760, %v12029_v46  ;;  %v4781_v48 = vld [vmem:[%s9405_s4 + $0x1f8] sm:$0xff]  ;;  %v12033_v20 = vld [vmem:[#allocation49_spill] sm:$0xff] }
 0x1f8   : > { %5493 = vmatpush1.msra.mxu0 %v12024_v53  ;;  %5400 = vmatpush1.msra.mxu1 %v12025_v19  ;;  %v10253_v8 = vpop.f32.mrf.mxu1  ;;  %v3064_v50 = vadd.f32 %v3063_v4, %v2965_v17  ;;  %v12032_v19 = vld [vmem:[#allocation28_spill] sm:$0xff]  ;;  %v12034_v28 = vand.u32 4294901760, %v12033_v20  ;;  %v12035_v17 = vld [vmem:[#allocation30_spill] sm:$0xff]  ;;  %v10275_v29 = vand.u32 4294901760, %v4781_v48  ;;  %v12041_v20 = vld [vmem:[#allocation53_spill] sm:$0xff] }
 0x1f9   : > { %5433 = vmatprep.mubr.f32.mxu1 %v11862_v25  ;;  %5497 = vmatprep.subr.mxu0 %v12027_v37  ;;  %v10261_v53 = vpop.f32.mrf.mxu0  ;;  %v4780_v37 = vld [vmem:[%s9405_s4 + $0x1f0] sm:$0xff] }
 0x1fa   : > { %5320 = vmatprep.mubr.f32.mxu0 %v11862_v25  ;;  %5437 = vmatmul.mubr.f32.vlgmr.msra.gmra.mxu1 %v12028_v31  ;;  %12031 = vst [vmem:[#allocation43_spill] sm:$0xff] %v10261_v53  ;;  %v3155_v18 = vpop.f32.mrf.mxu1  ;;  %v12039_v53 = vld [vmem:[#allocation32_spill] sm:$0xff]  ;;  %12040 = vst [vmem:[#allocation46_spill] sm:$0xff] %v10275_v29 }
 0x1fb   : > { %5501 = vmatpush1.msra.mxu0 %v12030_v23  ;;  %5660 = vmatprep.subr.mxu1 %v12032_v19  ;;  %v3156_v35 = vadd.f32 %v3155_v18, %v3056_v27  ;;  %v3071_v4 = vpop.f32.mrf.mxu0  ;;  %v12037_v23 = vld [vmem:[#allocation50_spill] sm:$0xff]  ;;  %v4776_v27 = vld [vmem:[%s9405_s4 + $0x1d0] sm:$0xff] }
 0x1fc   : > { %5323 = vmatmul.mubr.f32.gmra.mxu0 %v10104_v45  ;;  %5505 = vmatprep.subr.mxu0 %v12034_v28  ;;  %v10270_v46 = vpop.f32.mrf.mxu1  ;;  %v12038_v31 = vand.u32 4294901760, %v12037_v23  ;;  %v3072_v9 = vadd.f32 %v3071_v4, %v2972_v62  ;;  %v4777_v19 = vld [vmem:[%s9405_s4 + $0x1d8] sm:$0xff]  ;;  %v12042_v28 = vand.u32 4294901760, %v12041_v20  ;;  %v10284_v45 = vand.u32 4294901760, %v4780_v37  ;;  %v12044_v23 = vld [vmem:[#allocation36_spill] sm:$0xff] }
 0x1fd   : > { %5662 = vmatpush1.msra.mxu1 %v12035_v17  ;;  %12036 = vst [vmem:[#allocation48_spill] sm:$0xff] %v10270_v46  ;;  %5442 = vmatprep.mubr.f32.mxu1 %v11862_v25  ;;  %v10282_v18 = vpop.f32.mrf.mxu0  ;;  %v10293_v20 = vand.u32 4294901760, %v4777_v19 }
 0x1fe   : > { %5509 = vmatpush1.msra.mxu0 %v12038_v31  ;;  %5664 = vmatprep.subr.mxu1 %v12039_v53  ;;  %v3164_v17 = vpop.f32.mrf.mxu1  ;;  %12043 = vst [vmem:[#allocation28_spill] sm:$0xff] %v10284_v45  ;;  %v12045_v31 = vld [vmem:[#allocation52_spill] sm:$0xff]  ;;  %v10309_v54 = vsub.f32 %v4780_v37, %v10284_v45 }
 0x1ff   : > { %5513 = vmatprep.subr.mxu0 %v12042_v28  ;;  %5666 = vmatpush1.msra.mxu1 %v12044_v23  ;;  %v3165_v62 = vadd.f32 %v3164_v17, %v3064_v50  ;;  %v12046_v53 = vand.u32 4294901760, %v12045_v31  ;;  %v3079_v4 = vpop.f32.mrf.mxu0  ;;  %12048 = vst [vmem:[#allocation30_spill] sm:$0xff] %v10293_v20  ;;  %v10295_v28 = vand.u32 4294901760, %v4776_v27  ;;  %v10301_v50 = vsub.f32 %v4781_v48, %v10275_v29  ;;  %v12051_v17 = vld [vmem:[#allocation54_spill] sm:$0xff] }
 0x200   : > { %5328 = vmatprep.mubr.f32.mxu0 %v11862_v25  ;;  %5446 = vmatmul.mubr.f32.gmra.mxu1 %v10094_v14  ;;  %v10291_v46 = vpop.f32.mrf.mxu1  ;;  %v3080_v23 = vadd.f32 %v3079_v4, %v2979_v6  ;;  %v12052_v31 = vand.u32 4294901760, %v12051_v17  ;;  %12054 = vst [vmem:[#allocation53_spill] sm:$0xff] %v10309_v54  ;;  %v10316_v48 = vand.u32 4294901760, %v4773_v57  ;;  %v4772_v4 = vld [vmem:[%s9405_s4 + $0x1b0] sm:$0xff] }
 0x201   : > { %5517 = vmatpush1.msra.mxu0 %v12046_v53  ;;  %12047 = vst [vmem:[#allocation49_spill] sm:$0xff] %v10291_v46  ;;  %12049 = vst [vmem:[#allocation50_spill] sm:$0xff] %v10295_v28  ;;  %5668 = vmatprep.subr.mxu1 %v11977_v0  ;;  %v12053_v53 = vld [vmem:[#allocation40_spill] sm:$0xff]  ;;  %v10306_v14 = vpop.f32.mrf.mxu0  ;;  %v12055_v0 = vand.u32 4294901760, %v11982_v5  ;;  %v12057_v17 = vld [vmem:[#allocation61_spill] sm:$0xff]  ;;  %v10325_v37 = vsub.f32 %v4776_v27, %v10295_v28  ;;  %v10328_v5 = vsub.f32 %v4777_v19, %v10293_v20 }
 0x202   : > { %5331 = vmatmul.mubr.f32.gmra.mxu0 %v10134_v39  ;;  %12050 = vst [vmem:[#allocation32_spill] sm:$0xff] %v10301_v50  ;;  %5521 = vmatprep.subr.mxu0 %v12052_v31  ;;  %v3173_v46 = vpop.f32.mrf.mxu1  ;;  %12056 = vst [vmem:[#allocation36_spill] sm:$0xff] %v10316_v48  ;;  %v12058_v31 = vand.u32 4294901760, %v12057_v17  ;;  %v10339_v28 = vand.u32 4294901760, %v4772_v4  ;;  %v4769_v19 = vld [vmem:[%s9405_s4 + $0x198] sm:$0xff] }
 0x203   : > { %5670 = vmatpush1.msra.mxu1 %v12053_v53  ;;  %5525 = vmatpush1.msra.mxu0 %v12055_v0  ;;  %v10314_v6 = vadd.f32 %v3173_v46, %v3072_v9  ;;  %v3260_v53 = vpop.f32.mrf.mxu0  ;;  %12059 = vst [vmem:[#allocation52_spill] sm:$0xff] %v10328_v5  ;;  %v12060_v9 = vld [vmem:[#allocation42_spill] sm:$0xff]  ;;  %v4768_v0 = vld [vmem:[%s9405_s4 + $0x190] sm:$0xff] }
 0x204   : > { %5672 = vmatprep.subr.mxu1 %v11983_v61  ;;  %5451 = vmatprep.mubr.f32.mxu1 %v11862_v25  ;;  %v10322_v39 = vpop.f32.mrf.mxu1  ;;  %v12061_v61 = vand.u32 4294901760, %v9667_v36  ;;  %v3261_v46 = vadd.f32 %v3260_v53, %v3156_v35  ;;  %12063 = vst [vmem:[#allocation40_spill] sm:$0xff] %v10339_v28  ;;  %v4764_v35 = vld [vmem:[%s9405_s4 + $0x170] sm:$0xff]  ;;  %v10349_v53 = vsub.f32 %v4773_v57, %v10316_v48  ;;  %v12069_v57 = vand.u32 4294901760, %v9749_v49 }
 0x205   : > { %5529 = vmatprep.subr.mxu0 %v12058_v31  ;;  %5674 = vmatpush1.msra.mxu1 %v12060_v9  ;;  %v10337_v27 = vpop.f32.mrf.mxu0  ;;  %v12064_v9 = vand.u32 4294901760, %v9714_v52  ;;  %v10357_v52 = vand.u32 4294901760, %v4768_v0 }
 0x206   : > { %5533 = vmatpush1.msra.mxu0 %v12061_v61  ;;  %5455 = vmatmul.mubr.f32.gmra.mxu1 %v10123_v1  ;;  %12062 = vst [vmem:[#allocation54_spill] sm:$0xff] %v10337_v27  ;;  %v3182_v31 = vpop.f32.mrf.mxu1  ;;  %12065 = vst [vmem:[#allocation61_spill] sm:$0xff] %v10349_v53  ;;  %v12072_v27 = vand.u32 4294901760, %v9742_v16  ;;  %v10387_v16 = vand.u32 4294901760, %v4769_v19 }
 0x207   : > { %5676 = vmatprep.subr.mxu1 %v11986_v55  ;;  %5537 = vmatprep.subr.mxu0 %v12064_v9  ;;  %v10345_v36 = vadd.f32 %v3182_v31, %v3080_v23  ;;  %v12066_v55 = vld [vmem:[#allocation64_spill] sm:$0xff]  ;;  %v3267_v17 = vpop.f32.mrf.mxu0  ;;  %12068 = vst [vmem:[#allocation42_spill] sm:$0xff] %v10357_v52  ;;  %v12070_v9 = vand.u32 4294901760, %v10301_v50  ;;  %v10374_v23 = vsub.f32 %v4772_v4, %v10339_v28  ;;  %v4760_v4 = vld [vmem:[%s9405_s4 + $0x150] sm:$0xff] }
 0x208   : > { %5678 = vmatpush1.msra.mxu1 %v9534_v40  ;;  %v12067_v61 = vand.u32 4294901760, %v12066_v55  ;;  %v10354_v1 = vpop.f32.mrf.mxu1  ;;  %5460 = vmatprep.mubr.f32.mxu1 %v11862_v25  ;;  %v3268_v31 = vadd.f32 %v3267_v17, %v3165_v62  ;;  %v4765_v55 = vld [vmem:[%s9405_s4 + $0x178] sm:$0xff]  ;;  %v10383_v17 = vand.u32 4294901760, %v4764_v35  ;;  %12077 = vst [vmem:[#allocation111_spill] sm:$0xff] %v10387_v16 }
 0x209   : > { %5680 = vmatprep.subr.mxu1 %v9540_v42  ;;  %v10367_v42 = vsub.f32 %v10301_v50, %v12070_v9  ;;  %12073 = vst [vmem:[#allocation64_spill] sm:$0xff] %v10374_v23  ;;  %v10376_v40 = vpop.f32.mrf.mxu0  ;;  %v12084_v9 = vand.u32 4294901760, %v10325_v37  ;;  %5630 = vmatprep.mubr.f32.mxu0 %v11862_v25 }
 0x20a   : > { %5541 = vmatpush1.msra.mxu0 %v12067_v61  ;;  %v12071_v61 = vld [vmem:[#allocation47_spill] sm:$0xff]  ;;  %v3355_v49 = vpop.f32.mrf.mxu1  ;;  %12076 = vst [vmem:[#allocation110_spill] sm:$0xff] %v10383_v17  ;;  %5464 = vmatmul.mubr.f32.gmra.mxu1 %v10154_v51  ;;  %v12082_v51 = vand.u32 4294901760, %v10328_v5 }
 0x20b   : > { %5545 = vmatprep.subr.mxu0 %v12069_v57  ;;  %5682 = vmatpush1.msra.mxu1 %v12071_v61  ;;  %12074 = vst [vmem:[#allocation47_spill] sm:$0xff] %v10376_v40  ;;  %v12075_v57 = vand.u32 4294901760, %v10309_v54  ;;  %v12078_v61 = vld [vmem:[#allocation69_spill] sm:$0xff]  ;;  %v3274_v50 = vpop.f32.mrf.mxu0 }
 0x20c   : > { %5549 = vmatpush1.msra.mxu0 %v12072_v27  ;;  %5684 = vmatprep.subr.mxu1 %v9559_v43  ;;  %v3356_v27 = vadd.f32 %v3355_v49, %v3261_v46  ;;  %v12079_v40 = vand.u32 4294901760, %v12078_v61  ;;  %v10402_v43 = vsub.f32 %v10328_v5, %v12082_v51  ;;  %v10404_v46 = vpop.f32.mrf.mxu1  ;;  %v4761_v49 = vld [vmem:[%s9405_s4 + $0x158] sm:$0xff]  ;;  %v12086_v51 = vld [vmem:[#allocation65_spill] sm:$0xff] }
 0x20d   : > { %v10381_v62 = vsub.f32 %v10309_v54, %v12075_v57  ;;  %5686 = vmatpush1.msra.mxu1 %v11898_v33  ;;  %v10395_v57 = vsub.f32 %v4768_v0, %v10357_v52  ;;  %v10397_v54 = vand.u32 4294901760, %v4765_v55  ;;  %12083 = vst [vmem:[#allocation113_spill] sm:$0xff] %v10404_v46  ;;  %v2974_v33 = vadd.f32 %v10238_v47, %v10217_v34  ;;  %v3276_v47 = vpop.f32.mrf.mxu0 }
 0x20e   : > { %5553 = vmatprep.subr.mxu0 %v12079_v40  ;;  %v10410_v40 = vsub.f32 %v10325_v37, %v12084_v9  ;;  %v12085_v0 = vand.u32 4294901760, %v9802_v59  ;;  %5688 = vmatprep.subr.mxu1 %v11995_v32  ;;  %v10419_v5 = vadd.f32 %v3356_v27, %v12086_v51  ;;  %v3275_v46 = vadd.f32 %v3274_v50, %v10314_v6  ;;  %v3362_v9 = vpop.f32.mrf.mxu1  ;;  %v12092_v50 = vld [vmem:[#allocation58_spill] sm:$0xff]  ;;  %v4756_v51 = vld [vmem:[%s9405_s4 + $0x130] sm:$0xff] }
 0x20f   : > { %12080 = vst [vmem:[#allocation69_spill] sm:$0xff] %v10395_v57  ;;  %12081 = vst [vmem:[#allocation112_spill] sm:$0xff] %v10397_v54  ;;  %v12088_v52 = vand.u32 4294901760, %v9878_v26  ;;  %5690 = vmatpush1.msra.mxu1 %v11998_v41  ;;  %v10427_v59 = vsub.f32 %v4764_v35, %v10383_v17  ;;  %v10429_v32 = vand.u32 4294901760, %v4760_v4  ;;  %v11711_v27 = vand.u32 4294901760, %v10374_v23  ;;  %5755 = vmatprep.mubr.f32.mxu1 %v11862_v25 }
 0x210   : > { %5557 = vmatpush1.msra.mxu0 %v12085_v0  ;;  %12087 = vst [vmem:[#allocation65_spill] sm:$0xff] %v10419_v5  ;;  %v12091_v0 = vand.u32 4294901760, %v9822_v3  ;;  %5692 = vmatprep.subr.mxu1 %v12092_v50  ;;  %v3074_v26 = vadd.f32 %v10282_v18, %v2974_v33  ;;  %v10436_v6 = vand.u32 4294901760, %v4761_v49  ;;  %v12094_v41 = vand.u32 4294901760, %v10349_v53  ;;  %v3281_v33 = vpop.f32.mrf.mxu0  ;;  %v10453_v50 = vpop.f32.mrf.mxu1 }
 0x211   : > { %5561 = vmatprep.subr.mxu0 %v12088_v52  ;;  %12089 = vst [vmem:[#allocation114_spill] sm:$0xff] %v10427_v59  ;;  %12090 = vst [vmem:[#allocation115_spill] sm:$0xff] %v10429_v32  ;;  %v3363_v52 = vadd.f32 %v3362_v9, %v3268_v31  ;;  %v2981_v34 = vadd.f32 %v10253_v8, %v10231_v58  ;;  %v12095_v3 = vand.u32 4294901760, %v9906_v22  ;;  %5694 = vmatpush1.msra.mxu1 %v12003_v21  ;;  %v12100_v21 = vld [vmem:[#allocation67_spill] sm:$0xff] }
 0x212   : > { %5565 = vmatpush1.msra.mxu0 %v12091_v0  ;;  %12093 = vst [vmem:[#allocation58_spill] sm:$0xff] %v10436_v6  ;;  %v10441_v35 = vsub.f32 %v10349_v53, %v12094_v41  ;;  %v10451_v0 = vsub.f32 %v4769_v19, %v10387_v16  ;;  %12097 = vst [vmem:[#allocation117_spill] sm:$0xff] %v10453_v50  ;;  %v10456_v31 = vsub.f32 %v4765_v55, %v10397_v54  ;;  %v4757_v19 = vld [vmem:[%s9405_s4 + $0x138] sm:$0xff] }
 0x213   : > { %5569 = vmatprep.subr.mxu0 %v12095_v3  ;;  %v12099_v9 = vand.u32 4294901760, %v9896_v10  ;;  %5696 = vmatprep.subr.mxu1 %v12006_v7  ;;  %v3176_v22 = vadd.f32 %v10322_v39, %v3074_v26  ;;  %v10464_v8 = vadd.f32 %v3363_v52, %v12100_v21  ;;  %v3282_v41 = vadd.f32 %v3281_v33, %v10345_v36  ;;  %v3283_v26 = vpop.f32.mrf.mxu0  ;;  %v4752_v52 = vld [vmem:[%s9405_s4 + $0x110] sm:$0xff]  ;;  %v3369_v36 = vpop.f32.mrf.mxu1  ;;  %v12132_v50 = vld [vmem:[#allocation50_spill] sm:$0xff] }
 0x214   : > { %12096 = vst [vmem:[#allocation116_spill] sm:$0xff] %v10451_v0  ;;  %12098 = vst [vmem:[#allocation118_spill] sm:$0xff] %v10456_v31  ;;  %v12102_v3 = vand.u32 4294901760, %v9950_v13  ;;  %5698 = vmatpush1.msra.mxu1 %v11919_v44  ;;  %v10472_v10 = vsub.f32 %v4760_v4, %v10429_v32  ;;  %v10477_v39 = vsub.f32 %v10374_v23, %v11711_v27  ;;  %v10479_v7 = vand.u32 4294901760, %v4756_v51  ;;  %v12160_v23 = vld [vmem:[#allocation82_spill] sm:$0xff] }
 0x215   : > { %5573 = vmatpush1.msra.mxu0 %v12099_v9  ;;  %12101 = vst [vmem:[#allocation67_spill] sm:$0xff] %v10464_v8  ;;  %v11713_v55 = vand.u32 4294901760, %v10395_v57  ;;  %v12104_v13 = vand.u32 4294901760, %v9920_v56  ;;  %5700 = vmatprep.subr.mxu1 %v9745_v11  ;;  %v3082_v44 = vadd.f32 %v10306_v14, %v2981_v34  ;;  %v3277_v4 = vadd.f32 %v3276_v47, %v3176_v22  ;;  %v4753_v9 = vld [vmem:[%s9405_s4 + $0x118] sm:$0xff]  ;;  %v3497_v11 = vpop.f32.mrf.mxu0  ;;  %v3371_v34 = vpop.f32.mrf.mxu1 }
 0x216   : > { %5577 = vmatprep.subr.mxu0 %v12102_v3  ;;  %12103 = vst [vmem:[#allocation119_spill] sm:$0xff] %v10472_v10  ;;  %v3370_v21 = vadd.f32 %v3369_v36, %v3275_v46  ;;  %v12105_v3 = vand.u32 4294901760, %v9974_v38  ;;  %5702 = vmatpush1.msra.mxu1 %v9756_v63  ;;  %v10492_v27 = vand.u32 4294901760, %v4757_v19  ;;  %v11714_v56 = vand.u32 4294901760, %v10451_v0  ;;  %v12110_v63 = vld [vmem:[#allocation72_spill] sm:$0xff]  ;;  %v4749_v36 = vld [vmem:[%s9405_s4 + $0xf8] sm:$0xff] }
 0x217   : > { %5581 = vmatpush1.msra.mxu0 %v12104_v13  ;;  %v11712_v13 = vand.u32 4294901760, %v10456_v31  ;;  %v10497_v14 = vsub.f32 %v4761_v49, %v10436_v6  ;;  %v12108_v47 = vand.u32 4294901760, %v9981_v24  ;;  %5704 = vmatprep.subr.mxu1 %v9791_v30  ;;  %v3185_v38 = vadd.f32 %v10354_v1, %v3082_v44  ;;  %v3499_v44 = vpop.f32.mrf.mxu0 }
 0x218   : > { %5585 = vmatprep.subr.mxu0 %v12105_v3  ;;  %12106 = vst [vmem:[#allocation120_spill] sm:$0xff] %v10492_v27  ;;  %v10503_v46 = vand.u32 4294901760, %v4752_v52  ;;  %v10506_v22 = vadd.f32 %v3370_v21, %v12110_v63  ;;  %v3372_v3 = vadd.f32 %v3371_v34, %v3277_v4  ;;  %v12112_v33 = vand.u32 4294901760, %v9999_v12  ;;  %5706 = vmatpush1.msra.mxu1 %v9780_v15  ;;  %v3376_v4 = vpop.f32.mrf.mxu1 }
 0x219   : > { %12107 = vst [vmem:[#allocation121_spill] sm:$0xff] %v10497_v14  ;;  %5589 = vmatpush1.msra.mxu0 %v12108_v47  ;;  %v10513_v49 = vsub.f32 %v4756_v51, %v10479_v7  ;;  %v10515_v24 = vand.u32 4294901760, %v4753_v9  ;;  %v10520_v30 = vsub.f32 %v10395_v57, %v11713_v55  ;;  %v11715_v1 = vand.u32 4294901760, %v10427_v59  ;;  %5708 = vmatprep.subr.mxu1 %v9825_v2  ;;  %v12118_v47 = vld [vmem:[#allocation73_spill] sm:$0xff]  ;;  %v12123_v55 = vld [vmem:[#allocation60_spill] sm:$0xff] }
 0x21a   : > { %12109 = vst [vmem:[#allocation122_spill] sm:$0xff] %v10503_v46  ;;  %12111 = vst [vmem:[#allocation72_spill] sm:$0xff] %v10506_v22  ;;  %5593 = vmatprep.subr.mxu0 %v12112_v33  ;;  %v12115_v12 = vand.u32 4294901760, %v10005_v60  ;;  %v3284_v51 = vadd.f32 %v3283_v26, %v3185_v38  ;;  %v12116_v33 = vld [vmem:[#allocation75_spill] sm:$0xff]  ;;  %v3377_v34 = vadd.f32 %v3376_v4, %v3282_v41  ;;  %v10542_v26 = vand.u32 4294901760, %v4749_v36  ;;  %v4748_v38 = vld [vmem:[%s9405_s4 + $0xf0] sm:$0xff]  ;;  %v3508_v41 = vpop.f32.mrf.mxu0  ;;  %v3378_v2 = vpop.f32.mrf.mxu1 }
 0x21b   : > { %12113 = vst [vmem:[#allocation123_spill] sm:$0xff] %v10513_v49  ;;  %12114 = vst [vmem:[#allocation124_spill] sm:$0xff] %v10515_v24  ;;  %v10528_v21 = vadd.f32 %v3372_v3, %v12116_v33  ;;  %v10535_v63 = vsub.f32 %v10451_v0, %v11714_v56  ;;  %v10540_v60 = vsub.f32 %v10456_v31, %v11712_v13  ;;  %v12121_v4 = vld [vmem:[#allocation68_spill] sm:$0xff]  ;;  %v4744_v13 = vld [vmem:[%s9405_s4 + $0xd0] sm:$0xff]  ;;  %v12138_v5 = vand.u32 4294901760, %v10472_v10 }
 0x21c   : > { %5597 = vmatpush1.msra.mxu0 %v12115_v12  ;;  %12119 = vst [vmem:[#allocation125_spill] sm:$0xff] %v10542_v26  ;;  %v10546_v3 = vsub.f32 %v4757_v19, %v10492_v27  ;;  %5710 = vmatpush1.msra.mxu1 %v12121_v4  ;;  %v10551_v12 = vsub.f32 %v4752_v52, %v10503_v46  ;;  %v12125_v19 = vld [vmem:[#allocation70_spill] sm:$0xff]  ;;  %v3510_v61 = vpop.f32.mrf.mxu0  ;;  %v4740_v4 = vld [vmem:[%s9405_s4 + $0xb0] sm:$0xff] }
 0x21d   : > { %12117 = vst [vmem:[#allocation75_spill] sm:$0xff] %v10528_v21  ;;  %5632 = vmatmul.mubr.f32.vlgmr.msra.gmra.mxu0 %v12118_v47  ;;  %5785 = vmatprep.subr.mxu0 %v10275_v29  ;;  %v10556_v56 = vadd.f32 %v3377_v34, %v12123_v55  ;;  %v3379_v15 = vadd.f32 %v3378_v2, %v3284_v51  ;;  %v3622_v55 = vpop.f32.mrf.mxu1  ;;  %v12127_v34 = vld [vmem:[#allocation71_spill] sm:$0xff]  ;;  %v10572_v51 = vand.u32 4294901760, %v4748_v38  ;;  %v4745_v2 = vld [vmem:[%s9405_s4 + $0xd8] sm:$0xff]  ;;  %v10586_v21 = vand.u32 4294901760, %v4744_v13  ;;  %v12151_v57 = vld [vmem:[#allocation93_spill] sm:$0xff] }
 0x21e   : > { %12120 = vst [vmem:[#allocation126_spill] sm:$0xff] %v10546_v3  ;;  %12122 = vst [vmem:[#allocation68_spill] sm:$0xff] %v10551_v12  ;;  %5712 = vmatprep.subr.mxu1 %v12125_v19  ;;  %5787 = vmatpush1.msra.mxu0 %v10284_v45  ;;  %v10564_v52 = vsub.f32 %v10427_v59, %v11715_v1  ;;  %v10568_v18 = vsub.f32 %v4753_v9, %v10515_v24  ;;  %v12128_v1 = vld [vmem:[#allocation80_spill] sm:$0xff]  ;;  %v3519_v19 = vpop.f32.mrf.mxu0  ;;  %v10659_v59 = vld [vmem:[%s9405_s4 + $0x78] sm:$0xff] }
 0x21f   : > { %12124 = vst [vmem:[#allocation60_spill] sm:$0xff] %v10556_v56  ;;  %5714 = vmatpush1.msra.mxu1 %v12127_v34  ;;  %5789 = vmatprep.subr.mxu0 %v10293_v20  ;;  %v10578_v33 = vadd.f32 %v3379_v15, %v12128_v1  ;;  %v10580_v58 = vadd.f32 %v3622_v55, %v3497_v11  ;;  %v12130_v9 = vld [vmem:[#allocation76_spill] sm:$0xff]  ;;  %12131 = vst [vmem:[#allocation80_spill] sm:$0xff] %v10586_v21  ;;  %v3624_v8 = vpop.f32.mrf.mxu1  ;;  %v12133_v1 = vld [vmem:[#allocation77_spill] sm:$0xff]  ;;  %v12134_v11 = vand.u32 4294901760, %v10497_v14 }
 0x220   : > { %12126 = vst [vmem:[#allocation70_spill] sm:$0xff] %v10568_v18  ;;  %5637 = vmatprep.mubr.f32.mxu0 %v11862_v25  ;;  %5716 = vmatprep.subr.mxu1 %v12130_v9  ;;  %v10597_v55 = vld [vmem:[%s9405_s4 + $0xb8] sm:$0xff]  ;;  %v4736_v56 = vld [vmem:[%s9405_s4 + $0x90] sm:$0xff]  ;;  %v10602_v34 = vsub.f32 %v4749_v36, %v10542_v26  ;;  %v10604_v22 = vadd.f32 %v3624_v8, %v3499_v44  ;;  %v3521_v36 = vpop.f32.mrf.mxu0  ;;  %v12139_v8 = vld [vmem:[#allocation79_spill] sm:$0xff]  ;;  %v12141_v20 = vand.u32 4294901760, %v10513_v49  ;;  %v12144_v44 = vand.u32 4294901760, %v10546_v3 }
 0x221   : > { %12129 = vst [vmem:[#allocation71_spill] sm:$0xff] %v10578_v33  ;;  %5791 = vmatpush1.msra.mxu0 %v12132_v50  ;;  %5718 = vmatpush1.msra.mxu1 %v12133_v1  ;;  %v10594_v15 = vsub.f32 %v10497_v14, %v12134_v11  ;;  %v12136_v33 = vld [vmem:[#allocation35_spill] sm:$0xff]  ;;  %v10608_v1 = vand.u32 4294901760, %v4745_v2  ;;  %v10613_v11 = vsub.f32 %v10472_v10, %v12138_v5  ;;  %v10615_v50 = vand.u32 4294901760, %v4740_v4  ;;  %v3629_v14 = vpop.f32.mrf.mxu1  ;;  %v12142_v9 = vld [vmem:[#allocation81_spill] sm:$0xff]  ;;  %v12147_v31 = vld [vmem:[#allocation42_spill] sm:$0xff] }
 0x222   : > { %12135 = vst [vmem:[#allocation76_spill] sm:$0xff] %v10602_v34  ;;  %5639 = vmatmul.mubr.f32.gmra.mxu0 %v12136_v33  ;;  %5793 = vmatprep.subr.mxu0 %v10316_v48  ;;  %v10622_v48 = vsub.f32 %v4748_v38, %v10572_v51  ;;  %v10627_v5 = vsub.f32 %v10513_v49, %v12141_v20  ;;  %v10645_v20 = vld [vmem:[%s9405_s4 + $0x98] sm:$0xff]  ;;  %v10647_v49 = vand.u32 4294901760, %v4736_v56  ;;  %v12148_v29 = vand.u32 4294901760, %v10568_v18 }
 0x223   : > { %12137 = vst [vmem:[#allocation77_spill] sm:$0xff] %v10608_v1  ;;  %5720 = vmatprep.subr.mxu1 %v12139_v8  ;;  %5795 = vmatpush1.msra.mxu0 %v10339_v28  ;;  %v10629_v10 = vadd.f32 %v3629_v14, %v3508_v41  ;;  %v10634_v8 = vsub.f32 %v4744_v13, %v10586_v21  ;;  %v10642_v28 = vand.u32 4294901760, %v10597_v55  ;;  %v3530_v14 = vpop.f32.mrf.mxu0  ;;  %v3631_v41 = vpop.f32.mrf.mxu1 }
 0x224   : > { %12140 = vst [vmem:[#allocation79_spill] sm:$0xff] %v10622_v48  ;;  %5722 = vmatpush1.msra.mxu1 %v12142_v9  ;;  %v10639_v38 = vsub.f32 %v10546_v3, %v12144_v44  ;;  %12145 = vst [vmem:[#allocation127_spill] sm:$0xff] %v10647_v49  ;;  %5797 = vmatprep.subr.mxu0 %v10387_v16  ;;  %v12146_v9 = vand.u32 4294901760, %v10551_v12  ;;  %v10661_v45 = vadd.f32 %v3631_v41, %v3510_v61 }
 0x225   : > { %12143 = vst [vmem:[#allocation81_spill] sm:$0xff] %v10634_v8  ;;  %5644 = vmatprep.mubr.f32.mxu0 %v11862_v25  ;;  %5757 = vmatmul.mubr.f32.vlgmr.msra.gmra.mxu1 %v12118_v47  ;;  %v10667_v13 = vsub.f32 %v4740_v4, %v10615_v50  ;;  %v10675_v3 = vsub.f32 %v4745_v2, %v10608_v1  ;;  %v3636_v61 = vpop.f32.mrf.mxu1  ;;  %v12150_v41 = vand.u32 4294901760, %v10367_v42  ;;  %v10682_v4 = vand.u32 4294901760, %v10645_v20  ;;  %v4728_v42 = vld [vmem:[%s9405_s4 + $0x50] sm:$0xff] }
 0x226   : > { %v10655_v44 = vsub.f32 %v10551_v12, %v12146_v9  ;;  %5799 = vmatpush1.msra.mxu0 %v12147_v31  ;;  %v10672_v9 = vsub.f32 %v10568_v18, %v12148_v29  ;;  %v3532_v12 = vpop.f32.mrf.mxu0  ;;  %v4732_v29 = vld [vmem:[%s9405_s4 + $0x70] sm:$0xff]  ;;  %v10686_v18 = vadd.f32 %v3636_v61, %v3519_v19  ;;  %v12153_v2 = vand.u32 4294901760, %v10381_v62  ;;  %5762 = vmatprep.mubr.f32.mxu1 %v11862_v25 }
 0x227   : > { %12149 = vst [vmem:[#allocation128_spill] sm:$0xff] %v10675_v3  ;;  %5930 = vmatprep.subr.mxu1 %v12150_v41  ;;  %5646 = vmatmul.mubr.f32.gmra.mxu0 %v12151_v57  ;;  %12152 = vst [vmem:[#allocation129_spill] sm:$0xff] %v10682_v4  ;;  %v10693_v41 = vsub.f32 %v4736_v56, %v10647_v49  ;;  %v10696_v16 = vand.u32 4294901760, %v10659_v59  ;;  %v3638_v0 = vpop.f32.mrf.mxu1  ;;  %v12155_v19 = vand.u32 4294901760, %v10402_v43  ;;  %v12156_v61 = vand.u32 4294901760, %v10602_v34  ;;  %v10709_v56 = vld [vmem:[%s9405_s4 + $0x58] sm:$0xff] }
 0x228   : > { %5801 = vmatprep.subr.mxu0 %v10397_v54  ;;  %5936 = vmatpush1.msra.mxu1 %v12153_v2  ;;  %v3724_v31 = vpop.f32.mrf.mxu0  ;;  %v10713_v54 = vadd.f32 %v3638_v0, %v3521_v36  ;;  %v12158_v0 = vand.u32 4294901760, %v10622_v48  ;;  %v4724_v43 = vld [vmem:[%s9405_s4 + $0x30] sm:$0xff]  ;;  %v10752_v36 = vand.u32 4294901760, %v4728_v42 }
 0x229   : > { %12154 = vst [vmem:[#allocation130_spill] sm:$0xff] %v10696_v16  ;;  %5803 = vmatpush1.msra.mxu0 %v10383_v17  ;;  %5942 = vmatprep.subr.mxu1 %v12155_v19  ;;  %v10706_v2 = vsub.f32 %v10602_v34, %v12156_v61  ;;  %v3725_v47 = vadd.f32 %v3724_v31, %v10580_v58  ;;  %v10718_v19 = vand.u32 4294901760, %v4732_v29  ;;  %v3643_v34 = vpop.f32.mrf.mxu1  ;;  %v12157_v31 = vand.u32 4294901760, %v10410_v40 }
 0x22a   : > { %5805 = vmatprep.subr.mxu0 %v10436_v6  ;;  %v10723_v61 = vsub.f32 %v10597_v55, %v10642_v28  ;;  %v3726_v17 = vpop.f32.mrf.mxu0  ;;  %5651 = vmatprep.mubr.f32.mxu0 %v11862_v25  ;;  %v10731_v58 = vsub.f32 %v10622_v48, %v12158_v0  ;;  %v10736_v55 = vadd.f32 %v3643_v34, %v3530_v14  ;;  %v12159_v6 = vld [vmem:[#allocation74_spill] sm:$0xff]  ;;  %v10745_v40 = vand.u32 4294901760, %v10709_v56 }
 0x22b   : > { %5948 = vmatpush1.msra.mxu1 %v12157_v31  ;;  %v3727_v62 = vadd.f32 %v3726_v17, %v10604_v22  ;;  %v10740_v53 = vadd.f32 %v12160_v23, %v12159_v6  ;;  %5807 = vmatpush1.msra.mxu0 %v10429_v32  ;;  %v12161_v31 = vand.u32 4294901760, %v10634_v8  ;;  %12162 = vst [vmem:[#allocation74_spill] sm:$0xff] %v10752_v36  ;;  %v3645_v22 = vpop.f32.mrf.mxu1  ;;  %v12163_v34 = vand.u32 4294901760, %v10441_v35  ;;  %v12164_v23 = vld [vmem:[#allocation98_spill] sm:$0xff] }
 0x22c   : > { %5764 = vmatmul.mubr.f32.gmra.mxu1 %v12136_v33  ;;  %v3732_v17 = vpop.f32.mrf.mxu0  ;;  %5653 = vmatmul.mubr.f32.gmra.mxu0 %v12164_v23  ;;  %v10759_v14 = vld [vmem:[%s9405_s4 + $0x38] sm:$0xff]  ;;  %v10763_v33 = vsub.f32 %v10645_v20, %v10682_v4  ;;  %v12166_v32 = vand.u32 4294901760, %v10477_v39  ;;  %v10772_v35 = vsub.f32 %v4732_v29, %v10718_v19  ;;  %v10780_v48 = vand.u32 4294901760, %v4724_v43  ;;  %v12170_v20 = vld [vmem:[#allocation63_spill] sm:$0xff] }
 0x22d   : > { %v10750_v0 = vsub.f32 %v10634_v8, %v12161_v31  ;;  %5954 = vmatprep.subr.mxu1 %v12163_v34  ;;  %v3733_v31 = vadd.f32 %v3732_v17, %v10629_v10  ;;  %v10766_v8 = vadd.f32 %v3645_v22, %v3532_v12  ;;  %5809 = vmatprep.subr.mxu0 %v10492_v27  ;;  %v12167_v34 = vand.u32 4294901760, %v10675_v3  ;;  %v3826_v12 = vpop.f32.mrf.mxu1  ;;  %v12171_v27 = vld [vmem:[#allocation85_spill] sm:$0xff] }
 0x22e   : > { %12165 = vst [vmem:[#allocation82_spill] sm:$0xff] %v10763_v33  ;;  %5960 = vmatpush1.msra.mxu1 %v12166_v32  ;;  %v3734_v10 = vpop.f32.mrf.mxu0  ;;  %5811 = vmatpush1.msra.mxu0 %v10479_v7  ;;  %v12168_v39 = vand.u32 4294901760, %v10535_v63  ;;  %v12169_v29 = vand.u32 4294901760, %v10667_v13  ;;  %v4721_v32 = vld [vmem:[%s9405_s4 + $0x18] sm:$0xff] }
 0x22f   : > { %v10777_v6 = vsub.f32 %v10675_v3, %v12167_v34  ;;  %v3735_v22 = vadd.f32 %v3734_v10, %v10661_v45  ;;  %v10792_v34 = vadd.f32 %v3826_v12, %v3725_v47  ;;  %v10796_v3 = vadd.f32 %v12171_v27, %v12170_v20  ;;  %5769 = vmatprep.mubr.f32.mxu1 %v11862_v25  ;;  %v3828_v47 = vpop.f32.mrf.mxu1  ;;  %v4720_v20 = vld [vmem:[%s9405_s4 + $0x10] sm:$0xff]  ;;  %s8163_s4 = sshll.u32 %s8259_s26, 4  ;;  %s8164_s4 = int_to_ptr.vmem [resolvable:$false] %s8163_s4 }
 0x230   : > { %5966 = vmatprep.subr.mxu1 %v12168_v39  ;;  %v10789_v17 = vsub.f32 %v10667_v13, %v12169_v29  ;;  %5813 = vmatprep.subr.mxu0 %v10515_v24  ;;  %v10802_v39 = vsub.f32 %v4728_v42, %v10752_v36  ;;  %v10805_v29 = vand.u32 4294901760, %v10759_v14  ;;  %v3740_v45 = vpop.f32.mrf.mxu0  ;;  %v12173_v10 = vand.u32 4294901760, %v10520_v30  ;;  %v12177_v30 = vld [vmem:[#allocation84_spill] sm:$0xff]  ;;  %s8165_s15 = scalar_lea.vmem %s8164_s4, 1024  ;;  %p8166_p2 = scmp.lt.s32.totalorder %s11523_s23, %s8164_s4 }
 0x231   : > { %5815 = vmatpush1.msra.mxu0 %v10503_v46  ;;  %v10815_v12 = vsub.f32 %v10659_v59, %v10696_v16  ;;  %v3741_v42 = vadd.f32 %v3740_v45, %v10686_v18  ;;  %v10818_v63 = vadd.f32 %v3828_v47, %v3727_v62  ;;  %5771 = vmatmul.mubr.f32.gmra.mxu1 %v12151_v57  ;;  %v12174_v24 = vand.u32 4294901760, %v10540_v60  ;;  %v3835_v62 = vpop.f32.mrf.mxu1  ;;  %p8167_p7 = scmp.lt.s32.totalorder %s8165_s15, %s8159_s20 }
 0x232   : > { %12172 = vst [vmem:[#allocation63_spill] sm:$0xff] %v10802_v39  ;;  %5972 = vmatpush1.msra.mxu1 %v12173_v10  ;;  %v12175_v10 = vand.u32 4294901760, %v10723_v61  ;;  %v10830_v46 = vsub.f32 %v4724_v43, %v10780_v48  ;;  %v3742_v18 = vpop.f32.mrf.mxu0  ;;  %5817 = vmatprep.subr.mxu0 %v10542_v26  ;;  %v12176_v45 = vand.u32 4294901760, %v10564_v52  ;;  %v10837_v60 = vand.u32 4294901760, %v4721_v32  ;;  %v12178_v43 = vld [vmem:[#allocation87_spill] sm:$0xff] }
 0x233   : > { %5978 = vmatprep.subr.mxu1 %v12174_v24  ;;  %v3743_v47 = vadd.f32 %v3742_v18, %v10713_v54  ;;  %v10844_v57 = vadd.f32 %v12178_v43, %v12177_v30  ;;  %5819 = vmatpush1.msra.mxu0 %v10572_v51  ;;  %v12179_v59 = vand.u32 4294901760, %v10594_v15  ;;  %v10849_v26 = vand.u32 4294901760, %v4720_v20  ;;  %p8168_p10 = por %p8167_p7, %p8166_p2 }
 0x234   : > { %v10827_v27 = vsub.f32 %v10723_v61, %v12175_v10  ;;  %5984 = vmatpush1.msra.mxu1 %v12176_v45  ;;  %v10840_v10 = vadd.f32 %v3835_v62, %v3733_v31  ;;  %v10854_v45 = vsub.f32 %v10709_v56, %v10745_v40  ;;  %v3748_v54 = vpop.f32.mrf.mxu0  ;;  %v3837_v31 = vpop.f32.mrf.mxu1  ;;  %5776 = vmatprep.mubr.f32.mxu1 %v11862_v25  ;;  %v12181_v30 = vand.u32 4294901760, %v10763_v33  ;;  %v12182_v56 = vld [vmem:[#allocation89_spill] sm:$0xff] }
 0x235   : > { %5990 = vmatprep.subr.mxu1 %v12179_v59  ;;  %5821 = vmatprep.subr.mxu0 %v10608_v1  ;;  %v3749_v59 = vadd.f32 %v3748_v54, %v10736_v55  ;;  %v10865_v62 = vadd.f32 %v3837_v31, %v3735_v22  ;;  %v2446_v43 = vadd.f32 %v12182_v56, %v10740_v53  ;;  %v12183_v24 = vand.u32 4294901760, %v10613_v11  ;;  %v12186_v56 = vld [vmem:[#allocation38_spill] sm:$0xff]  ;;  %p8169_p13 = pnand %p8168_p10, %p8162_p4 }
 0x236   : > { %12180 = vst [vmem:[#allocation85_spill] sm:$0xff] %v10854_v45  ;;  %v10861_v18 = vsub.f32 %v10763_v33, %v12181_v30  ;;  %5823 = vmatpush1.msra.mxu0 %v10586_v21  ;;  %v12184_v52 = vand.u32 4294901760, %v10693_v41  ;;  %v10880_v55 = vsub.f32 %v10759_v14, %v10805_v29  ;;  %v3750_v22 = vpop.f32.mrf.mxu0  ;;  %v3844_v54 = vpop.f32.mrf.mxu1  ;;  %5778 = vmatmul.mubr.f32.gmra.mxu1 %v12164_v23  ;;  %v12185_v53 = vand.u32 4294901760, %v10639_v38 }
 0x237   : > { %5996 = vmatpush1.msra.mxu1 %v12183_v24  ;;  %v6049_v11 = vand.u32 4294901760, %v10827_v27  ;;  %v10887_v24 = vsub.f32 %v4721_v32, %v10837_v60  ;;  %v10890_v31 = vadd.f32 %v3844_v54, %v3741_v42  ;;  %v2546_v30 = vadd.f32 %v12186_v56, %v2446_v43  ;;  %5825 = vmatprep.subr.mxu0 %v10642_v28  ;;  %v12192_v56 = vld [vmem:[#allocation33_spill] sm:$0xff] }
 0x238   : > { %v10875_v1 = vsub.f32 %v10693_v41, %v12184_v52  ;;  %6002 = vmatprep.subr.mxu1 %v12185_v53  ;;  %v3751_v52 = vadd.f32 %v3750_v22, %v10766_v8  ;;  %v12187_v14 = vand.u32 4294901760, %v10627_v5  ;;  %v10897_v15 = vsub.f32 %v4720_v20, %v10849_v26  ;;  %v3937_v8 = vpop.f32.mrf.mxu0  ;;  %v3846_v42 = vpop.f32.mrf.mxu1  ;;  %5827 = vmatpush1.msra.mxu0 %v10615_v50 }
 0x239   : > { %v12189_v38 = vand.u32 4294901760, %v10772_v35  ;;  %v12190_v43 = vand.u32 4294901760, %v10672_v9  ;;  %v12191_v5 = vand.u32 4294901760, %v10815_v12  ;;  %v3938_v54 = vadd.f32 %v3937_v8, %v10792_v34  ;;  %5829 = vmatprep.subr.mxu0 %v10682_v4  ;;  %v12196_v8 = vld [vmem:[#allocation86_spill] sm:$0xff]  ;;  %5880 = vmatprep.mubr.f32.mxu0 %v11862_v25 }
 0x23a   : > { %6008 = vmatpush1.msra.mxu1 %v12187_v14  ;;  %12188 = vst [vmem:[#allocation84_spill] sm:$0xff] %v10897_v15  ;;  %v10915_v53 = vadd.f32 %v3846_v42, %v3743_v47  ;;  %v2454_v14 = vadd.f32 %v12192_v56, %v10796_v3  ;;  %v12194_v9 = vand.u32 4294901760, %v10655_v44  ;;  %v3939_v34 = vpop.f32.mrf.mxu0  ;;  %v3853_v47 = vpop.f32.mrf.mxu1  ;;  %v12197_v42 = vld [vmem:[#allocation90_spill] sm:$0xff]  ;;  %5831 = vmatpush1.msra.mxu0 %v10647_v49  ;;  %v12198_v3 = vand.u32 4294901760, %v10706_v2 }
 0x23b   : > { %v10902_v27 = vsub.f32 %v10772_v35, %v12189_v38  ;;  %6014 = vmatprep.subr.mxu1 %v12190_v43  ;;  %v10911_v22 = vsub.f32 %v10815_v12, %v12191_v5  ;;  %v12193_v38 = vld [vmem:[#allocation37_spill] sm:$0xff]  ;;  %v12195_v43 = vand.u32 4294901760, %v10802_v39  ;;  %v2369_v23 = vadd.f32 %v12197_v42, %v12196_v8  ;;  %5833 = vmatprep.subr.mxu0 %v10696_v16 }
 0x23c   : > { %v2651_v32 = vadd.f32 %v12193_v38, %v2546_v30  ;;  %6020 = vmatpush1.msra.mxu1 %v12194_v9  ;;  %v11786_v44 = vand.u32 4294901760, %v10887_v24  ;;  %v3940_v30 = vadd.f32 %v3939_v34, %v10818_v63  ;;  %v10936_v56 = vadd.f32 %v3853_v47, %v3749_v59  ;;  %v12199_v38 = vld [vmem:[#allocation92_spill] sm:$0xff]  ;;  %v3855_v63 = vpop.f32.mrf.mxu1  ;;  %5835 = vmatpush1.msra.mxu0 %v10718_v19  ;;  %v12205_v34 = vld [vmem:[#allocation39_spill] sm:$0xff] }
 0x23d   : > { %v10926_v5 = vsub.f32 %v10802_v39, %v12195_v43  ;;  %6026 = vmatprep.subr.mxu1 %v12198_v3  ;;  %v2555_v9 = vadd.f32 %v12199_v38, %v2454_v14  ;;  %v12200_v43 = vld [vmem:[#allocation101_spill] sm:$0xff]  ;;  %v12201_v4 = vand.u32 4294901760, %v10731_v58  ;;  %v6061_v8 = vand.u32 4294901760, %v10861_v18  ;;  %v3944_v3 = vpop.f32.mrf.mxu0  ;;  %v12206_v38 = vld [vmem:[#allocation99_spill] sm:$0xff]  ;;  %5837 = vmatprep.subr.mxu0 %v10745_v40 }
 0x23e   : > { %v2746_v20 = vadd.f32 %v12200_v43, %v2651_v32  ;;  %v12202_v2 = vand.u32 4294901760, %v10854_v45  ;;  %v12203_v59 = vand.u32 4294901760, %v10777_v6  ;;  %v6067_v32 = vand.u32 4294901760, %v10875_v1  ;;  %5839 = vmatpush1.msra.mxu0 %v10752_v36  ;;  %6149 = vmatprep.mubr.f32.mxu1 %v11862_v25 }
 0x23f   : > { %6032 = vmatpush1.msra.mxu1 %v12201_v4  ;;  %v12204_v14 = vand.u32 4294901760, %v10830_v46  ;;  %v3945_v58 = vadd.f32 %v3944_v3, %v10840_v10  ;;  %v10959_v18 = vadd.f32 %v3855_v63, %v3751_v52  ;;  %v2462_v47 = vadd.f32 %v12205_v34, %v10844_v57  ;;  %v3946_v10 = vpop.f32.mrf.mxu0  ;;  %v4034_v52 = vpop.f32.mrf.mxu1  ;;  %v12209_v63 = vld [vmem:[#allocation96_spill] sm:$0xff]  ;;  %5841 = vmatprep.subr.mxu0 %v10805_v29 }
 0x240   : > { %v10947_v42 = vsub.f32 %v10854_v45, %v12202_v2  ;;  %6038 = vmatprep.subr.mxu1 %v12203_v59  ;;  %v2658_v43 = vadd.f32 %v12206_v38, %v2555_v9  ;;  %v12207_v6 = vand.u32 4294901760, %v10750_v0  ;;  %v12208_v1 = vand.u32 4294901760, %v10880_v55  ;;  %v12210_v34 = vld [vmem:[#allocation24_spill] sm:$0xff]  ;;  %5843 = vmatpush1.msra.mxu0 %v10780_v48 }
 0x241   : > { %v10956_v4 = vsub.f32 %v10830_v46, %v12204_v14  ;;  %v6073_v57 = vand.u32 4294901760, %v10911_v22  ;;  %v10978_v9 = vsub.f32 %v10887_v24, %v11786_v44  ;;  %v3947_v0 = vadd.f32 %v3946_v10, %v10865_v62  ;;  %v3951_v59 = vpop.f32.mrf.mxu0  ;;  %v4036_v36 = vpop.f32.mrf.mxu1  ;;  %v12213_v62 = vld [vmem:[#allocation23_spill] sm:$0xff]  ;;  %v12215_v10 = vld [vmem:[#allocation94_spill] sm:$0xff]  ;;  %5845 = vmatprep.subr.mxu0 %v10837_v60 }
 0x242   : > { %6044 = vmatpush1.msra.mxu1 %v12207_v6  ;;  %v10970_v2 = vsub.f32 %v10880_v55, %v12208_v1  ;;  %v4035_v3 = vadd.f32 %v4034_v52, %v3938_v54  ;;  %v2564_v14 = vadd.f32 %v12209_v63, %v2462_v47  ;;  %v3382_v38 = vadd.f32 %v2746_v20, %v12210_v34  ;;  %v12211_v6 = vld [vmem:[#allocation104_spill] sm:$0xff]  ;;  %v12216_v52 = vld [vmem:[#allocation102_spill] sm:$0xff] }
 0x243   : > { %6050 = vmatprep.subr.mxu1 %v6049_v11  ;;  %v2753_v1 = vadd.f32 %v12211_v6, %v2658_v43  ;;  %v12212_v11 = vand.u32 4294901760, %v10789_v17  ;;  %v6079_v22 = vand.u32 4294901760, %v10902_v27  ;;  %v3952_v47 = vadd.f32 %v3951_v59, %v10890_v31  ;;  %v4041_v6 = vpop.f32.mrf.mxu1  ;;  %5847 = vmatpush1.msra.mxu0 %v10849_v26  ;;  %v12219_v59 = vld [vmem:[#allocation55_spill] sm:$0xff]  ;;  %v12253_v44 = vld [vmem:[#allocation126_spill] sm:$0xff] }
 0x244   : > { %v10990_v54 = vadd.f32 %v4035_v3, %v12213_v62  ;;  %v4037_v20 = vadd.f32 %v4036_v36, %v3940_v30  ;;  %v2470_v43 = vadd.f32 %v12215_v10, %v2369_v23  ;;  %v2665_v63 = vadd.f32 %v12216_v52, %v2564_v14  ;;  %v12220_v3 = vld [vmem:[#allocation26_spill] sm:$0xff]  ;;  %v12221_v14 = vld [vmem:[#allocation105_spill] sm:$0xff]  ;;  %v12222_v52 = vld [vmem:[#allocation32_spill] sm:$0xff] }
 0x245   : > { %6056 = vmatpush1.msra.mxu1 %v12212_v11  ;;  %v6085_v17 = vand.u32 4294901760, %v10947_v42  ;;  %v12217_v27 = vand.u32 4294901760, %v10897_v15  ;;  %v6091_v36 = vand.u32 4294901760, %v10926_v5  ;;  %v4042_v30 = vadd.f32 %v4041_v6, %v3945_v58  ;;  %6180 = vmatprep.subr.mxu0 %v12222_v52  ;;  %v12223_v5 = vld [vmem:[#allocation88_spill] sm:$0xff] }
 0x246   : > { %6062 = vmatprep.subr.mxu1 %v6061_v8  ;;  %12214 = vst [vmem:[#allocation87_spill] sm:$0xff] %v10990_v54  ;;  %v3953_v8 = vpop.f32.mrf.mxu0  ;;  %v11002_v31 = vadd.f32 %v4037_v20, %v3382_v38  ;;  %v3386_v42 = vadd.f32 %v2753_v1, %v12220_v3  ;;  %v2760_v11 = vadd.f32 %v12221_v14, %v2665_v63  ;;  %v6097_v62 = vand.u32 4294901760, %v10970_v2  ;;  %v12224_v58 = vld [vmem:[#allocation56_spill] sm:$0xff]  ;;  %v12231_v14 = vld [vmem:[#allocation106_spill] sm:$0xff] }
 0x247   : > { %6068 = vmatpush1.msra.mxu1 %v6067_v32  ;;  %v6114_v34 = vsub.f32 %v10897_v15, %v12217_v27  ;;  %v3954_v23 = vadd.f32 %v3953_v8, %v10915_v53  ;;  %v2573_v32 = vadd.f32 %v12219_v59, %v2470_v43  ;;  %5886 = vmatmul.mubr.f32.vlgmr.msra.gmra.mxu0 %v12223_v5  ;;  %v6103_v53 = vand.u32 4294901760, %v10956_v4  ;;  %v12226_v43 = vld [vmem:[#allocation25_spill] sm:$0xff]  ;;  %v12228_v6 = vld [vmem:[#allocation52_spill] sm:$0xff] }
 0x248   : > { %6074 = vmatprep.subr.mxu1 %v6073_v57  ;;  %12218 = vst [vmem:[#allocation89_spill] sm:$0xff] %v11002_v31  ;;  %v3958_v10 = vpop.f32.mrf.mxu0  ;;  %v4043_v57 = vpop.f32.mrf.mxu1  ;;  %v11014_v38 = vadd.f32 %v4042_v30, %v12224_v58  ;;  %v6109_v2 = vand.u32 4294901760, %v10978_v9  ;;  %v12237_v5 = vld [vmem:[#allocation116_spill] sm:$0xff]  ;;  %5891 = vmatprep.mubr.f32.mxu0 %v11862_v25 }
 0x249   : > { %6080 = vmatpush1.msra.mxu1 %v6079_v22  ;;  %v3959_v1 = vadd.f32 %v3958_v10, %v10936_v56  ;;  %v4044_v20 = vadd.f32 %v4043_v57, %v3947_v0  ;;  %v2672_v63 = vadd.f32 %v12226_v43, %v2573_v32  ;;  %v12227_v22 = vld [vmem:[#allocation53_spill] sm:$0xff]  ;;  %v6115_v59 = vand.u32 4294901760, %v6114_v34  ;;  %v12239_v43 = vld [vmem:[#allocation34_spill] sm:$0xff]  ;;  %v12261_v31 = vld [vmem:[#allocation76_spill] sm:$0xff] }
 0x24a   : > { %12225 = vst [vmem:[#allocation38_spill] sm:$0xff] %v11014_v38  ;;  %6086 = vmatprep.subr.mxu1 %v6085_v17  ;;  %6183 = vmatpush1.msra.mxu0 %v12227_v22  ;;  %v3960_v27 = vpop.f32.mrf.mxu0  ;;  %v4048_v8 = vpop.f32.mrf.mxu1  ;;  %v12230_v56 = vld [vmem:[#allocation29_spill] sm:$0xff] }
 0x24b   : > { %6092 = vmatpush1.msra.mxu1 %v6091_v36  ;;  %6186 = vmatprep.subr.mxu0 %v12228_v6  ;;  %v11021_v4 = vadd.f32 %v4044_v20, %v3386_v42  ;;  %v3961_v30 = vadd.f32 %v3960_v27, %v10959_v18  ;;  %v4049_v3 = vadd.f32 %v4048_v8, %v3952_v47  ;;  %v12232_v10 = vld [vmem:[#allocation61_spill] sm:$0xff]  ;;  %v12233_v36 = vld [vmem:[#allocation59_spill] sm:$0xff]  ;;  %v12235_v42 = vld [vmem:[#allocation64_spill] sm:$0xff] }
 0x24c   : > { %v3390_v0 = vadd.f32 %v2760_v11, %v12230_v56  ;;  %6098 = vmatprep.subr.mxu1 %v6097_v62  ;;  %6189 = vmatpush1.msra.mxu0 %v10325_v37  ;;  %v4135_v17 = vpop.f32.mrf.mxu0  ;;  %v4050_v32 = vpop.f32.mrf.mxu1  ;;  %v2767_v9 = vadd.f32 %v12231_v14, %v2672_v63  ;;  %v12242_v27 = vld [vmem:[#allocation31_spill] sm:$0xff]  ;;  %v12245_v56 = vld [vmem:[#allocation28_spill] sm:$0xff]  ;;  %v12247_v14 = vld [vmem:[#allocation30_spill] sm:$0xff] }
 0x24d   : > { %12229 = vst [vmem:[#allocation33_spill] sm:$0xff] %v11021_v4  ;;  %6104 = vmatpush1.msra.mxu1 %v6103_v53  ;;  %6192 = vmatprep.subr.mxu0 %v12232_v10  ;;  %v11029_v57 = vadd.f32 %v4049_v3, %v12233_v36  ;;  %v4051_v34 = vadd.f32 %v4050_v32, %v3954_v23  ;;  %v12238_v53 = vld [vmem:[#allocation73_spill] sm:$0xff]  ;;  %v12244_v3 = vld [vmem:[#allocation118_spill] sm:$0xff]  ;;  %v12254_v4 = vld [vmem:[#allocation40_spill] sm:$0xff] }
 0x24e   : > { %6110 = vmatprep.subr.mxu1 %v6109_v2  ;;  %6195 = vmatpush1.msra.mxu0 %v12235_v42  ;;  %v4137_v18 = vpop.f32.mrf.mxu0  ;;  %v4055_v47 = vpop.f32.mrf.mxu1  ;;  %v3394_v63 = vadd.f32 %v2767_v9, %v12239_v43  ;;  %v12240_v23 = vld [vmem:[#allocation69_spill] sm:$0xff]  ;;  %v12241_v2 = vld [vmem:[#allocation46_spill] sm:$0xff] }
 0x24f   : > { %12234 = vst [vmem:[#allocation37_spill] sm:$0xff] %v11029_v57  ;;  %6116 = vmatpush1.msra.mxu1 %v6115_v59  ;;  %v11033_v11 = vadd.f32 %v4051_v34, %v3390_v0  ;;  %v4056_v62 = vadd.f32 %v4055_v47, %v3959_v1  ;;  %6198 = vmatprep.subr.mxu0 %v12237_v5  ;;  %v12246_v32 = vld [vmem:[#allocation114_spill] sm:$0xff]  ;;  %v12249_v34 = vld [vmem:[#allocation121_spill] sm:$0xff] }
 0x250   : > { %6151 = vmatmul.mubr.f32.vlgmr.msra.gmra.mxu1 %v12238_v53  ;;  %v4146_v58 = vpop.f32.mrf.mxu0  ;;  %v4057_v20 = vpop.f32.mrf.mxu1  ;;  %6201 = vmatpush1.msra.mxu0 %v12240_v23  ;;  %v12250_v47 = vld [vmem:[#allocation50_spill] sm:$0xff] }
 0x251   : > { %12236 = vst [vmem:[#allocation86_spill] sm:$0xff] %v11033_v11  ;;  %6340 = vmatprep.subr.mxu1 %v12241_v2  ;;  %v11041_v8 = vadd.f32 %v4056_v62, %v12242_v27  ;;  %v4058_v59 = vadd.f32 %v4057_v20, %v3961_v30  ;;  %6204 = vmatprep.subr.mxu0 %v12244_v3  ;;  %v12251_v30 = vld [vmem:[#allocation119_spill] sm:$0xff]  ;;  %v12252_v20 = vld [vmem:[#allocation36_spill] sm:$0xff]  ;;  %v12262_v53 = vld [vmem:[#allocation110_spill] sm:$0xff] }
 0x252   : > { %6342 = vmatpush1.msra.mxu1 %v12245_v56  ;;  %v4148_v1 = vpop.f32.mrf.mxu0  ;;  %v4260_v0 = vpop.f32.mrf.mxu1  ;;  %6207 = vmatpush1.msra.mxu0 %v12246_v32  ;;  %v12259_v11 = vld [vmem:[#allocation68_spill] sm:$0xff] }
 0x253   : > { %12243 = vst [vmem:[#allocation90_spill] sm:$0xff] %v11041_v8  ;;  %6344 = vmatprep.subr.mxu1 %v12247_v14  ;;  %v11047_v36 = vadd.f32 %v4058_v59, %v3394_v63  ;;  %v4261_v9 = vadd.f32 %v4260_v0, %v4135_v17  ;;  %6210 = vmatprep.subr.mxu0 %v12249_v34  ;;  %v12255_v63 = vld [vmem:[#allocation123_spill] sm:$0xff]  ;;  %v12257_v0 = vld [vmem:[#allocation70_spill] sm:$0xff] }
 0x254   : > { %6346 = vmatpush1.msra.mxu1 %v12250_v47  ;;  %v4157_v62 = vpop.f32.mrf.mxu0  ;;  %v4262_v43 = vpop.f32.mrf.mxu1  ;;  %6213 = vmatpush1.msra.mxu0 %v12251_v30  ;;  %v12256_v17 = vld [vmem:[#allocation111_spill] sm:$0xff] }
 0x255   : > { %12248 = vst [vmem:[#allocation92_spill] sm:$0xff] %v11047_v36  ;;  %6348 = vmatprep.subr.mxu1 %v12252_v20  ;;  %v4263_v27 = vadd.f32 %v4262_v43, %v4137_v18  ;;  %6216 = vmatprep.subr.mxu0 %v12253_v44  ;;  %v12258_v36 = vld [vmem:[#allocation42_spill] sm:$0xff]  ;;  %v12260_v18 = vld [vmem:[#allocation112_spill] sm:$0xff]  ;;  %v12263_v44 = vld [vmem:[#allocation79_spill] sm:$0xff] }
 0x256   : > { %6350 = vmatpush1.msra.mxu1 %v12254_v4  ;;  %v4159_v8 = vpop.f32.mrf.mxu0  ;;  %v4267_v57 = vpop.f32.mrf.mxu1  ;;  %6219 = vmatpush1.msra.mxu0 %v12255_v63 }
 0x257   : > { %6352 = vmatprep.subr.mxu1 %v12256_v17  ;;  %v4268_v59 = vadd.f32 %v4267_v57, %v4146_v58  ;;  %6222 = vmatprep.subr.mxu0 %v12257_v0  ;;  %v12264_v57 = vld [vmem:[#allocation58_spill] sm:$0xff]  ;;  %v12265_v0 = vld [vmem:[#allocation128_spill] sm:$0xff] }
 0x258   : > { %6354 = vmatpush1.msra.mxu1 %v12258_v36  ;;  %v4168_v38 = vpop.f32.mrf.mxu0  ;;  %v4269_v54 = vpop.f32.mrf.mxu1  ;;  %6225 = vmatpush1.msra.mxu0 %v12259_v11  ;;  %v12266_v36 = vld [vmem:[#allocation115_spill] sm:$0xff] }
 0x259   : > { %6356 = vmatprep.subr.mxu1 %v12260_v18  ;;  %v4270_v43 = vadd.f32 %v4269_v54, %v4148_v1  ;;  %6228 = vmatprep.subr.mxu0 %v12261_v31  ;;  %v12267_v54 = vld [vmem:[#allocation81_spill] sm:$0xff] }
 0x25a   : > { %6358 = vmatpush1.msra.mxu1 %v12262_v53  ;;  %v4170_v4 = vpop.f32.mrf.mxu0  ;;  %v4274_v63 = vpop.f32.mrf.mxu1  ;;  %6231 = vmatpush1.msra.mxu0 %v12263_v44  ;;  %v12268_v53 = vld [vmem:[#allocation120_spill] sm:$0xff]  ;;  %v12269_v18 = vld [vmem:[#allocation45_spill] sm:$0xff] }
 0x25b   : > { %6360 = vmatprep.subr.mxu1 %v12264_v57  ;;  %v4275_v58 = vadd.f32 %v4274_v63, %v4157_v62  ;;  %6234 = vmatprep.subr.mxu0 %v12265_v0 }
 0x25c   : > { %6362 = vmatpush1.msra.mxu1 %v12266_v36  ;;  %v4362_v17 = vpop.f32.mrf.mxu0  ;;  %v4276_v11 = vpop.f32.mrf.mxu1  ;;  %6237 = vmatpush1.msra.mxu0 %v12267_v54  ;;  %v12270_v36 = vld [vmem:[#allocation124_spill] sm:$0xff] }
 0x25d   : > { %v4363_v1 = vadd.f32 %v4362_v17, %v4261_v9  ;;  %v4277_v31 = vadd.f32 %v4276_v11, %v4159_v8  ;;  %6364 = vmatprep.subr.mxu1 %v12268_v53  ;;  %5897 = vmatmul.mubr.f32.gmra.mxu0 %v12269_v18  ;;  %v12271_v11 = vld [vmem:[#allocation122_spill] sm:$0xff] }
 0x25e   : > { %v4364_v44 = vpop.f32.mrf.mxu0  ;;  %v4281_v20 = vpop.f32.mrf.mxu1  ;;  %6240 = vmatprep.subr.mxu0 %v10723_v61  ;;  %6366 = vmatpush1.msra.mxu1 %v10479_v7 }
 0x25f   : > { %v4365_v62 = vadd.f32 %v4364_v44, %v4263_v27  ;;  %v4282_v63 = vadd.f32 %v4281_v20, %v4168_v38  ;;  %6243 = vmatpush1.msra.mxu0 %v10667_v13  ;;  %6368 = vmatprep.subr.mxu1 %v12270_v36  ;;  %v12272_v44 = vld [vmem:[#allocation125_spill] sm:$0xff]  ;;  %v12274_v36 = vld [vmem:[#allocation35_spill] sm:$0xff] }
 0x260   : > { %v4370_v0 = vpop.f32.mrf.mxu0  ;;  %v4283_v54 = vpop.f32.mrf.mxu1  ;;  %6246 = vmatprep.subr.mxu0 %v10763_v33  ;;  %6370 = vmatpush1.msra.mxu1 %v12271_v11  ;;  %v12273_v27 = vld [vmem:[#allocation57_spill] sm:$0xff] }
 0x261   : > { %v4371_v8 = vadd.f32 %v4370_v0, %v4268_v59  ;;  %v4284_v9 = vadd.f32 %v4283_v54, %v4170_v4  ;;  %5902 = vmatprep.mubr.f32.mxu0 %v11862_v25  ;;  %6156 = vmatprep.mubr.f32.mxu1 %v11862_v25  ;;  %v12275_v0 = vld [vmem:[#allocation77_spill] sm:$0xff] }
 0x262   : > { %v4372_v17 = vpop.f32.mrf.mxu0  ;;  %v4464_v18 = vpop.f32.mrf.mxu1  ;;  %6249 = vmatpush1.msra.mxu0 %v10693_v41  ;;  %6372 = vmatprep.subr.mxu1 %v12272_v44 }
 0x263   : > { %v4373_v38 = vadd.f32 %v4372_v17, %v4270_v43  ;;  %v4465_v20 = vadd.f32 %v4464_v18, %v4363_v1  ;;  %5908 = vmatmul.mubr.f32.gmra.mxu0 %v12273_v27  ;;  %6158 = vmatmul.mubr.f32.gmra.mxu1 %v12274_v36  ;;  %v12276_v17 = vld [vmem:[#allocation62_spill] sm:$0xff]  ;;  %v12277_v18 = vld [vmem:[#allocation108_spill] sm:$0xff]  ;;  %v12278_v36 = vld [vmem:[#allocation41_spill] sm:$0xff] }
 0x264   : > { %v4378_v33 = vpop.f32.mrf.mxu0  ;;  %v4466_v11 = vpop.f32.mrf.mxu1  ;;  %6252 = vmatprep.subr.mxu0 %v10815_v12  ;;  %6374 = vmatpush1.msra.mxu1 %v10572_v51  ;;  %v2960_v27 = vadd.f32 %v12277_v18, %v12276_v17  ;;  %v12281_v18 = vld [vmem:[#allocation48_spill] sm:$0xff] }
 0x265   : > { %v4379_v4 = vadd.f32 %v4378_v33, %v4275_v58  ;;  %v4467_v59 = vadd.f32 %v4466_v11, %v4365_v62  ;;  %6255 = vmatpush1.msra.mxu0 %v10772_v35  ;;  %6376 = vmatprep.subr.mxu1 %v12275_v0 }
 0x266   : > { %v4380_v54 = vpop.f32.mrf.mxu0  ;;  %v4473_v44 = vpop.f32.mrf.mxu1  ;;  %6258 = vmatprep.subr.mxu0 %v10854_v45  ;;  %6378 = vmatpush1.msra.mxu1 %v10586_v21  ;;  %v3058_v45 = vadd.f32 %v12278_v36, %v2960_v27  ;;  %v12279_v21 = vld [vmem:[#allocation27_spill] sm:$0xff] }
 0x267   : > { %v4381_v43 = vadd.f32 %v4380_v54, %v4277_v31  ;;  %v4474_v1 = vadd.f32 %v4473_v44, %v4371_v8  ;;  %5913 = vmatprep.mubr.f32.mxu0 %v11862_v25  ;;  %6163 = vmatprep.mubr.f32.mxu1 %v11862_v25  ;;  %v12280_v31 = vld [vmem:[#allocation93_spill] sm:$0xff] }
 0x268   : > { %v4386_v33 = vpop.f32.mrf.mxu0  ;;  %v4475_v58 = vpop.f32.mrf.mxu1  ;;  %6261 = vmatpush1.msra.mxu0 %v10802_v39  ;;  %6380 = vmatprep.subr.mxu1 %v10642_v28  ;;  %v3158_v39 = vadd.f32 %v12281_v18, %v3058_v45  ;;  %v12285_v18 = vld [vmem:[#allocation109_spill] sm:$0xff] }
 0x269   : > { %v4387_v62 = vadd.f32 %v4386_v33, %v4282_v63  ;;  %v4476_v11 = vadd.f32 %v4475_v58, %v4373_v38  ;;  %5919 = vmatmul.mubr.f32.gmra.mxu0 %v12279_v21  ;;  %6165 = vmatmul.mubr.f32.gmra.mxu1 %v12280_v31  ;;  %v12282_v63 = vld [vmem:[#allocation129_spill] sm:$0xff]  ;;  %v12283_v33 = vld [vmem:[#allocation54_spill] sm:$0xff] }
 0x26a   : > { %v4388_v8 = vpop.f32.mrf.mxu0  ;;  %v4482_v44 = vpop.f32.mrf.mxu1  ;;  %6264 = vmatprep.subr.mxu0 %v10880_v55  ;;  %6382 = vmatpush1.msra.mxu1 %v10615_v50  ;;  %v3263_v58 = vadd.f32 %v12283_v33, %v3158_v39  ;;  %v12288_v39 = vld [vmem:[#allocation78_spill] sm:$0xff]  ;;  %v12289_v33 = vand.u32 4294901760, %v12222_v52  ;;  %v12294_v52 = vld [vmem:[#allocation49_spill] sm:$0xff] }
 0x26b   : > { %v4389_v54 = vadd.f32 %v4388_v8, %v4284_v9  ;;  %v4483_v17 = vadd.f32 %v4482_v44, %v4379_v4  ;;  %6267 = vmatpush1.msra.mxu0 %v10830_v46  ;;  %6384 = vmatprep.subr.mxu1 %v12282_v63  ;;  %v12284_v44 = vld [vmem:[#allocation107_spill] sm:$0xff] }
 0x26c   : > { %v4575_v38 = vpop.f32.mrf.mxu0  ;;  %v4484_v36 = vpop.f32.mrf.mxu1  ;;  %6270 = vmatprep.subr.mxu0 %v10887_v24  ;;  %6386 = vmatpush1.msra.mxu1 %v10647_v49  ;;  %v2967_v31 = vadd.f32 %v12285_v18, %v12284_v44  ;;  %v12286_v49 = vld [vmem:[#allocation113_spill] sm:$0xff]  ;;  %v12293_v44 = vand.u32 4294901760, %v12228_v6 }
 0x26d   : > { %v4576_v21 = vadd.f32 %v4575_v38, %v4465_v20  ;;  %v4485_v27 = vadd.f32 %v4484_v36, %v4381_v43  ;;  %6170 = vmatprep.mubr.f32.mxu1 %v11862_v25  ;;  %6273 = vmatpush1.msra.mxu0 %v10897_v15  ;;  %v3358_v20 = vadd.f32 %v12286_v49, %v3263_v58  ;;  %v12287_v43 = vld [vmem:[#allocation98_spill] sm:$0xff] }
 0x26e   : > { %v4577_v9 = vpop.f32.mrf.mxu0  ;;  %v4491_v45 = vpop.f32.mrf.mxu1  ;;  %6306 = vmatprep.mubr.f32.mxu0 %v11862_v25  ;;  %6388 = vmatprep.subr.mxu1 %v10696_v16 }
 0x26f   : > { %v4578_v4 = vadd.f32 %v4577_v9, %v4467_v59  ;;  %v4492_v8 = vadd.f32 %v4491_v45, %v4387_v62  ;;  %6172 = vmatmul.mubr.f32.gmra.mxu1 %v12287_v43  ;;  %6309 = vmatmul.mubr.f32.vlgmr.msra.gmra.mxu0 %v12288_v39  ;;  %v12290_v59 = vld [vmem:[#allocation43_spill] sm:$0xff]  ;;  %v12291_v9 = vand.u32 4294901760, %v12227_v22  ;;  %v12292_v45 = vld [vmem:[#allocation74_spill] sm:$0xff] }
 0x270   : > { %v4582_v38 = vpop.f32.mrf.mxu0  ;;  %v4493_v36 = vpop.f32.mrf.mxu1  ;;  %6390 = vmatpush1.msra.mxu1 %v10718_v19  ;;  %6475 = vmatprep.subr.mxu0 %v12289_v33  ;;  %v3066_v62 = vadd.f32 %v12290_v59, %v2967_v31  ;;  %v12298_v59 = vld [vmem:[#allocation47_spill] sm:$0xff] }
 0x271   : > { %v4583_v15 = vadd.f32 %v4582_v38, %v4474_v1  ;;  %v4494_v16 = vadd.f32 %v4493_v36, %v4389_v54  ;;  %6392 = vmatprep.subr.mxu1 %v10745_v40  ;;  %6479 = vmatpush1.msra.mxu0 %v12291_v9  ;;  %v12295_v1 = vld [vmem:[#allocation66_spill] sm:$0xff]  ;;  %v12296_v38 = vand.u32 4294901760, %v10325_v37  ;;  %v12297_v36 = vld [vmem:[#allocation65_spill] sm:$0xff]  ;;  %v12299_v9 = vld [vmem:[#allocation91_spill] sm:$0xff]  ;;  %v12301_v37 = vand.u32 4294901760, %v12235_v42 }
 0x272   : > { %v4584_v49 = vpop.f32.mrf.mxu0  ;;  %v4672_v58 = vpop.f32.mrf.mxu1  ;;  %6394 = vmatpush1.msra.mxu1 %v12292_v45  ;;  %6483 = vmatprep.subr.mxu0 %v12293_v44  ;;  %v3167_v33 = vadd.f32 %v12294_v52, %v3066_v62  ;;  %v3384_v54 = vadd.f32 %v3358_v20, %v12295_v1  ;;  %v12300_v20 = vand.u32 4294901760, %v12232_v10  ;;  %v12305_v42 = vand.u32 4294901760, %v12240_v23 }
 0x273   : > { %v4585_v18 = vadd.f32 %v4584_v49, %v4476_v11  ;;  %v4673_v39 = vadd.f32 %v4672_v58, %v4576_v21  ;;  %6314 = vmatprep.mubr.f32.mxu0 %v11862_v25  ;;  %6396 = vmatprep.subr.mxu1 %v10805_v29 }
 0x274   : > { %v4589_v31 = vpop.f32.mrf.mxu0  ;;  %v4674_v22 = vpop.f32.mrf.mxu1  ;;  %6487 = vmatpush1.msra.mxu0 %v12296_v38  ;;  %6398 = vmatpush1.msra.mxu1 %v10780_v48  ;;  %v3270_v62 = vadd.f32 %v12298_v59, %v3167_v33 }
 0x275   : > { %v11133_v6 = vadd.f32 %v4673_v39, %v12297_v36  ;;  %v4590_v11 = vadd.f32 %v4589_v31, %v4483_v17  ;;  %v4675_v21 = vadd.f32 %v4674_v22, %v4578_v4  ;;  %6317 = vmatmul.mubr.f32.gmra.mxu0 %v12299_v9  ;;  %6491 = vmatprep.subr.mxu0 %v12300_v20  ;;  %v12302_v39 = vld [vmem:[#allocation117_spill] sm:$0xff]  ;;  %v12303_v17 = vand.u32 4294901760, %v12237_v5  ;;  %v12304_v4 = vld [vmem:[#allocation83_spill] sm:$0xff]  ;;  %v12316_v9 = vld [vmem:[#allocation100_spill] sm:$0xff] }
 0x276   : > { %v4591_v49 = vpop.f32.mrf.mxu0  ;;  %6400 = vmatprep.subr.mxu1 %v10837_v60  ;;  %6495 = vmatpush1.msra.mxu0 %v12301_v37  ;;  %v3365_v52 = vadd.f32 %v12302_v39, %v3270_v62  ;;  %v4679_v10 = vpop.f32.mrf.mxu1  ;;  %v12307_v22 = vld [vmem:[#allocation51_spill] sm:$0xff]  ;;  %v12308_v5 = vand.u32 4294901760, %v12244_v3  ;;  %v12319_v37 = vld [vmem:[#allocation126_spill] sm:$0xff] }
 0x277   : > { %v11142_v58 = vadd.f32 %v4675_v21, %v3384_v54  ;;  %v4592_v44 = vadd.f32 %v4591_v49, %v4485_v27  ;;  %6402 = vmatpush1.msra.mxu1 %v10849_v26  ;;  %6435 = vmatprep.mubr.f32.mxu1 %v11862_v25  ;;  %v4680_v33 = vadd.f32 %v4679_v10, %v4583_v15  ;;  %v12306_v27 = vld [vmem:[#allocation97_spill] sm:$0xff]  ;;  %v12309_v36 = vld [vmem:[#allocation67_spill] sm:$0xff]  ;;  %v12311_v15 = vand.u32 4294901760, %v12246_v32 }
 0x278   : > { %6499 = vmatprep.subr.mxu0 %v12303_v17  ;;  %6322 = vmatprep.mubr.f32.mxu0 %v11862_v25  ;;  %v4596_v1 = vpop.f32.mrf.mxu0  ;;  %v4681_v31 = vpop.f32.mrf.mxu1  ;;  %v3388_v38 = vadd.f32 %v3365_v52, %v12307_v22  ;;  %v12314_v32 = vand.u32 4294901760, %v12251_v30  ;;  %v12320_v39 = vand.u32 4294901760, %v12319_v37  ;;  %v12324_v17 = vld [vmem:[#allocation111_spill] sm:$0xff] }
 0x279   : > { %6439 = vmatmul.mubr.f32.vlgmr.msra.gmra.mxu1 %v12304_v4  ;;  %6503 = vmatpush1.msra.mxu0 %v12305_v42  ;;  %v4597_v54 = vadd.f32 %v4596_v1, %v4492_v8  ;;  %v11160_v21 = vadd.f32 %v4680_v33, %v12309_v36  ;;  %v4682_v23 = vadd.f32 %v4681_v31, %v4585_v18  ;;  %v12312_v8 = vand.u32 4294901760, %v12249_v34  ;;  %v12313_v18 = vld [vmem:[#allocation95_spill] sm:$0xff]  ;;  %v12317_v34 = vld [vmem:[#allocation72_spill] sm:$0xff]  ;;  %v12327_v42 = vld [vmem:[#allocation70_spill] sm:$0xff] }
 0x27a   : > { %6662 = vmatprep.subr.mxu1 %v12241_v2  ;;  %6325 = vmatmul.mubr.f32.gmra.mxu0 %v12306_v27  ;;  %v4598_v59 = vpop.f32.mrf.mxu0  ;;  %v4686_v62 = vpop.f32.mrf.mxu1  ;;  %v12325_v30 = vld [vmem:[#allocation75_spill] sm:$0xff]  ;;  %v12328_v33 = vand.u32 4294901760, %v12327_v42  ;;  %v12329_v1 = vld [vmem:[#allocation42_spill] sm:$0xff]  ;;  %v12330_v27 = vld [vmem:[#allocation68_spill] sm:$0xff] }
 0x27b   : > { %6507 = vmatprep.subr.mxu0 %v12308_v5  ;;  %6664 = vmatpush1.msra.mxu1 %v12245_v56  ;;  %12310 = vst [vmem:[#allocation101_spill] sm:$0xff] %v11160_v21  ;;  %v4599_v2 = vadd.f32 %v4598_v59, %v4494_v16  ;;  %v11168_v3 = vadd.f32 %v4682_v23, %v3388_v38  ;;  %v12315_v16 = vld [vmem:[#allocation36_spill] sm:$0xff]  ;;  %v12331_v31 = vand.u32 4294901760, %v12330_v27  ;;  %v6882_v36 = vld [vmem:[%s12334_s0] sm:$0xf]  ;;  %v12361_v27 = vld [vmem:[#allocation85_spill] sm:$0xff] }
 0x27c   : > { %6511 = vmatpush1.msra.mxu0 %v12311_v15  ;;  %6666 = vmatprep.subr.mxu1 %v12247_v14  ;;  %v4687_v56 = vadd.f32 %v4686_v62, %v4590_v11  ;;  %v4688_v14 = vpop.f32.mrf.mxu1  ;;  %v12322_v11 = vld [vmem:[#allocation123_spill] sm:$0xff]  ;;  %v12332_v38 = vld [vmem:[#allocation44_spill] sm:$0xff]  ;;  %v12339_v62 = vld [vmem:[#allocation110_spill] sm:$0xff] }
 0x27d   : > { %6444 = vmatprep.mubr.f32.mxu1 %v11862_v25  ;;  %6515 = vmatprep.subr.mxu0 %v12312_v8  ;;  %v4689_v49 = vadd.f32 %v4688_v14, %v4592_v44  ;;  %v12323_v52 = vand.u32 4294901760, %v12322_v11  ;;  %v12333_v5 = vld [vmem:[#allocation112_spill] sm:$0xff]  ;;  %v6878_v11 = vld [vmem:[%s12351_s10] sm:$0xff] }
 0x27e   : > { %6668 = vmatpush1.msra.mxu1 %v12250_v47  ;;  %6330 = vmatprep.mubr.f32.mxu0 %v11862_v25  ;;  %v11178_v20 = vadd.f32 %v4687_v56, %v12317_v34  ;;  %v12321_v47 = vld [vmem:[#allocation40_spill] sm:$0xff]  ;;  %v4693_v4 = vpop.f32.mrf.mxu1  ;;  %v12340_v56 = vld [vmem:[#allocation79_spill] sm:$0xff]  ;;  %v6898_v34 = vsel %vm6896_vm3, %v6882_v36, 0 }
 0x27f   : > { %6448 = vmatmul.mubr.f32.gmra.mxu1 %v12313_v18  ;;  %6519 = vmatpush1.msra.mxu0 %v12314_v32  ;;  %v11187_v10 = vadd.f32 %v4689_v49, %v12325_v30  ;;  %v4694_v44 = vadd.f32 %v4693_v4, %v4597_v54  ;;  %v12335_v23 = vld [vmem:[#allocation60_spill] sm:$0xff]  ;;  %v12341_v18 = vand.u32 4294901760, %v12340_v56  ;;  %v12342_v32 = vld [vmem:[#allocation71_spill] sm:$0xff]  ;;  %v12347_v49 = vld [vmem:[#allocation81_spill] sm:$0xff] }
 0x280   : > { %6670 = vmatprep.subr.mxu1 %v12315_v16  ;;  %6333 = vmatmul.mubr.f32.gmra.mxu0 %v12316_v9  ;;  %12318 = vst [vmem:[#allocation39_spill] sm:$0xff] %v11178_v20  ;;  %v4695_v22 = vpop.f32.mrf.mxu1  ;;  %v12337_v54 = vld [vmem:[#allocation76_spill] sm:$0xff]  ;;  %v12348_v37 = vand.u32 4294901760, %v12347_v49  ;;  %v12354_v30 = vld [vmem:[#allocation82_spill] sm:$0xff] }
 0x281   : > { %6523 = vmatprep.subr.mxu0 %v12320_v39  ;;  %6672 = vmatpush1.msra.mxu1 %v12321_v47  ;;  %12326 = vst [vmem:[#allocation99_spill] sm:$0xff] %v11187_v10  ;;  %v11201_v59 = vadd.f32 %v4694_v44, %v12335_v23  ;;  %v4696_v15 = vadd.f32 %v4695_v22, %v4599_v2  ;;  %v12338_v8 = vand.u32 4294901760, %v12337_v54  ;;  %v12344_v16 = vld [vmem:[#allocation128_spill] sm:$0xff]  ;;  %v12346_v2 = vld [vmem:[#allocation115_spill] sm:$0xff]  ;;  %v11223_v47 = vand.u32 4294901760, %v6898_v34 }
 0x282   : > { %6527 = vmatpush1.msra.mxu0 %v12323_v52  ;;  %6674 = vmatprep.subr.mxu1 %v12324_v17  ;;  %v12345_v9 = vand.u32 4294901760, %v12344_v16  ;;  %v12349_v39 = vld [vmem:[#allocation103_spill] sm:$0xff]  ;;  %v12352_v52 = vand.u32 4294901760, %v10667_v13  ;;  %v12353_v17 = vld [vmem:[#allocation124_spill] sm:$0xff]  ;;  %v12355_v4 = vand.u32 4294901760, %v12354_v30  ;;  %v12359_v13 = vand.u32 4294901760, %v10815_v12 }
 0x283   : > { %6453 = vmatprep.mubr.f32.mxu1 %v11862_v25  ;;  %6531 = vmatprep.subr.mxu0 %v12328_v33  ;;  %12336 = vst [vmem:[#allocation96_spill] sm:$0xff] %v11201_v59  ;;  %v11210_v14 = vadd.f32 %v4696_v15, %v12342_v32  ;;  %v6879_v42 = vld [vmem:[%s12351_s10 + $0x8] sm:$0xff]  ;;  %v6885_v33 = vsel %vm6883_vm4, %v6878_v11, 0  ;;  %v11245_v44 = vsub.f32 %v6898_v34, %v11223_v47  ;;  %v12367_v15 = vand.u32 4294901760, %v10830_v46 }
 0x284   : > { %6676 = vmatpush1.msra.mxu1 %v12329_v1  ;;  %6535 = vmatpush1.msra.mxu0 %v12331_v31  ;;  %v12360_v1 = vand.u32 4294901760, %v10772_v35  ;;  %v12362_v31 = vand.u32 4294901760, %v12361_v27  ;;  %v12363_v22 = vld [vmem:[#allocation80_spill] sm:$0xff]  ;;  %v6888_v12 = vsel %vm6883_vm4, %v6879_v42, 0  ;;  %v6881_v35 = vld [vmem:[%s12351_s10 + $0x18] sm:$0xff]  ;;  %v12368_v54 = vand.u32 4294901760, %v10887_v24 }
 0x285   : > { %6457 = vmatmul.mubr.f32.gmra.mxu1 %v12332_v38  ;;  %6678 = vmatprep.subr.mxu1 %v12333_v5  ;;  %12343 = vst [vmem:[#allocation24_spill] sm:$0xff] %v11210_v14  ;;  %v12364_v38 = vld [vmem:[#allocation63_spill] sm:$0xff]  ;;  %v11270_v23 = vand.u32 4294901760, %v11245_v44  ;;  %v12370_v46 = vld [vmem:[#allocation84_spill] sm:$0xff]  ;;  %v12373_v24 = vld [vmem:[#allocation73_spill] sm:$0xff] }
 0x286   : > { %6539 = vmatprep.subr.mxu0 %v12338_v8  ;;  %6680 = vmatpush1.msra.mxu1 %v12339_v62  ;;  %v12365_v5 = vand.u32 4294901760, %v12364_v38  ;;  %v12369_v8 = vld [vmem:[#allocation127_spill] sm:$0xff] }
 0x287   : > { %6543 = vmatpush1.msra.mxu0 %v12341_v18  ;;  %6682 = vmatprep.subr.mxu1 %v12264_v57  ;;  %v12350_v57 = vand.u32 4294901760, %v10723_v61  ;;  %v12357_v61 = vand.u32 4294901760, %v10693_v41  ;;  %v6880_v41 = vld [vmem:[%s12351_s10 + $0x10] sm:$0xff]  ;;  %v12371_v18 = vand.u32 4294901760, %v12370_v46  ;;  %v7040_v32 = vsub.f32 %v11245_v44, %v11270_v23 }
 0x288   : > { %6462 = vmatprep.mubr.f32.mxu1 %v11862_v25  ;;  %6547 = vmatprep.subr.mxu0 %v12345_v9  ;;  %v6891_v36 = vsel %vm6883_vm4, %v6880_v41, 0 }
 0x289   : > { %6684 = vmatpush1.msra.mxu1 %v12346_v2  ;;  %6551 = vmatpush1.msra.mxu0 %v12348_v37  ;;  %v11283_v62 = vand.u32 4294901760, %v6891_v36 }
 0x28a   : > { %6466 = vmatmul.mubr.f32.gmra.mxu1 %v12349_v39  ;;  %6686 = vmatprep.subr.mxu1 %v12268_v53  ;;  %v12356_v53 = vld [vmem:[#allocation122_spill] sm:$0xff]  ;;  %v11286_v56 = vpop.f32.mrf.mxu0 }
 0x28b   : > { %6555 = vmatprep.subr.mxu0 %v12350_v57  ;;  %6688 = vmatpush1.msra.mxu1 %v10479_v7  ;;  %v12358_v7 = vld [vmem:[#allocation125_spill] sm:$0xff]  ;;  %v11308_v49 = vsub.f32 %v6891_v36, %v11283_v62  ;;  %v12374_v57 = vld [vmem:[#allocation35_spill] sm:$0xff] }
 0x28c   : > { %6559 = vmatpush1.msra.mxu0 %v12352_v52  ;;  %6690 = vmatprep.subr.mxu1 %v12353_v17  ;;  %v4887_v37 = vpop.f32.mrf.mxu0 }
 0x28d   : > { %6563 = vmatprep.subr.mxu0 %v12355_v4  ;;  %6692 = vmatpush1.msra.mxu1 %v12356_v53  ;;  %v6988_v17 = vand.u32 4294901760, %v11308_v49 }
 0x28e   : > { %6567 = vmatpush1.msra.mxu0 %v12357_v61  ;;  %6694 = vmatprep.subr.mxu1 %v12358_v7 }
 0x28f   : > { %6571 = vmatprep.subr.mxu0 %v12359_v13  ;;  %6696 = vmatpush1.msra.mxu1 %v10572_v51  ;;  %v11257_v51 = vand.u32 4294901760, %v6885_v33  ;;  %v6989_v4 = vsub.f32 %v11308_v49, %v6988_v17 }
 0x290   : > { %6575 = vmatpush1.msra.mxu0 %v12360_v1  ;;  %6698 = vmatprep.subr.mxu1 %v12275_v0  ;;  %v12366_v0 = vand.u32 4294901760, %v10880_v55 }
 0x291   : > { %6579 = vmatprep.subr.mxu0 %v12362_v31  ;;  %6700 = vmatpush1.msra.mxu1 %v12363_v22  ;;  %v11281_v55 = vsub.f32 %v6885_v33, %v11257_v51  ;;  %v11295_v16 = vpop.f32.mrf.mxu1  ;;  %v6990_v61 = vand.u32 4294901760, %v6989_v4 }
 0x292   : > { %6583 = vmatpush1.msra.mxu0 %v12365_v5  ;;  %6702 = vmatprep.subr.mxu1 %v10642_v28  ;;  %v11275_v28 = vand.u32 4294901760, %v6888_v12 }
 0x293   : > { %6587 = vmatprep.subr.mxu0 %v12366_v0  ;;  %6704 = vmatpush1.msra.mxu1 %v10615_v50  ;;  %v6894_v50 = vsel %vm6883_vm4, %v6881_v35, 0  ;;  %v6968_v2 = vand.u32 4294901760, %v11281_v55  ;;  %v5152_v39 = vpop.f32.mrf.mxu1 }
 0x294   : > { %6591 = vmatpush1.msra.mxu0 %v12367_v15  ;;  %6706 = vmatprep.subr.mxu1 %v12282_v63  ;;  %v12372_v63 = vld [vmem:[#allocation130_spill] sm:$0xff]  ;;  %v11300_v9 = vsub.f32 %v6888_v12, %v11275_v28  ;;  %v11302_v34 = vand.u32 4294901760, %v6894_v50 }
 0x295   : > { %6595 = vmatprep.subr.mxu0 %v12368_v54  ;;  %6708 = vmatpush1.msra.mxu1 %v12369_v8 }
 0x296   : > { %6599 = vmatpush1.msra.mxu0 %v12371_v18  ;;  %6632 = vmatprep.mubr.f32.mxu0 %v11862_v25  ;;  %v6978_v11 = vand.u32 4294901760, %v11300_v9  ;;  %v6997_v52 = vsub.f32 %v6894_v50, %v11302_v34 }
 0x297   : > { %6710 = vmatprep.subr.mxu1 %v12372_v63  ;;  %6634 = vmatmul.mubr.f32.vlgmr.msra.gmra.mxu0 %v12373_v24 }
 0x298   : > { %6712 = vmatpush1.msra.mxu1 %v10718_v19  ;;  %6639 = vmatprep.mubr.f32.mxu0 %v11862_v25  ;;  %v11312_v19 = vadd.f32 %v5152_v39, %v4887_v37  ;;  %v6998_v30 = vand.u32 4294901760, %v6997_v52 }
 0x299   : > { %6714 = vmatprep.subr.mxu1 %v10745_v40  ;;  %7838 = vmatprep.subr.mxu0 %v11223_v47  ;;  %v7041_v40 = vand.u32 4294901760, %v7040_v32 }
 0x29a   : > { %6716 = vmatpush1.msra.mxu1 %v12292_v45  ;;  %6757 = vmatprep.mubr.f32.mxu1 %v11862_v25  ;;  %v6969_v45 = vsub.f32 %v11281_v55, %v6968_v2  ;;  %v6999_v53 = vsub.f32 %v6997_v52, %v6998_v30 }
 0x29b   : > { %6718 = vmatprep.subr.mxu1 %v10805_v29  ;;  %6641 = vmatmul.mubr.f32.gmra.mxu0 %v12374_v57  ;;  %v6979_v29 = vsub.f32 %v11300_v9, %v6978_v11 }
 0x29c   : > { %6720 = vmatpush1.msra.mxu1 %v10780_v48  ;;  %7839 = vmatpush3.msra.mxu0 %v11223_v47  ;;  %v12375_v48 = vld [vmem:[#allocation93_spill] sm:$0xff]  ;;  %v7000_v7 = vand.u32 4294901760, %v6999_v53  ;;  %v12377_v53 = vld [vmem:[#allocation86_spill] sm:$0xff] }
 0x29d   : > { %6722 = vmatprep.subr.mxu1 %v10837_v60  ;;  %6646 = vmatprep.mubr.f32.mxu0 %v11862_v25  ;;  %v6970_v60 = vand.u32 4294901760, %v6969_v45 }
 0x29e   : > { %6724 = vmatpush1.msra.mxu1 %v10849_v26  ;;  %7854 = vmatprep.subr.mxu0 %v11245_v44  ;;  %v6980_v26 = vand.u32 4294901760, %v6979_v29 }
 0x29f   : > { %6759 = vmatmul.mubr.f32.vlgmr.msra.gmra.mxu1 %v12373_v24  ;;  %7846 = vmatprep.subr.mxu1 %v7041_v40  ;;  %v11339_v42 = vpop.f32.mrf.mxu0 }
 0x2a0   : > { %6648 = vmatmul.mubr.f32.gmra.mxu0 %v12375_v48  ;;  %7847 = vmatpush3.msra.mxu1 %v7041_v40 }
 0x2a1   : > { %6764 = vmatprep.mubr.f32.mxu1 %v11862_v25  ;;  %6653 = vmatprep.mubr.f32.mxu0 %v11862_v25  ;;  %v11345_v33 = vpop.f32.mrf.mxu0 }
 0x2a2   : > { %7862 = vmatprep.subr.mxu1 %v11223_v47 }
 0x2a3   : > { %6766 = vmatmul.mubr.f32.gmra.mxu1 %v12374_v57  ;;  %v12376_v57 = vld [vmem:[#allocation89_spill] sm:$0xff] }
 0x2a4   : > { %6655 = vmatmul.mubr.f32.gmra.mxu0 %v12287_v43  ;;  %6771 = vmatprep.mubr.f32.mxu1 %v11862_v25 }
 0x2a5   : > { %7840 = vmatprep.mubr.f32.mxu0 %v6970_v60 }
 0x2a7   : > { %6773 = vmatmul.mubr.f32.gmra.mxu1 %v12375_v48 }
 0x2a8   : > { %7841 = vmatmul.mubr.f32.vlgmr.msra.gmra.mxu0 %v6980_v26  ;;  %6778 = vmatprep.mubr.f32.mxu1 %v11862_v25  ;;  %v11352_v25 = vpop.f32.mrf.mxu0 }
 0x2a9   : > { %7843 = vmatprep.mubr.f32.mxu0 %v6990_v61  ;;  %7855 = vmatpush3.msra.mxu0 %v11245_v44 }
 0x2aa   : > { %7870 = vmatprep.subr.mxu0 %v11270_v23  ;;  %v4909_v13 = vpop.f32.mrf.mxu0 }
 0x2ab   : > { %6780 = vmatmul.mubr.f32.gmra.mxu1 %v12287_v43  ;;  %v11358_v43 = vpop.f32.mrf.mxu1 }
 0x2ac   : > { %7844 = vmatmul.mubr.f32.gmra.mxu0 %v7000_v7  ;;  %7848 = vmatprep.mubr.f32.mxu1 %v11257_v51  ;;  %v11365_v41 = vpop.f32.mrf.mxu0 }
 0x2ad   : > { %7856 = vmatprep.mubr.f32.mxu0 %v11281_v55  ;;  %v11363_v44 = vpop.f32.mrf.mxu1 }
 0x2ae   : > { %v11371_v27 = vpop.f32.mrf.mxu0 }
 0x2af   : > { %7849 = vmatmul.mubr.f32.vlgmr.msra.gmra.mxu1 %v11275_v28  ;;  %v11369_v1 = vpop.f32.mrf.mxu1 }
 0x2b0   : > { %7863 = vmatpush3.msra.mxu1 %v11223_v47  ;;  %7857 = vmatmul.mubr.f32.vlgmr.msra.gmra.mxu0 %v11300_v9  ;;  %v5165_v14 = vadd.f32 %v11369_v1, %v11352_v25 }
 0x2b1   : > { %7851 = vmatprep.mubr.f32.mxu1 %v11283_v62  ;;  %7859 = vmatprep.mubr.f32.mxu0 %v11308_v49  ;;  %v5308_v31 = vpop.f32.mrf.mxu0 }
 0x2b2   : > { %7871 = vmatpush3.msra.mxu0 %v11270_v23  ;;  %7878 = vmatprep.subr.mxu1 %v11223_v47 }
 0x2b3   : > { %7852 = vmatmul.mubr.f32.gmra.mxu1 %v11302_v34  ;;  %v5310_v12 = vpop.f32.mrf.mxu0 }
 0x2b4   : > { %7860 = vmatmul.mubr.f32.gmra.mxu0 %v6997_v52  ;;  %7864 = vmatprep.mubr.f32.mxu1 %v6968_v2  ;;  %v5311_v63 = vadd.f32 %v5310_v12, %v11312_v19 }
 0x2b5   : > { %7872 = vmatprep.mubr.f32.mxu0 %v11257_v51 }
 0x2b6   : > { %v5316_v5 = vpop.f32.mrf.mxu0 }
 0x2b7   : > { %7865 = vmatmul.mubr.f32.vlgmr.msra.gmra.mxu1 %v6978_v11 }
 0x2b8   : > { %7879 = vmatpush3.msra.mxu1 %v11223_v47  ;;  %7873 = vmatmul.mubr.f32.vlgmr.msra.gmra.mxu0 %v11275_v28  ;;  %v5166_v47 = vpop.f32.mrf.mxu1 }
 0x2b9   : > { %7867 = vmatprep.mubr.f32.mxu1 %v6988_v17  ;;  %7875 = vmatprep.mubr.f32.mxu0 %v11283_v62  ;;  %v5167_v45 = vadd.f32 %v5166_v47, %v4909_v13 }
 0x2ba   : > { %v11376_v22 = vpop.f32.mrf.mxu1 }
 0x2bb   : > { %7868 = vmatmul.mubr.f32.gmra.mxu1 %v6998_v30 }
 0x2bc   : > { %7876 = vmatmul.mubr.f32.gmra.mxu0 %v11302_v34  ;;  %7880 = vmatprep.mubr.f32.mxu1 %v11257_v51  ;;  %v11378_v38 = vpop.f32.mrf.mxu1  ;;  %v11380_v51 = vpop.f32.mrf.mxu0 }
 0x2be   : > { %v5438_v36 = vpop.f32.mrf.mxu1  ;;  %v5324_v0 = vpop.f32.mrf.mxu0 }
 0x2bf   : > { %7881 = vmatmul.mubr.f32.vlgmr.msra.gmra.mxu1 %v11275_v28 }
 0x2c0   : > { %7883 = vmatprep.mubr.f32.mxu1 %v11283_v62  ;;  %v5440_v35 = vpop.f32.mrf.mxu1  ;;  %v5326_v15 = vpop.f32.mrf.mxu0 }
 0x2c1   : > { %v5441_v9 = vadd.f32 %v5440_v35, %v5311_v63  ;;  %v5327_v48 = vadd.f32 %v5326_v15, %v5167_v45  ;;  %v5151_v45 = vadd.f32 %v11295_v16, %v11286_v56  ;;  %v5325_v16 = vadd.f32 %v5324_v0, %v5165_v14 }
 0x2c2   : > { %v5447_v23 = vpop.f32.mrf.mxu1  ;;  %v11384_v54 = vpop.f32.mrf.mxu0 }
 0x2c3   : > { %7884 = vmatmul.mubr.f32.gmra.mxu1 %v11302_v34 }
 0x2c4   : > { %v11382_v28 = vpop.f32.mrf.mxu1  ;;  %v11386_v55 = vpop.f32.mrf.mxu0 }
 0x2c6   : > { %v5456_v8 = vpop.f32.mrf.mxu1 }
 0x2c8   : > { %v5458_v62 = vpop.f32.mrf.mxu1 }
 0x2c9   : > { %v5459_v29 = vadd.f32 %v5458_v62, %v5327_v48 }
 0x2ca   : > { %v11388_v46 = vpop.f32.mrf.mxu1 }
 0x2cc   : > { %v11391_v24 = vpop.f32.mrf.mxu1 }
 0x2dd   : > { %v5633_v50 = vpop.f32.mrf.mxu0 }
 0x2df   : > { %v5635_v18 = vpop.f32.mrf.mxu0 }
 0x2e0   : > { %v5636_v2 = vadd.f32 %v5635_v18, %v5441_v9 }
 0x2e2   : > { %v5640_v32 = vpop.f32.mrf.mxu0 }
 0x2e4   : > { %v11393_v49 = vpop.f32.mrf.mxu0 }
 0x2e5   : > { %v5758_v34 = vpop.f32.mrf.mxu1 }
 0x2e7   : > { %v5760_v37 = vpop.f32.mrf.mxu1  ;;  %v5647_v11 = vpop.f32.mrf.mxu0 }
 0x2e8   : > { %v5761_v39 = vadd.f32 %v5760_v37, %v5636_v2 }
 0x2e9   : > { %v5649_v19 = vpop.f32.mrf.mxu0 }
 0x2ea   : > { %v11396_v40 = vadd.f32 %v5761_v39, %v12376_v57  ;;  %v5650_v60 = vadd.f32 %v5649_v19, %v5459_v29  ;;  %v5309_v19 = vadd.f32 %v5308_v31, %v5151_v45  ;;  %v5172_v45 = vadd.f32 %v11376_v22, %v11365_v41  ;;  %v12379_v22 = vld [vmem:[#allocation38_spill] sm:$0xff] }
 0x2ec   : > { %v5765_v52 = vpop.f32.mrf.mxu1  ;;  %v5654_v7 = vpop.f32.mrf.mxu0 }
 0x2ee   : > { %v11398_v17 = vpop.f32.mrf.mxu1  ;;  %v11403_v12 = vpop.f32.mrf.mxu0 }
 0x2f1   : > { %v5772_v30 = vpop.f32.mrf.mxu1 }
 0x2f3   : > { %v5774_v4 = vpop.f32.mrf.mxu1 }
 0x2f4   : > { %v5775_v26 = vadd.f32 %v5774_v4, %v5650_v60  ;;  %v5158_v60 = vadd.f32 %v11358_v43, %v11339_v42  ;;  %v5439_v4 = vadd.f32 %v5438_v36, %v5309_v19  ;;  %v5457_v42 = vadd.f32 %v5456_v8, %v5325_v16  ;;  %v12378_v36 = vld [vmem:[#allocation87_spill] sm:$0xff]  ;;  %v12381_v16 = vld [vmem:[#allocation90_spill] sm:$0xff] }
 0x2f5   : > { %v5333_v19 = vadd.f32 %v11384_v54, %v5172_v45 }
 0x2f6   : > { %v11401_v61 = vadd.f32 %v5775_v26, %v12377_v53  ;;  %v5779_v18 = vpop.f32.mrf.mxu1  ;;  %v5317_v53 = vadd.f32 %v5316_v5, %v5158_v60  ;;  %v5634_v59 = vadd.f32 %v5633_v50, %v5439_v4  ;;  %v5648_v25 = vadd.f32 %v5647_v11, %v5457_v42  ;;  %v12382_v42 = vld [vmem:[#allocation33_spill] sm:$0xff] }
 0x2f7   : > { %v5466_v14 = vadd.f32 %v11388_v46, %v5333_v19 }
 0x2f8   : > { %v11411_v47 = vpop.f32.mrf.mxu1  ;;  %v5448_v10 = vadd.f32 %v5447_v23, %v5317_v53  ;;  %v5759_v56 = vadd.f32 %v5758_v34, %v5634_v59  ;;  %v5160_v59 = vadd.f32 %v11363_v44, %v11345_v33 }
 0x2fa   : > { %v5641_v31 = vadd.f32 %v5640_v32, %v5448_v10  ;;  %v6786_v5 = vadd.f32 %v5759_v56, %v12378_v36  ;;  %v5773_v10 = vadd.f32 %v5772_v30, %v5648_v25  ;;  %v5319_v8 = vadd.f32 %v11380_v51, %v5160_v59 }
 0x2fb   : > { %v5655_v32 = vadd.f32 %v5654_v7, %v5466_v14  ;;  %v5174_v7 = vadd.f32 %v11378_v38, %v11371_v27 }
 0x2fc   : > { %v5766_v50 = vadd.f32 %v5765_v52, %v5641_v31  ;;  %v7788_v41 = vmul.f32 -1.442695, %v6786_v5  ;;  %v5450_v11 = vadd.f32 %v11382_v28, %v5319_v8  ;;  %v12380_v52 = vld [vmem:[#allocation37_spill] sm:$0xff] }
 0x2fd   : > { %v6794_v60 = vadd.f32 %v5773_v10, %v12380_v52  ;;  %v5780_v4 = vadd.f32 %v5779_v18, %v5655_v32  ;;  %v7789_v18 = vmul.f32 -1.442695, %v11396_v40  ;;  %v5335_v45 = vadd.f32 %v11386_v55, %v5174_v7 }
 0x2fe   : > { %v6790_v23 = vadd.f32 %v5766_v50, %v12379_v22  ;;  %7975 = vpow2.f32 %v7788_v41  ;;  %v5643_v44 = vadd.f32 %v11393_v49, %v5450_v11  ;;  %v7793_v10 = vmul.f32 -1.442695, %v11401_v61 }
 0x2ff   : > { %v7792_v56 = vmul.f32 -1.442695, %v6794_v60  ;;  %v6798_v51 = vadd.f32 %v5780_v4, %v12381_v16 }
 0x300   : > { %v7790_v33 = vmul.f32 -1.442695, %v6790_v23  ;;  %v5768_v53 = vadd.f32 %v11398_v17, %v5643_v44  ;;  %v5468_v17 = vadd.f32 %v11391_v24, %v5335_v45  ;;  %v12383_v24 = vld [vmem:[#allocation92_spill] sm:$0xff] }
 0x301   : > { %v7794_v36 = vmul.f32 -1.442695, %v6798_v51 }
 0x302   : > { %7977 = vpow2.f32 %v7790_v33  ;;  %v6791_v49 = vadd.f32 %v5768_v53, %v12382_v42  ;;  %v5657_v25 = vadd.f32 %v11403_v12, %v5468_v17 }
 0x303   : > { %7979 = vpow2.f32 %v7792_v56 }
 0x304   : > { %7981 = vpow2.f32 %v7789_v18  ;;  %v7791_v19 = vmul.f32 -1.442695, %v6791_v49  ;;  %v5782_v38 = vadd.f32 %v11411_v47, %v5657_v25 }
 0x305   : > { %7983 = vpow2.f32 %v7794_v36 }
 0x306   : > { %7985 = vpow2.f32 %v7791_v19  ;;  %v6799_v41 = vadd.f32 %v5782_v38, %v12383_v24 }
 0x307   : > { %v11405_v35 = vpop.f32.mrf.mxu0 }
 0x308   : > { %v7795_v47 = vmul.f32 -1.442695, %v6799_v41 }
 0x309   : > { %v11407_v63 = vpop.f32.mrf.mxu0 }
 0x30b   : > { %v7976_v27 = vpop.eup %7975 }
 0x30c   : > { %v6826_v55 = vadd.f32 1.0, %v7976_v27 }
 0x30e   : > { %7987 = vrcp.f32 %v6826_v55 }
 0x30f   : > { %v7978_v14 = vpop.eup %7977  ;;  %7989 = vpow2.f32 %v7793_v10 }
 0x310   : > { %v11413_v15 = vpop.f32.mrf.mxu1  ;;  %v7980_v12 = vpop.eup %7979  ;;  %v6828_v32 = vadd.f32 1.0, %v7978_v14 }
 0x311   : > { %v6153_v60 = vadd.f32 %v11413_v15, %v11405_v35  ;;  %v7982_v4 = vpop.eup %7981  ;;  %v6830_v33 = vadd.f32 1.0, %v7980_v12 }
 0x312   : > { %v11417_v9 = vpop.f32.mrf.mxu1  ;;  %v7984_v53 = vpop.eup %7983  ;;  %7991 = vrcp.f32 %v6828_v32 }
 0x313   : > { %v6155_v61 = vadd.f32 %v11417_v9, %v11407_v63  ;;  %7993 = vpow2.f32 %v7795_v47  ;;  %v6827_v9 = vadd.f32 1.0, %v7982_v4  ;;  %v6832_v45 = vadd.f32 1.0, %v7984_v53  ;;  %v7986_v49 = vpop.eup %7985 }
 0x314   : > { %7995 = vrcp.f32 %v6830_v33  ;;  %v6829_v38 = vadd.f32 1.0, %v7986_v49 }
 0x315   : > { %7997 = vrcp.f32 %v6827_v9  ;;  %v12385_v9 = vld [vmem:[#allocation99_spill] sm:$0xff] }
 0x316   : > { %7999 = vrcp.f32 %v6832_v45 }
 0x317   : > { %8001 = vrcp.f32 %v6829_v38  ;;  %v12388_v38 = vld [vmem:[#allocation96_spill] sm:$0xff] }
 0x31b   : > { %v7988_v24 = vpop.eup %7987 }
 0x31d   : > { %v11409_v13 = vpop.f32.mrf.mxu0 }
 0x31f   : > { %v11415_v62 = vpop.f32.mrf.mxu0 }
 0x323   : > { %v11419_v2 = vpop.f32.mrf.mxu0  ;;  %v11421_v37 = vpop.f32.mrf.mxu1 }
 0x324   : > { %v6160_v18 = vadd.f32 %v11421_v37, %v11409_v13 }
 0x325   : > { %v11423_v39 = vpop.f32.mrf.mxu0  ;;  %v11425_v57 = vpop.f32.mrf.mxu1 }
 0x326   : > { %v6162_v35 = vadd.f32 %v11425_v57, %v11415_v62 }
 0x329   : > { %v11429_v48 = vpop.f32.mrf.mxu0  ;;  %v11431_v29 = vpop.f32.mrf.mxu1 }
 0x32a   : > { %v6167_v25 = vadd.f32 %v11431_v29, %v11419_v2 }
 0x32b   : > { %v11435_v26 = vpop.f32.mrf.mxu0  ;;  %v11439_v20 = vpop.f32.mrf.mxu1 }
 0x32c   : > { %v6169_v13 = vadd.f32 %v11439_v20, %v11423_v39 }
 0x32f   : > { %v11441_v21 = vpop.f32.mrf.mxu0  ;;  %v11445_v43 = vpop.f32.mrf.mxu1 }
 0x330   : > { %v6311_v56 = vadd.f32 %v11441_v21, %v6153_v60  ;;  %v6174_v20 = vadd.f32 %v11445_v43, %v11429_v48 }
 0x331   : > { %v11449_v1 = vpop.f32.mrf.mxu0  ;;  %v11454_v0 = vpop.f32.mrf.mxu1 }
 0x332   : > { %v6313_v16 = vadd.f32 %v11449_v1, %v6155_v61  ;;  %v6176_v39 = vadd.f32 %v11454_v0, %v11435_v26 }
 0x335   : > { %v11458_v34 = vpop.f32.mrf.mxu0 }
 0x336   : > { %v6319_v21 = vadd.f32 %v11458_v34, %v6160_v18 }
 0x337   : > { %v6320_v46 = vpop.f32.mrf.mxu0 }
 0x338   : > { %v6321_v36 = vadd.f32 %v6320_v46, %v6162_v35 }
 0x339   : > { %v6440_v54 = vpop.f32.mrf.mxu1 }
 0x33a   : > { %v11467_v31 = vpop.f32.mrf.mxu0  ;;  %v6441_v15 = vadd.f32 %v6440_v54, %v6311_v56 }
 0x33b   : > { %v6442_v30 = vpop.f32.mrf.mxu1  ;;  %v6327_v34 = vadd.f32 %v11467_v31, %v6167_v25  ;;  %v7990_v31 = vpop.eup %7989 }
 0x33c   : > { %v6328_v5 = vpop.f32.mrf.mxu0  ;;  %v6443_v63 = vadd.f32 %v6442_v30, %v6313_v16  ;;  %v6831_v61 = vadd.f32 1.0, %v7990_v31 }
 0x33d   : > { %v6329_v46 = vadd.f32 %v6328_v5, %v6169_v13 }
 0x33f   : > { %v6449_v28 = vpop.f32.mrf.mxu1 }
 0x340   : > { %v11475_v59 = vpop.f32.mrf.mxu0  ;;  %v6450_v37 = vadd.f32 %v6449_v28, %v6319_v21 }
 0x341   : > { %v6451_v50 = vpop.f32.mrf.mxu1 }
 0x342   : > { %v11481_v22 = vpop.f32.mrf.mxu0  ;;  %v6452_v57 = vadd.f32 %v6451_v50, %v6321_v36 }
 0x345   : > { %v11477_v40 = vpop.f32.mrf.mxu1 }
 0x346   : > { %v6459_v28 = vadd.f32 %v11477_v40, %v6327_v34 }
 0x347   : > { %v6460_v23 = vpop.f32.mrf.mxu1 }
 0x348   : > { %v6461_v50 = vadd.f32 %v6460_v23, %v6329_v46  ;;  %v7992_v23 = vpop.eup %7991 }
 0x349   : > { %v7994_v53 = vpop.eup %7993 }
 0x34a   : > { %v11483_v11 = vpop.f32.mrf.mxu1  ;;  %v7996_v35 = vpop.eup %7995 }
 0x34b   : > { %v7998_v13 = vpop.eup %7997 }
 0x34c   : > { %v6469_v51 = vpop.f32.mrf.mxu1 }
 0x357   : > { %v6635_v8 = vpop.f32.mrf.mxu0 }
 0x358   : > { %v6636_v1 = vadd.f32 %v6635_v8, %v6441_v15 }
 0x359   : > { %v6637_v52 = vpop.f32.mrf.mxu0 }
 0x35a   : > { %v6638_v17 = vadd.f32 %v6637_v52, %v6443_v63  ;;  %v6337_v52 = vadd.f32 %v11481_v22, %v6176_v39 }
 0x35b   : > { %v6642_v44 = vpop.f32.mrf.mxu0 }
 0x35c   : > { %v6643_v14 = vadd.f32 %v6642_v44, %v6450_v37  ;;  %v6470_v4 = vadd.f32 %v6469_v51, %v6337_v52  ;;  %v12386_v51 = vld [vmem:[#allocation39_spill] sm:$0xff]  ;;  %v12387_v37 = vld [vmem:[#allocation24_spill] sm:$0xff] }
 0x35d   : > { %v6644_v7 = vpop.f32.mrf.mxu0 }
 0x35e   : > { %v6645_v10 = vadd.f32 %v6644_v7, %v6452_v57 }
 0x35f   : > { %v6760_v42 = vpop.f32.mrf.mxu1 }
 0x360   : > { %v6649_v19 = vpop.f32.mrf.mxu0  ;;  %v6761_v54 = vadd.f32 %v6760_v42, %v6636_v1 }
 0x361   : > { %v6762_v62 = vpop.f32.mrf.mxu1  ;;  %v6650_v60 = vadd.f32 %v6649_v19, %v6459_v28 }
 0x362   : > { %v6763_v30 = vadd.f32 %v6762_v62, %v6638_v17  ;;  %v6651_v27 = vpop.f32.mrf.mxu0  ;;  %v6788_v5 = vadd.f32 %v6761_v54, %v11133_v6 }
 0x363   : > { %v6767_v55 = vpop.f32.mrf.mxu1  ;;  %v6652_v26 = vadd.f32 %v6651_v27, %v6461_v50  ;;  %v6862_v50 = vsub.f32 1.0, %v7998_v13 }
 0x364   : > { %v6789_v2 = vadd.f32 %v6763_v30, %v11142_v58  ;;  %v6656_v29 = vpop.f32.mrf.mxu0  ;;  %v6768_v12 = vadd.f32 %v6767_v55, %v6643_v14  ;;  %v6335_v58 = vadd.f32 %v11475_v59, %v6174_v20  ;;  %v12384_v59 = vld [vmem:[#allocation101_spill] sm:$0xff]  ;;  %v8000_v30 = vpop.eup %7999 }
 0x365   : > { %v6769_v41 = vpop.f32.mrf.mxu1 }
 0x366   : > { %v6850_v8 = vmul.f32 %v7988_v24, %v6789_v2  ;;  %v6770_v32 = vadd.f32 %v6769_v41, %v6645_v10  ;;  %v6658_v47 = vpop.f32.mrf.mxu0  ;;  %v6468_v6 = vadd.f32 %v11483_v11, %v6335_v58  ;;  %v6792_v56 = vadd.f32 %v6768_v12, %v12384_v59  ;;  %v8002_v24 = vpop.eup %8001 }
 0x367   : > { %v6774_v48 = vpop.f32.mrf.mxu1  ;;  %v6833_v11 = vadd.f32 1.0, %v7994_v53  ;;  %v8016_v53 = vld [vmem:[%s8504_s11 + $0x8] sm:$0xff] }
 0x368   : > { %v6854_v43 = vadd.f32 %v6850_v8, %v6788_v5  ;;  %v6793_v0 = vadd.f32 %v6770_v32, %v11168_v3  ;;  %v7842_v40 = vpop.f32.mrf.mxu0  ;;  %v6775_v33 = vadd.f32 %v6774_v48, %v6650_v60  ;;  %v6657_v15 = vadd.f32 %v6656_v29, %v6468_v6  ;;  %v8015_v32 = vld [vmem:[%s8504_s11] sm:$0xff] }
 0x369   : > { %v6776_v44 = vpop.f32.mrf.mxu1  ;;  %v6659_v3 = vadd.f32 %v6658_v47, %v6470_v4  ;;  %v6870_v47 = vmul.f32 %v8015_v32, %v7998_v13  ;;  %v6871_v59 = vmul.f32 %v8016_v53, %v8002_v24 }
 0x36a   : > { %8003 = vtanh.f32 %v6854_v43  ;;  %v6851_v22 = vmul.f32 %v7992_v23, %v6793_v0  ;;  %v6777_v16 = vadd.f32 %v6776_v44, %v6652_v26  ;;  %v6972_v7 = vpop.f32.mrf.mxu0  ;;  %v6796_v49 = vadd.f32 %v6775_v33, %v12386_v51 }
 0x36b   : > { %v6781_v18 = vpop.f32.mrf.mxu1  ;;  %8005 = vrcp.f32 %v6831_v61 }
 0x36c   : > { %v6855_v63 = vadd.f32 %v6851_v22, %v6792_v56  ;;  %v6797_v45 = vadd.f32 %v6777_v16, %v12385_v9  ;;  %v7845_v42 = vpop.f32.mrf.mxu0  ;;  %v6782_v1 = vadd.f32 %v6781_v18, %v6657_v15 }
 0x36d   : > { %v6783_v21 = vpop.f32.mrf.mxu1 }
 0x36e   : > { %8007 = vtanh.f32 %v6855_v63  ;;  %v6852_v36 = vmul.f32 %v7996_v35, %v6797_v45  ;;  %v6784_v17 = vadd.f32 %v6783_v21, %v6659_v3  ;;  %v6992_v19 = vpop.f32.mrf.mxu0  ;;  %v6800_v34 = vadd.f32 %v6782_v1, %v12388_v38  ;;  %v8017_v21 = vld [vmem:[%s8504_s11 + $0x10] sm:$0xff] }
 0x36f   : > { %v7850_v25 = vpop.f32.mrf.mxu1  ;;  %8009 = vrcp.f32 %v6833_v11 }
 0x370   : > { %v6856_v62 = vadd.f32 %v6852_v36, %v6796_v49  ;;  %v6801_v57 = vadd.f32 %v6784_v17, %v12387_v37  ;;  %v7858_v54 = vpop.f32.mrf.mxu0  ;;  %v7085_v2 = vadd.f32 %v7850_v25, %v7842_v40  ;;  %v6863_v40 = vsub.f32 1.0, %v8002_v24 }
 0x371   : > { %v7078_v27 = vpop.f32.mrf.mxu1 }
 0x372   : > { %8011 = vtanh.f32 %v6856_v62  ;;  %v6853_v46 = vmul.f32 %v8000_v30, %v6801_v57  ;;  %v7170_v55 = vpop.f32.mrf.mxu0  ;;  %v7079_v39 = vadd.f32 %v7078_v27, %v6972_v7  ;;  %v7178_v5 = vadd.f32 %v7858_v54, %v7085_v2  ;;  %v8018_v54 = vld [vmem:[%s8504_s11 + $0x18] sm:$0xff] }
 0x373   : > { %v7853_v14 = vpop.f32.mrf.mxu1 }
 0x374   : > { %v6857_v10 = vadd.f32 %v6853_v46, %v6800_v34  ;;  %v7861_v29 = vpop.f32.mrf.mxu0  ;;  %v7097_v58 = vadd.f32 %v7853_v14, %v7845_v42  ;;  %v7171_v43 = vadd.f32 %v7170_v55, %v7079_v39 }
 0x375   : > { %v7090_v20 = vpop.f32.mrf.mxu1 }
 0x376   : > { %8013 = vtanh.f32 %v6857_v10  ;;  %v7184_v28 = vpop.f32.mrf.mxu0  ;;  %v7091_v52 = vadd.f32 %v7090_v20, %v6992_v19  ;;  %v7192_v56 = vadd.f32 %v7861_v29, %v7097_v58 }
 0x377   : > { %v8004_v41 = vpop.eup %8003  ;;  %v7866_v31 = vpop.f32.mrf.mxu1 }
 0x378   : > { %v7874_v8 = vpop.f32.mrf.mxu0  ;;  %v6866_v12 = vmul.f32 %v8004_v41, %v6862_v50  ;;  %v8006_v48 = vpop.eup %8005  ;;  %v7274_v26 = vadd.f32 %v7866_v31, %v7178_v5  ;;  %v7185_v22 = vadd.f32 %v7184_v28, %v7091_v52 }
 0x379   : > { %v7265_v60 = vpop.f32.mrf.mxu1  ;;  %v6864_v15 = vsub.f32 1.0, %v8006_v48  ;;  %v6872_v36 = vmul.f32 %v8017_v21, %v8006_v48 }
 0x37a   : > { %v7363_v0 = vpop.f32.mrf.mxu0  ;;  %v6874_v23 = vadd.f32 %v6870_v47, %v6866_v12  ;;  %v7266_v4 = vadd.f32 %v7265_v60, %v7171_v43  ;;  %v7370_v18 = vadd.f32 %v7874_v8, %v7274_v26 }
 0x37b   : > { %v8008_v61 = vpop.eup %8007  ;;  %v7869_v6 = vpop.f32.mrf.mxu1 }
 0x37c   : > { %v7877_v33 = vpop.f32.mrf.mxu0  ;;  %v6867_v44 = vmul.f32 %v8008_v61, %v6863_v40  ;;  %v8010_v7 = vpop.eup %8009  ;;  %v7290_v3 = vadd.f32 %v7869_v6, %v7192_v56  ;;  %v7364_v42 = vadd.f32 %v7363_v0, %v7266_v4 }
 0x37d   : > { %v7281_v16 = vpop.f32.mrf.mxu1  ;;  %v6865_v25 = vsub.f32 1.0, %v8010_v7  ;;  %v6873_v30 = vmul.f32 %v8018_v54, %v8010_v7 }
 0x37e   : > { %v6875_v35 = vadd.f32 %v6871_v59, %v6867_v44  ;;  %v7282_v9 = vadd.f32 %v7281_v16, %v7185_v22  ;;  %v7375_v11 = vpop.f32.mrf.mxu0  ;;  %v7382_v37 = vadd.f32 %v7877_v33, %v7290_v3 }
 0x37f   : > { %v8012_v63 = vpop.eup %8011  ;;  %v7882_v45 = vpop.f32.mrf.mxu1 }
 0x380   : > { %v7460_v51 = vadd.f32 %v7882_v45, %v7370_v18  ;;  %v6868_v49 = vmul.f32 %v8012_v63, %v6864_v15  ;;  %v7376_v57 = vadd.f32 %v7375_v11, %v7282_v9 }
 0x381   : > { %v7453_v1 = vpop.f32.mrf.mxu1 }
 0x382   : > { %v7480_v17 = vsub.f32 1.0, %v7460_v51  ;;  %v7454_v19 = vadd.f32 %v7453_v1, %v7364_v42  ;;  %v6876_v13 = vadd.f32 %v6872_v36, %v6868_v49  ;;  %v7476_v38 = vmul.f32 %v7460_v51, %v6875_v35 }
 0x383   : > { %v8014_v62 = vpop.eup %8013  ;;  %v7885_v27 = vpop.f32.mrf.mxu1 }
 0x384   : > { %v7484_v34 = vmul.f32 %v8016_v53, %v7480_v17  ;;  %v7479_v46 = vsub.f32 1.0, %v7454_v19  ;;  %v6869_v55 = vmul.f32 %v8014_v62, %v6865_v25  ;;  %v7475_v14 = vmul.f32 %v7454_v19, %v6874_v23 }
 0x385   : > { %v7472_v10 = vadd.f32 %v7885_v27, %v7382_v37  ;;  %v7465_v2 = vpop.f32.mrf.mxu1 }
 0x386   : > { %v7488_v29 = vadd.f32 %v7484_v34, %v7476_v38  ;;  %v7483_v24 = vmul.f32 %v8015_v32, %v7479_v46  ;;  %v6877_v20 = vadd.f32 %v6873_v30, %v6869_v55  ;;  %v7466_v39 = vadd.f32 %v7465_v2, %v7376_v57 }
 0x387   : > { %v7482_v28 = vsub.f32 1.0, %v7472_v10 }
 0x388   : > { %7492 = vst [vmem:[%s654_s13 + $0x8] sm:$0xff] %v7488_v29  ;;  %v7487_v50 = vadd.f32 %v7483_v24, %v7475_v14  ;;  %v7478_v41 = vmul.f32 %v7472_v10, %v6877_v20  ;;  %v7481_v31 = vsub.f32 1.0, %v7466_v39  ;;  %v7477_v8 = vmul.f32 %v7466_v39, %v6876_v13 }
 0x389   : > { %v7486_v5 = vmul.f32 %v8018_v54, %v7482_v28 }
 0x38a   : > { %7491 = vst [vmem:[%s654_s13] sm:$0xff] %v7487_v50  ;;  %v7485_v12 = vmul.f32 %v8017_v21, %v7481_v31 }
 0x38b   : > { %v7490_v32 = vadd.f32 %v7486_v5, %v7478_v41 }
 0x38c   : > { %v7489_v47 = vadd.f32 %v7485_v12, %v7477_v8 }
 0x38d   : > { %7494 = vst [vmem:[%s654_s13 + $0x18] sm:$0xff] %v7490_v32 }
 0x38e   : > { %7493 = vst [vmem:[%s654_s13 + $0x10] sm:$0xff] %v7489_v47 }
 0x38f   : > { %8172 = shalt.err (!%p8169_p13)
}
 0x390   : > { %s8173_s16 = scalar_lea.hbm %s11528_s12, 512  ;;  %s8177_s19 = scalar_lea.hbm %s12390_s14, 1024 }
 0x391   : > { %p8174_p12 = scmp.ne.s32.totalorder %s11528_s12, %s8173_s16  ;;  %p8178_p1 = scmp.lt.s32.totalorder %s11528_s12, %s12390_s14 }
 0x392   : > { %p8179_p8 = scmp.lt.s32.totalorder %s8177_s19, %s8173_s16 }
 0x393   : > { %p8175_p5 = pnand %p8174_p12, %p8377_p9 }
 0x394   : > { %p8180_p0 = por %p8179_p8, %p8178_p1 }
 0x395   : > { %p8176_p6 = pneg %p8175_p5 }
 0x397   : > { %p8181_p3 = pnand %p8180_p0, %p8176_p6 }
 0x399   : > { %8184 = shalt.err (!%p8181_p3)
}
 0x39a   : > { %s8260_s24 = smov 128   ;;  %s8261_s6 = smov 8  }
 0x39b   : > { %7896 = dma.vmem_to_hbm [thread:$0]  (%p8377_p9), %s11523_s23, 512, %s11528_s12, %s7496_s2, %s8260_s24, %s8260_s24, %s8261_s6  }
 0x39c PF: > { %s12391_s22 = sld [smem:[#allocation16_spill]] }
 0x39d   : > { %s12393_s13 = sld [smem:[#allocation18_spill]] }
 0x3a2   : > { %s7526_s29 = sand.u32 1, %s12391_s22  }
 0x3a3   : > { %p12394_p4 = scmp.ge.s32.totalorder %s12393_s13, 2  ;;  %s7527_s27 = scalar_lea.sflag [#allocation4], %s7526_s29 }
 0x3a5   : > { %p7915_p2 = pnand %p12394_p4, %p8384_p11 }
 0x3a7   : > { %p7916_p7 = pneg %p7915_p2 }
 0x3a9   : > { %8222 = dma.done.wait (%p7916_p7), %s7527_s27, 512  }
 0x3aa   : > { %8224 = vsyncadd (%p7916_p7), %s7527_s27, 4294966784  ;;  %s33_s22 = sadd.s32 1, %s12393_s13   ;;  %s12395_s25 = sld [smem:[#allocation17_spill]] }
 0x3ab   : > { %p30_p10 = scmp.ge.s32.totalorder %s33_s22, 4   ;;  %s12396_s19 = sld [smem:[#allocation21_spill]] }
 0x3ac   : > { %s12397_s23 = sld [smem:[#allocation19_spill]]  ;;  %s12398_s17 = smov %s8231_s18 }
 0x3ad   : > { %s12400_s20 = smov %s8243_s21 }
 0x3ae   :  { %32 = sbr.rel (!%p30_p10) target bundleno = 20 (0x14), region = 172 }
 0x3b0   : > { %s12399_s18 = smov %s12395_s25 }
 0x3b2   : > { %s12401_s21 = smov %s12397_s23 }
 0x3b3   :  { %7532 = vsyncpa [#allocation3], 1 }
 0x3b4   :  { %7534 = vsyncpa [#allocation3 + $0x1], 1 }
 0x3b5   :  { %7535 = vsyncpa [#allocation6], 1 }
 0x3b6   :  { %7537 = vsyncpa [#allocation6 + $0x1], 1 }
 0x3b7   :  { %7538 = vsyncpa [#allocation9], 1 }
 0x3b8   :  { %7540 = vsyncpa [#allocation9 + $0x1], 1 }
 0x3b9   :  { %7541 = vsyncpa [#allocation4], 1 }
 0x3ba   :  { %7543 = vsyncpa [#allocation4 + $0x1], 1 }

</bundles_post_ra>
